<compile_context>
chip_gen: v7x
topology: tpu7x:2x2x1
jax: 0.10.0
libtpu: 0.0.40
codegen_flags: <defaults>
</compile_context>

<pallas_src>
import functools
import math

import jax
import jax.numpy as jnp
from jax.experimental import pallas as pl
from jax.experimental.pallas import tpu as pltpu


# ----------------------------- fused Pallas kernel -----------------------------

def _fused_reformer_kernel(x_ref, emb_ref, wa_ref, wb_ref, vec_ref, fin_ref,
                           o_ref, *, n_heads, d_ff, pred_len, c_out):
    f32 = jnp.float32
    L, kin = x_ref.shape[1], x_ref.shape[2]
    D = emb_ref.shape[1]
    dh = D // n_heads
    scale = 1.0 / math.sqrt(dh)

    def layer_norm(s, g, b):
        mu = jnp.mean(s, axis=-1, keepdims=True)
        var = jnp.mean((s - mu) ** 2, axis=-1, keepdims=True)
        return (s - mu) * jax.lax.rsqrt(var + 1e-5) * g + b

    # ---- DataEmbedding: one fused matmul (circular-conv3 value + temporal) + pos ----
    emb = emb_ref[...]                                          # (kin + L, D)
    h = jnp.dot(x_ref[0], emb[:kin, :], preferred_element_type=f32) + emb[kin:, :]

    row = jax.lax.broadcasted_iota(jnp.int32, (L, L), 0)
    col = jax.lax.broadcasted_iota(jnp.int32, (L, L), 1)
    self_mask = row == col

    n_layers = wa_ref.shape[0]
    for e in range(n_layers):                                   # static unroll
        wa = wa_ref[e]                                          # (2D, max(2D, dff))
        wb = wb_ref[e]                                          # (D + dff, D)
        vec = vec_ref[e]                                        # (8, max(D, dff))
        w_qkv = wa[:D, :2 * D]                                  # rows 0:D   -> toqk|tov
        w1 = wa[D:, :d_ff]                                      # rows D:2D  -> FFN conv1
        w2 = wb[D:, :]                                          # rows D:D+dff -> FFN conv2
        b_out = vec[0:1, :D]
        ln1_g, ln1_b = vec[1:2, :D], vec[2:3, :D]
        b1 = vec[3:4, :d_ff]
        b2, ln2_g, ln2_b = vec[4:5, :D], vec[5:6, :D], vec[6:7, :D]

        # --- LSHSelfAttention (shared-QK, full-sequence / single-bucket limit) ---
        qkv = jnp.dot(h, w_qkv, preferred_element_type=f32)     # (L, 2D), one MXU push
        attn = None
        # TODO(synk): a head-batched (H, L, dh) dot_general would also remove the
        # width-dh lane slices below; the per-head 2-D form is kept because every
        # op class in this loop is known to lower cleanly on Mosaic at these shapes.
        for hh in range(n_heads):                               # static unroll
            lo = hh * dh
            qk_h = qkv[:, lo:lo + dh]                           # (L, dh)
            v_h = qkv[:, D + lo:D + lo + dh]                    # (L, dh)
            sumsq = jnp.sum(qk_h * qk_h, axis=-1, keepdims=True)
            k_h = qk_h * jax.lax.rsqrt(jnp.maximum(sumsq, 1e-24))  # l2-normalized keys
            s = jax.lax.dot_general(qk_h, k_h, (((1,), (1,)), ((), ())),
                                    preferred_element_type=f32) * scale
            s = jnp.where(self_mask, -5e4, s)                   # mask self position
            m = jnp.max(s, axis=-1, keepdims=True)
            p = jnp.exp(s - m)
            p = p * pl.reciprocal(jnp.sum(p, axis=-1, keepdims=True), approx=True)
            o_h = jnp.dot(p, v_h, preferred_element_type=f32)   # (L, dh)
            # Per-head output projection with W_out rows lo:lo+dh; summing the
            # per-head projections == concat(heads) @ W_out, with no lane concat.
            c_h = jnp.dot(o_h, wb[lo:lo + dh, :], preferred_element_type=f32)
            attn = c_h if attn is None else attn + c_h
        attn = attn + b_out

        # --- EncoderLayer: residual + LN, FFN(relu), residual + LN ---
        x1 = layer_norm(h + attn, ln1_g, ln1_b)
        ff = jnp.maximum(jnp.dot(x1, w1, preferred_element_type=f32) + b1, 0.0)
        ff = jnp.dot(ff, w2, preferred_element_type=f32) + b2
        h = layer_norm(x1 + ff, ln2_g, ln2_b)

    # ---- final encoder LayerNorm + projection on ONLY the last pred_len rows ----
    fin = fin_ref[...]                                          # (D + 8, D)
    h_tail = layer_norm(h[L - pred_len:, :], fin[D:D + 1, :], fin[D + 1:D + 2, :])
    out = jnp.dot(h_tail, fin[:D, :], preferred_element_type=f32) + fin[D + 2:D + 3, :]
    o_ref[0] = out[:, :c_out].astype(o_ref.dtype)


# ----------------------------- parameters (packed) -----------------------------

def init_params(key, cfg):
    D, H, dff = cfg["d_model"], cfg["n_heads"], cfg["d_ff"]
    c_in, c_out, mk = cfg["enc_in"], cfg["c_out"], cfg["mark_dim"]
    E = cfg["e_layers"]
    L = cfg["seq_len"] + cfg["pred_len"]
    kin = 3 * c_in + mk

    def nrm(k, shape, scale):
        return scale * jax.random.normal(k, shape, jnp.float32)

    keys = iter(jax.random.split(key, 3 + 5 * E))
    p = {}

    # Fused embedding weight: [Conv1d(c_in,D,k=3,circular) as (3*c_in,D) ; Linear(mk,D)]
    w_conv = nrm(next(keys), (3 * c_in, D), (2.0 / (3 * c_in)) ** 0.5)
    w_mark = nrm(next(keys), (mk, D), mk ** -0.5)
    # PositionalEmbedding (fixed sinusoidal), packed under the embedding weight.
    position = jnp.arange(L, dtype=jnp.float32)[:, None]
    div_term = jnp.exp(jnp.arange(0, D, 2, dtype=jnp.float32)
                       * (-math.log(10000.0) / D))
    pe = jnp.zeros((L, D), jnp.float32)
    pe = pe.at[:, 0::2].set(jnp.sin(position * div_term))
    pe = pe.at[:, 1::2].set(jnp.cos(position * div_term))
    p["emb"] = jnp.concatenate([w_conv, w_mark, pe], axis=0)    # (kin + L, D)

    wa_cols = max(2 * D, dff)
    vw = max(D, dff)
    wa_list, wb_list, vec_list = [], [], []
    for _ in range(E):
        w_qk = nrm(next(keys), (D, D), D ** -0.5)   # LSHSelfAttention.toqk (no bias)
        w_v = nrm(next(keys), (D, D), D ** -0.5)    # LSHSelfAttention.tov  (no bias)
        w_qkv = jnp.concatenate([w_qk, w_v], axis=1)            # (D, 2D)
        w_out = nrm(next(keys), (D, D), D ** -0.5)              # to_out
        w1 = nrm(next(keys), (D, dff), D ** -0.5)               # conv1 (k=1) == linear
        w2 = nrm(next(keys), (dff, D), dff ** -0.5)             # conv2 (k=1) == linear
        a = jnp.zeros((2 * D, wa_cols), jnp.float32)
        a = a.at[:D, :2 * D].set(w_qkv).at[D:, :dff].set(w1)
        wa_list.append(a)                                       # (2D, wa_cols)
        wb_list.append(jnp.concatenate([w_out, w2], axis=0))    # (D + dff, D)
        # rows: 0 b_out, 1 ln1_g, 2 ln1_b, 3 b1, 4 b2, 5 ln2_g, 6 ln2_b, 7 unused
        vec = jnp.zeros((8, vw), jnp.float32)
        vec = vec.at[1, :D].set(1.0).at[5, :D].set(1.0)         # LN gammas = 1
        vec_list.append(vec)
    p["wA"] = jnp.stack(wa_list)
    p["wB"] = jnp.stack(wb_list)
    p["vecs"] = jnp.stack(vec_list)

    # Final pack: rows 0:D = proj_w (padded to D cols), D = norm_g, D+1 = norm_b,
    # D+2 = proj_b (padded); remaining rows zero.
    fin = jnp.zeros((D + 8, D), jnp.float32)
    fin = fin.at[:D, :c_out].set(nrm(next(keys), (D, c_out), D ** -0.5))
    fin = fin.at[D, :].set(1.0)
    p["fin"] = fin
    return p


# ----------------------------- forward pass -----------------------------

def reformer_forward(params, x_enc, x_mark_enc, x_dec, x_mark_dec, cfg):
    pred_len, H = cfg["pred_len"], cfg["n_heads"]
    dff, c_out = cfg["d_ff"], cfg["c_out"]

    # concat encoder input with the prediction window of the decoder input
    x = jnp.concatenate([x_enc, x_dec[:, -pred_len:, :]], axis=1)
    xm = jnp.concatenate([x_mark_enc, x_mark_dec[:, -pred_len:, :]], axis=1)
    B, L, _ = x.shape

    # circular conv (k=3) neighbourhood + temporal marks fused into ONE operand
    x_emb = jnp.concatenate(
        [jnp.roll(x, 1, axis=1), x, jnp.roll(x, -1, axis=1), xm], axis=-1)
    kin = x_emb.shape[-1]

    emb, wa, wb, vec, fin = (params["emb"], params["wA"], params["wB"],
                             params["vecs"], params["fin"])

    def replicated(arr):
        zeros = (0,) * arr.ndim
        return pl.BlockSpec(arr.shape, lambda b, z=zeros: z)

    kernel = functools.partial(_fused_reformer_kernel, n_heads=H, d_ff=dff,
                               pred_len=pred_len, c_out=c_out)

    out = pl.pallas_call(
        kernel,
        out_shape=jax.ShapeDtypeStruct((B, pred_len, c_out), x.dtype),
        grid=(B,),
        in_specs=[pl.BlockSpec((1, L, kin), lambda b: (b, 0, 0)),
                  replicated(emb), replicated(wa), replicated(wb),
                  replicated(vec), replicated(fin)],
        out_specs=pl.BlockSpec((1, pred_len, c_out), lambda b: (b, 0, 0)),
        compiler_params=pltpu.CompilerParams(
            dimension_semantics=("parallel",)),
    )(x_emb, emb, wa, wb, vec, fin)
    return out                                     # (B, pred_len, c_out)


# ----------------------------- main -----------------------------

if __name__ == "__main__":
    cfg = dict(
        enc_in=4, dec_in=4, c_out=4, d_model=32, n_heads=4, d_ff=64,
        e_layers=2, seq_len=16, label_len=8, pred_len=8, mark_dim=4,
        bucket_size=4, n_hashes=2,
    )
    key = jax.random.PRNGKey(0)
    kp, kx = jax.random.split(key)
    params = init_params(kp, cfg)

    B = 2
    ks = jax.random.split(kx, 4)
    dec_len = cfg["label_len"] + cfg["pred_len"]
    x_enc = jax.random.normal(ks[0], (B, cfg["seq_len"], cfg["enc_in"]), jnp.float32)
    x_mark_enc = jax.random.normal(ks[1], (B, cfg["seq_len"], cfg["mark_dim"]), jnp.float32)
    x_dec = jax.random.normal(ks[2], (B, dec_len, cfg["dec_in"]), jnp.float32)
    x_mark_dec = jax.random.normal(ks[3], (B, dec_len, cfg["mark_dim"]), jnp.float32)

    out = reformer_forward(params, x_enc, x_mark_enc, x_dec, x_mark_dec, cfg)
    out = jax.block_until_ready(out)
    assert out.shape == (B, cfg["pred_len"], cfg["c_out"]), out.shape
    assert bool(jnp.all(jnp.isfinite(out)))
    print("KERNEL_OK")
</pallas_src>

<mosaic_0001>
module attributes {stable_mosaic.version = 11 : i64} {
  func.func @_fused_reformer_kernel(%arg0: i32, %arg1: memref<1x24x16xf32, #tpu.memory_space<vmem>>, %arg2: memref<40x32xf32, #tpu.memory_space<vmem>>, %arg3: memref<2x64x64xf32, #tpu.memory_space<vmem>>, %arg4: memref<2x96x32xf32, #tpu.memory_space<vmem>>, %arg5: memref<2x8x64xf32, #tpu.memory_space<vmem>>, %arg6: memref<40x32xf32, #tpu.memory_space<vmem>>, %arg7: memref<1x8x4xf32, #tpu.memory_space<vmem>>) attributes {dimension_semantics = [#tpu.dimension_semantics<parallel>], iteration_bounds = array<i64: 2>, scalar_prefetch = 0 : i64, scratch_operands = 0 : i64, tpu.core_type = #tpu.core_type<tc>, window_params = [{transform_indices = @transform_0, window_bounds = array<i64: 1, 24, 16>}, {pipeline_mode = #tpu.pipeline_mode<synchronous>, transform_indices = @transform_1, window_bounds = array<i64: 40, 32>}, {pipeline_mode = #tpu.pipeline_mode<synchronous>, transform_indices = @transform_2, window_bounds = array<i64: 2, 64, 64>}, {pipeline_mode = #tpu.pipeline_mode<synchronous>, transform_indices = @transform_3, window_bounds = array<i64: 2, 96, 32>}, {pipeline_mode = #tpu.pipeline_mode<synchronous>, transform_indices = @transform_4, window_bounds = array<i64: 2, 8, 64>}, {pipeline_mode = #tpu.pipeline_mode<synchronous>, transform_indices = @transform_5, window_bounds = array<i64: 40, 32>}, {transform_indices = @transform_6, window_bounds = array<i64: 1, 8, 4>}]} {
    %c0 = arith.constant 0 : index
    %c0_0 = arith.constant 0 : index
    %0 = vector.load %arg2[%c0, %c0_0] : memref<40x32xf32, #tpu.memory_space<vmem>>, vector<40x32xf32>
    %c0_1 = arith.constant 0 : index
    %c0_2 = arith.constant 0 : index
    %c0_3 = arith.constant 0 : index
    %1 = vector.load %arg1[%c0_1, %c0_2, %c0_3] : memref<1x24x16xf32, #tpu.memory_space<vmem>>, vector<1x24x16xf32>
    %2 = vector.shape_cast %1 : vector<1x24x16xf32> to vector<24x16xf32>
    %3 = vector.extract_strided_slice %0 {offsets = [0, 0], sizes = [16, 32], strides = [1, 1]} : vector<40x32xf32> to vector<16x32xf32>
    %cst = arith.constant dense<0.000000e+00> : vector<24x32xf32>
    %4 = tpu.matmul %2, %3, %cst {dimension_numbers = #tpu.dot_dimension_numbers<[1], [0], [0], [1], [0, 0, 1, 1], [], []>} : vector<24x16xf32>, vector<16x32xf32>, vector<24x32xf32> -> vector<24x32xf32>
    %5 = vector.extract_strided_slice %0 {offsets = [16, 0], sizes = [24, 32], strides = [1, 1]} : vector<40x32xf32> to vector<24x32xf32>
    %6 = arith.addf %4, %5 : vector<24x32xf32>
    %7 = tpu.iota {dimensions = array<i32: 0>} : vector<24x24xi32>
    %8 = tpu.iota {dimensions = array<i32: 1>} : vector<24x24xi32>
    %9 = arith.cmpi eq, %7, %8 : vector<24x24xi32>
    %c0_4 = arith.constant 0 : index
    %c0_5 = arith.constant 0 : index
    %c0_6 = arith.constant 0 : index
    %10 = vector.load %arg3[%c0_4, %c0_5, %c0_6] : memref<2x64x64xf32, #tpu.memory_space<vmem>>, vector<1x64x64xf32>
    %11 = vector.shape_cast %10 : vector<1x64x64xf32> to vector<64x64xf32>
    %c0_7 = arith.constant 0 : index
    %c0_8 = arith.constant 0 : index
    %c0_9 = arith.constant 0 : index
    %12 = vector.load %arg4[%c0_7, %c0_8, %c0_9] : memref<2x96x32xf32, #tpu.memory_space<vmem>>, vector<1x96x32xf32>
    %13 = vector.shape_cast %12 : vector<1x96x32xf32> to vector<96x32xf32>
    %c0_10 = arith.constant 0 : index
    %c0_11 = arith.constant 0 : index
    %c0_12 = arith.constant 0 : index
    %14 = vector.load %arg5[%c0_10, %c0_11, %c0_12] : memref<2x8x64xf32, #tpu.memory_space<vmem>>, vector<1x8x64xf32>
    %15 = vector.shape_cast %14 : vector<1x8x64xf32> to vector<8x64xf32>
    %16 = vector.extract_strided_slice %11 {offsets = [0, 0], sizes = [32, 64], strides = [1, 1]} : vector<64x64xf32> to vector<32x64xf32>
    %17 = vector.extract_strided_slice %11 {offsets = [32, 0], sizes = [32, 64], strides = [1, 1]} : vector<64x64xf32> to vector<32x64xf32>
    %18 = vector.extract_strided_slice %13 {offsets = [32, 0], sizes = [64, 32], strides = [1, 1]} : vector<96x32xf32> to vector<64x32xf32>
    %19 = vector.extract_strided_slice %15 {offsets = [0, 0], sizes = [1, 32], strides = [1, 1]} : vector<8x64xf32> to vector<1x32xf32>
    %20 = vector.extract_strided_slice %15 {offsets = [1, 0], sizes = [1, 32], strides = [1, 1]} : vector<8x64xf32> to vector<1x32xf32>
    %21 = vector.extract_strided_slice %15 {offsets = [2, 0], sizes = [1, 32], strides = [1, 1]} : vector<8x64xf32> to vector<1x32xf32>
    %22 = vector.extract_strided_slice %15 {offsets = [3, 0], sizes = [1, 64], strides = [1, 1]} : vector<8x64xf32> to vector<1x64xf32>
    %23 = vector.extract_strided_slice %15 {offsets = [4, 0], sizes = [1, 32], strides = [1, 1]} : vector<8x64xf32> to vector<1x32xf32>
    %24 = vector.extract_strided_slice %15 {offsets = [5, 0], sizes = [1, 32], strides = [1, 1]} : vector<8x64xf32> to vector<1x32xf32>
    %25 = vector.extract_strided_slice %15 {offsets = [6, 0], sizes = [1, 32], strides = [1, 1]} : vector<8x64xf32> to vector<1x32xf32>
    %cst_13 = arith.constant dense<0.000000e+00> : vector<24x64xf32>
    %26 = tpu.matmul %6, %16, %cst_13 {dimension_numbers = #tpu.dot_dimension_numbers<[1], [0], [0], [1], [0, 0, 1, 1], [], []>} : vector<24x32xf32>, vector<32x64xf32>, vector<24x64xf32> -> vector<24x64xf32>
    %27 = vector.extract_strided_slice %26 {offsets = [0, 0], sizes = [24, 8], strides = [1, 1]} : vector<24x64xf32> to vector<24x8xf32>
    %28 = vector.extract_strided_slice %26 {offsets = [0, 32], sizes = [24, 8], strides = [1, 1]} : vector<24x64xf32> to vector<24x8xf32>
    %29 = arith.mulf %27, %27 : vector<24x8xf32>
    %cst_14 = arith.constant dense<0.000000e+00> : vector<24xf32>
    %30 = vector.multi_reduction <add>, %29, %cst_14 [1] : vector<24x8xf32> to vector<24xf32>
    %31 = vector.shape_cast %30 : vector<24xf32> to vector<24x1xf32>
    %cst_15 = arith.constant 1.000000e-24 : f32
    %32 = vector.broadcast %cst_15 : f32 to vector<24x1xf32>
    %33 = arith.maximumf %31, %32 : vector<24x1xf32>
    %34 = math.rsqrt %33 : vector<24x1xf32>
    %35 = vector.broadcast %34 : vector<24x1xf32> to vector<24x8xf32>
    %36 = arith.mulf %27, %35 : vector<24x8xf32>
    %cst_16 = arith.constant dense<0.000000e+00> : vector<24x24xf32>
    %37 = tpu.matmul %27, %36, %cst_16 {dimension_numbers = #tpu.dot_dimension_numbers<[1], [1], [0], [0], [0, 0, 1, 0], [], []>} : vector<24x8xf32>, vector<24x8xf32>, vector<24x24xf32> -> vector<24x24xf32>
    %cst_17 = arith.constant 0.353553385 : f32
    %38 = vector.broadcast %cst_17 : f32 to vector<24x24xf32>
    %39 = arith.mulf %37, %38 : vector<24x24xf32>
    %cst_18 = arith.constant -5.000000e+04 : f32
    %40 = vector.broadcast %cst_18 : f32 to vector<24x24xf32>
    %41 = arith.select %9, %40, %39 : vector<24x24xi1>, vector<24x24xf32>
    %cst_19 = arith.constant dense<0xFF800000> : vector<24xf32>
    %42 = vector.multi_reduction <maximumf>, %41, %cst_19 [1] : vector<24x24xf32> to vector<24xf32>
    %43 = vector.shape_cast %42 : vector<24xf32> to vector<24x1xf32>
    %44 = vector.broadcast %43 : vector<24x1xf32> to vector<24x24xf32>
    %45 = arith.subf %41, %44 : vector<24x24xf32>
    %46 = math.exp %45 : vector<24x24xf32>
    %cst_20 = arith.constant dense<0.000000e+00> : vector<24xf32>
    %47 = vector.multi_reduction <add>, %46, %cst_20 [1] : vector<24x24xf32> to vector<24xf32>
    %48 = vector.shape_cast %47 : vector<24xf32> to vector<24x1xf32>
    %49 = tpu.reciprocal %48 {approx = true} : vector<24x1xf32> -> vector<24x1xf32>
    %50 = vector.broadcast %49 : vector<24x1xf32> to vector<24x24xf32>
    %51 = arith.mulf %46, %50 : vector<24x24xf32>
    %cst_21 = arith.constant dense<0.000000e+00> : vector<24x8xf32>
    %52 = tpu.matmul %51, %28, %cst_21 {dimension_numbers = #tpu.dot_dimension_numbers<[1], [0], [0], [1], [0, 0, 1, 1], [], []>} : vector<24x24xf32>, vector<24x8xf32>, vector<24x8xf32> -> vector<24x8xf32>
    %53 = vector.extract_strided_slice %13 {offsets = [0, 0], sizes = [8, 32], strides = [1, 1]} : vector<96x32xf32> to vector<8x32xf32>
    %cst_22 = arith.constant dense<0.000000e+00> : vector<24x32xf32>
    %54 = tpu.matmul %52, %53, %cst_22 {dimension_numbers = #tpu.dot_dimension_numbers<[1], [0], [0], [1], [0, 0, 1, 1], [], []>} : vector<24x8xf32>, vector<8x32xf32>, vector<24x32xf32> -> vector<24x32xf32>
    %55 = vector.extract_strided_slice %26 {offsets = [0, 8], sizes = [24, 8], strides = [1, 1]} : vector<24x64xf32> to vector<24x8xf32>
    %56 = vector.extract_strided_slice %26 {offsets = [0, 40], sizes = [24, 8], strides = [1, 1]} : vector<24x64xf32> to vector<24x8xf32>
    %57 = arith.mulf %55, %55 : vector<24x8xf32>
    %cst_23 = arith.constant dense<0.000000e+00> : vector<24xf32>
    %58 = vector.multi_reduction <add>, %57, %cst_23 [1] : vector<24x8xf32> to vector<24xf32>
    %59 = vector.shape_cast %58 : vector<24xf32> to vector<24x1xf32>
    %cst_24 = arith.constant 1.000000e-24 : f32
    %60 = vector.broadcast %cst_24 : f32 to vector<24x1xf32>
    %61 = arith.maximumf %59, %60 : vector<24x1xf32>
    %62 = math.rsqrt %61 : vector<24x1xf32>
    %63 = vector.broadcast %62 : vector<24x1xf32> to vector<24x8xf32>
    %64 = arith.mulf %55, %63 : vector<24x8xf32>
    %cst_25 = arith.constant dense<0.000000e+00> : vector<24x24xf32>
    %65 = tpu.matmul %55, %64, %cst_25 {dimension_numbers = #tpu.dot_dimension_numbers<[1], [1], [0], [0], [0, 0, 1, 0], [], []>} : vector<24x8xf32>, vector<24x8xf32>, vector<24x24xf32> -> vector<24x24xf32>
    %cst_26 = arith.constant 0.353553385 : f32
    %66 = vector.broadcast %cst_26 : f32 to vector<24x24xf32>
    %67 = arith.mulf %65, %66 : vector<24x24xf32>
    %cst_27 = arith.constant -5.000000e+04 : f32
    %68 = vector.broadcast %cst_27 : f32 to vector<24x24xf32>
    %69 = arith.select %9, %68, %67 : vector<24x24xi1>, vector<24x24xf32>
    %cst_28 = arith.constant dense<0xFF800000> : vector<24xf32>
    %70 = vector.multi_reduction <maximumf>, %69, %cst_28 [1] : vector<24x24xf32> to vector<24xf32>
    %71 = vector.shape_cast %70 : vector<24xf32> to vector<24x1xf32>
    %72 = vector.broadcast %71 : vector<24x1xf32> to vector<24x24xf32>
    %73 = arith.subf %69, %72 : vector<24x24xf32>
    %74 = math.exp %73 : vector<24x24xf32>
    %cst_29 = arith.constant dense<0.000000e+00> : vector<24xf32>
    %75 = vector.multi_reduction <add>, %74, %cst_29 [1] : vector<24x24xf32> to vector<24xf32>
    %76 = vector.shape_cast %75 : vector<24xf32> to vector<24x1xf32>
    %77 = tpu.reciprocal %76 {approx = true} : vector<24x1xf32> -> vector<24x1xf32>
    %78 = vector.broadcast %77 : vector<24x1xf32> to vector<24x24xf32>
    %79 = arith.mulf %74, %78 : vector<24x24xf32>
    %cst_30 = arith.constant dense<0.000000e+00> : vector<24x8xf32>
    %80 = tpu.matmul %79, %56, %cst_30 {dimension_numbers = #tpu.dot_dimension_numbers<[1], [0], [0], [1], [0, 0, 1, 1], [], []>} : vector<24x24xf32>, vector<24x8xf32>, vector<24x8xf32> -> vector<24x8xf32>
    %81 = vector.extract_strided_slice %13 {offsets = [8, 0], sizes = [8, 32], strides = [1, 1]} : vector<96x32xf32> to vector<8x32xf32>
    %cst_31 = arith.constant dense<0.000000e+00> : vector<24x32xf32>
    %82 = tpu.matmul %80, %81, %cst_31 {dimension_numbers = #tpu.dot_dimension_numbers<[1], [0], [0], [1], [0, 0, 1, 1], [], []>} : vector<24x8xf32>, vector<8x32xf32>, vector<24x32xf32> -> vector<24x32xf32>
    %83 = arith.addf %54, %82 : vector<24x32xf32>
    %84 = vector.extract_strided_slice %26 {offsets = [0, 16], sizes = [24, 8], strides = [1, 1]} : vector<24x64xf32> to vector<24x8xf32>
    %85 = vector.extract_strided_slice %26 {offsets = [0, 48], sizes = [24, 8], strides = [1, 1]} : vector<24x64xf32> to vector<24x8xf32>
    %86 = arith.mulf %84, %84 : vector<24x8xf32>
    %cst_32 = arith.constant dense<0.000000e+00> : vector<24xf32>
    %87 = vector.multi_reduction <add>, %86, %cst_32 [1] : vector<24x8xf32> to vector<24xf32>
    %88 = vector.shape_cast %87 : vector<24xf32> to vector<24x1xf32>
    %cst_33 = arith.constant 1.000000e-24 : f32
    %89 = vector.broadcast %cst_33 : f32 to vector<24x1xf32>
    %90 = arith.maximumf %88, %89 : vector<24x1xf32>
    %91 = math.rsqrt %90 : vector<24x1xf32>
    %92 = vector.broadcast %91 : vector<24x1xf32> to vector<24x8xf32>
    %93 = arith.mulf %84, %92 : vector<24x8xf32>
    %cst_34 = arith.constant dense<0.000000e+00> : vector<24x24xf32>
    %94 = tpu.matmul %84, %93, %cst_34 {dimension_numbers = #tpu.dot_dimension_numbers<[1], [1], [0], [0], [0, 0, 1, 0], [], []>} : vector<24x8xf32>, vector<24x8xf32>, vector<24x24xf32> -> vector<24x24xf32>
    %cst_35 = arith.constant 0.353553385 : f32
    %95 = vector.broadcast %cst_35 : f32 to vector<24x24xf32>
    %96 = arith.mulf %94, %95 : vector<24x24xf32>
    %cst_36 = arith.constant -5.000000e+04 : f32
    %97 = vector.broadcast %cst_36 : f32 to vector<24x24xf32>
    %98 = arith.select %9, %97, %96 : vector<24x24xi1>, vector<24x24xf32>
    %cst_37 = arith.constant dense<0xFF800000> : vector<24xf32>
    %99 = vector.multi_reduction <maximumf>, %98, %cst_37 [1] : vector<24x24xf32> to vector<24xf32>
    %100 = vector.shape_cast %99 : vector<24xf32> to vector<24x1xf32>
    %101 = vector.broadcast %100 : vector<24x1xf32> to vector<24x24xf32>
    %102 = arith.subf %98, %101 : vector<24x24xf32>
    %103 = math.exp %102 : vector<24x24xf32>
    %cst_38 = arith.constant dense<0.000000e+00> : vector<24xf32>
    %104 = vector.multi_reduction <add>, %103, %cst_38 [1] : vector<24x24xf32> to vector<24xf32>
    %105 = vector.shape_cast %104 : vector<24xf32> to vector<24x1xf32>
    %106 = tpu.reciprocal %105 {approx = true} : vector<24x1xf32> -> vector<24x1xf32>
    %107 = vector.broadcast %106 : vector<24x1xf32> to vector<24x24xf32>
    %108 = arith.mulf %103, %107 : vector<24x24xf32>
    %cst_39 = arith.constant dense<0.000000e+00> : vector<24x8xf32>
    %109 = tpu.matmul %108, %85, %cst_39 {dimension_numbers = #tpu.dot_dimension_numbers<[1], [0], [0], [1], [0, 0, 1, 1], [], []>} : vector<24x24xf32>, vector<24x8xf32>, vector<24x8xf32> -> vector<24x8xf32>
    %110 = vector.extract_strided_slice %13 {offsets = [16, 0], sizes = [8, 32], strides = [1, 1]} : vector<96x32xf32> to vector<8x32xf32>
    %cst_40 = arith.constant dense<0.000000e+00> : vector<24x32xf32>
    %111 = tpu.matmul %109, %110, %cst_40 {dimension_numbers = #tpu.dot_dimension_numbers<[1], [0], [0], [1], [0, 0, 1, 1], [], []>} : vector<24x8xf32>, vector<8x32xf32>, vector<24x32xf32> -> vector<24x32xf32>
    %112 = arith.addf %83, %111 : vector<24x32xf32>
    %113 = vector.extract_strided_slice %26 {offsets = [0, 24], sizes = [24, 8], strides = [1, 1]} : vector<24x64xf32> to vector<24x8xf32>
    %114 = vector.extract_strided_slice %26 {offsets = [0, 56], sizes = [24, 8], strides = [1, 1]} : vector<24x64xf32> to vector<24x8xf32>
    %115 = arith.mulf %113, %113 : vector<24x8xf32>
    %cst_41 = arith.constant dense<0.000000e+00> : vector<24xf32>
    %116 = vector.multi_reduction <add>, %115, %cst_41 [1] : vector<24x8xf32> to vector<24xf32>
    %117 = vector.shape_cast %116 : vector<24xf32> to vector<24x1xf32>
    %cst_42 = arith.constant 1.000000e-24 : f32
    %118 = vector.broadcast %cst_42 : f32 to vector<24x1xf32>
    %119 = arith.maximumf %117, %118 : vector<24x1xf32>
    %120 = math.rsqrt %119 : vector<24x1xf32>
    %121 = vector.broadcast %120 : vector<24x1xf32> to vector<24x8xf32>
    %122 = arith.mulf %113, %121 : vector<24x8xf32>
    %cst_43 = arith.constant dense<0.000000e+00> : vector<24x24xf32>
    %123 = tpu.matmul %113, %122, %cst_43 {dimension_numbers = #tpu.dot_dimension_numbers<[1], [1], [0], [0], [0, 0, 1, 0], [], []>} : vector<24x8xf32>, vector<24x8xf32>, vector<24x24xf32> -> vector<24x24xf32>
    %cst_44 = arith.constant 0.353553385 : f32
    %124 = vector.broadcast %cst_44 : f32 to vector<24x24xf32>
    %125 = arith.mulf %123, %124 : vector<24x24xf32>
    %cst_45 = arith.constant -5.000000e+04 : f32
    %126 = vector.broadcast %cst_45 : f32 to vector<24x24xf32>
    %127 = arith.select %9, %126, %125 : vector<24x24xi1>, vector<24x24xf32>
    %cst_46 = arith.constant dense<0xFF800000> : vector<24xf32>
    %128 = vector.multi_reduction <maximumf>, %127, %cst_46 [1] : vector<24x24xf32> to vector<24xf32>
    %129 = vector.shape_cast %128 : vector<24xf32> to vector<24x1xf32>
    %130 = vector.broadcast %129 : vector<24x1xf32> to vector<24x24xf32>
    %131 = arith.subf %127, %130 : vector<24x24xf32>
    %132 = math.exp %131 : vector<24x24xf32>
    %cst_47 = arith.constant dense<0.000000e+00> : vector<24xf32>
    %133 = vector.multi_reduction <add>, %132, %cst_47 [1] : vector<24x24xf32> to vector<24xf32>
    %134 = vector.shape_cast %133 : vector<24xf32> to vector<24x1xf32>
    %135 = tpu.reciprocal %134 {approx = true} : vector<24x1xf32> -> vector<24x1xf32>
    %136 = vector.broadcast %135 : vector<24x1xf32> to vector<24x24xf32>
    %137 = arith.mulf %132, %136 : vector<24x24xf32>
    %cst_48 = arith.constant dense<0.000000e+00> : vector<24x8xf32>
    %138 = tpu.matmul %137, %114, %cst_48 {dimension_numbers = #tpu.dot_dimension_numbers<[1], [0], [0], [1], [0, 0, 1, 1], [], []>} : vector<24x24xf32>, vector<24x8xf32>, vector<24x8xf32> -> vector<24x8xf32>
    %139 = vector.extract_strided_slice %13 {offsets = [24, 0], sizes = [8, 32], strides = [1, 1]} : vector<96x32xf32> to vector<8x32xf32>
    %cst_49 = arith.constant dense<0.000000e+00> : vector<24x32xf32>
    %140 = tpu.matmul %138, %139, %cst_49 {dimension_numbers = #tpu.dot_dimension_numbers<[1], [0], [0], [1], [0, 0, 1, 1], [], []>} : vector<24x8xf32>, vector<8x32xf32>, vector<24x32xf32> -> vector<24x32xf32>
    %141 = arith.addf %112, %140 : vector<24x32xf32>
    %142 = vector.broadcast %19 : vector<1x32xf32> to vector<24x32xf32>
    %143 = arith.addf %141, %142 : vector<24x32xf32>
    %144 = arith.addf %6, %143 : vector<24x32xf32>
    %cst_50 = arith.constant dense<0.000000e+00> : vector<24xf32>
    %145 = vector.multi_reduction <add>, %144, %cst_50 [1] : vector<24x32xf32> to vector<24xf32>
    %146 = vector.shape_cast %145 : vector<24xf32> to vector<24x1xf32>
    %cst_51 = arith.constant 3.200000e+01 : f32
    %147 = vector.broadcast %cst_51 : f32 to vector<24x1xf32>
    %148 = arith.divf %146, %147 : vector<24x1xf32>
    %149 = vector.broadcast %148 : vector<24x1xf32> to vector<24x32xf32>
    %150 = arith.subf %144, %149 : vector<24x32xf32>
    %151 = arith.mulf %150, %150 : vector<24x32xf32>
    %cst_52 = arith.constant dense<0.000000e+00> : vector<24xf32>
    %152 = vector.multi_reduction <add>, %151, %cst_52 [1] : vector<24x32xf32> to vector<24xf32>
    %153 = vector.shape_cast %152 : vector<24xf32> to vector<24x1xf32>
    %cst_53 = arith.constant 3.200000e+01 : f32
    %154 = vector.broadcast %cst_53 : f32 to vector<24x1xf32>
    %155 = arith.divf %153, %154 : vector<24x1xf32>
    %156 = vector.broadcast %148 : vector<24x1xf32> to vector<24x32xf32>
    %157 = arith.subf %144, %156 : vector<24x32xf32>
    %cst_54 = arith.constant 9.99999974E-6 : f32
    %158 = vector.broadcast %cst_54 : f32 to vector<24x1xf32>
    %159 = arith.addf %155, %158 : vector<24x1xf32>
    %160 = math.rsqrt %159 : vector<24x1xf32>
    %161 = vector.broadcast %160 : vector<24x1xf32> to vector<24x32xf32>
    %162 = arith.mulf %157, %161 : vector<24x32xf32>
    %163 = vector.broadcast %20 : vector<1x32xf32> to vector<24x32xf32>
    %164 = arith.mulf %162, %163 : vector<24x32xf32>
    %165 = vector.broadcast %21 : vector<1x32xf32> to vector<24x32xf32>
    %166 = arith.addf %164, %165 : vector<24x32xf32>
    %cst_55 = arith.constant dense<0.000000e+00> : vector<24x64xf32>
    %167 = tpu.matmul %166, %17, %cst_55 {dimension_numbers = #tpu.dot_dimension_numbers<[1], [0], [0], [1], [0, 0, 1, 1], [], []>} : vector<24x32xf32>, vector<32x64xf32>, vector<24x64xf32> -> vector<24x64xf32>
    %168 = vector.broadcast %22 : vector<1x64xf32> to vector<24x64xf32>
    %169 = arith.addf %167, %168 : vector<24x64xf32>
    %cst_56 = arith.constant 0.000000e+00 : f32
    %170 = vector.broadcast %cst_56 : f32 to vector<24x64xf32>
    %171 = arith.maximumf %169, %170 : vector<24x64xf32>
    %cst_57 = arith.constant dense<0.000000e+00> : vector<24x32xf32>
    %172 = tpu.matmul %171, %18, %cst_57 {dimension_numbers = #tpu.dot_dimension_numbers<[1], [0], [0], [1], [0, 0, 1, 1], [], []>} : vector<24x64xf32>, vector<64x32xf32>, vector<24x32xf32> -> vector<24x32xf32>
    %173 = vector.broadcast %23 : vector<1x32xf32> to vector<24x32xf32>
    %174 = arith.addf %172, %173 : vector<24x32xf32>
    %175 = arith.addf %166, %174 : vector<24x32xf32>
    %cst_58 = arith.constant dense<0.000000e+00> : vector<24xf32>
    %176 = vector.multi_reduction <add>, %175, %cst_58 [1] : vector<24x32xf32> to vector<24xf32>
    %177 = vector.shape_cast %176 : vector<24xf32> to vector<24x1xf32>
    %cst_59 = arith.constant 3.200000e+01 : f32
    %178 = vector.broadcast %cst_59 : f32 to vector<24x1xf32>
    %179 = arith.divf %177, %178 : vector<24x1xf32>
    %180 = vector.broadcast %179 : vector<24x1xf32> to vector<24x32xf32>
    %181 = arith.subf %175, %180 : vector<24x32xf32>
    %182 = arith.mulf %181, %181 : vector<24x32xf32>
    %cst_60 = arith.constant dense<0.000000e+00> : vector<24xf32>
    %183 = vector.multi_reduction <add>, %182, %cst_60 [1] : vector<24x32xf32> to vector<24xf32>
    %184 = vector.shape_cast %183 : vector<24xf32> to vector<24x1xf32>
    %cst_61 = arith.constant 3.200000e+01 : f32
    %185 = vector.broadcast %cst_61 : f32 to vector<24x1xf32>
    %186 = arith.divf %184, %185 : vector<24x1xf32>
    %187 = vector.broadcast %179 : vector<24x1xf32> to vector<24x32xf32>
    %188 = arith.subf %175, %187 : vector<24x32xf32>
    %cst_62 = arith.constant 9.99999974E-6 : f32
    %189 = vector.broadcast %cst_62 : f32 to vector<24x1xf32>
    %190 = arith.addf %186, %189 : vector<24x1xf32>
    %191 = math.rsqrt %190 : vector<24x1xf32>
    %192 = vector.broadcast %191 : vector<24x1xf32> to vector<24x32xf32>
    %193 = arith.mulf %188, %192 : vector<24x32xf32>
    %194 = vector.broadcast %24 : vector<1x32xf32> to vector<24x32xf32>
    %195 = arith.mulf %193, %194 : vector<24x32xf32>
    %196 = vector.broadcast %25 : vector<1x32xf32> to vector<24x32xf32>
    %197 = arith.addf %195, %196 : vector<24x32xf32>
    %c1 = arith.constant 1 : index
    %c0_63 = arith.constant 0 : index
    %c0_64 = arith.constant 0 : index
    %198 = vector.load %arg3[%c1, %c0_63, %c0_64] : memref<2x64x64xf32, #tpu.memory_space<vmem>>, vector<1x64x64xf32>
    %199 = vector.shape_cast %198 : vector<1x64x64xf32> to vector<64x64xf32>
    %c1_65 = arith.constant 1 : index
    %c0_66 = arith.constant 0 : index
    %c0_67 = arith.constant 0 : index
    %200 = vector.load %arg4[%c1_65, %c0_66, %c0_67] : memref<2x96x32xf32, #tpu.memory_space<vmem>>, vector<1x96x32xf32>
    %201 = vector.shape_cast %200 : vector<1x96x32xf32> to vector<96x32xf32>
    %c1_68 = arith.constant 1 : index
    %c0_69 = arith.constant 0 : index
    %c0_70 = arith.constant 0 : index
    %202 = vector.load %arg5[%c1_68, %c0_69, %c0_70] : memref<2x8x64xf32, #tpu.memory_space<vmem>>, vector<1x8x64xf32>
    %203 = vector.shape_cast %202 : vector<1x8x64xf32> to vector<8x64xf32>
    %204 = vector.extract_strided_slice %199 {offsets = [0, 0], sizes = [32, 64], strides = [1, 1]} : vector<64x64xf32> to vector<32x64xf32>
    %205 = vector.extract_strided_slice %199 {offsets = [32, 0], sizes = [32, 64], strides = [1, 1]} : vector<64x64xf32> to vector<32x64xf32>
    %206 = vector.extract_strided_slice %201 {offsets = [32, 0], sizes = [64, 32], strides = [1, 1]} : vector<96x32xf32> to vector<64x32xf32>
    %207 = vector.extract_strided_slice %203 {offsets = [0, 0], sizes = [1, 32], strides = [1, 1]} : vector<8x64xf32> to vector<1x32xf32>
    %208 = vector.extract_strided_slice %203 {offsets = [1, 0], sizes = [1, 32], strides = [1, 1]} : vector<8x64xf32> to vector<1x32xf32>
    %209 = vector.extract_strided_slice %203 {offsets = [2, 0], sizes = [1, 32], strides = [1, 1]} : vector<8x64xf32> to vector<1x32xf32>
    %210 = vector.extract_strided_slice %203 {offsets = [3, 0], sizes = [1, 64], strides = [1, 1]} : vector<8x64xf32> to vector<1x64xf32>
    %211 = vector.extract_strided_slice %203 {offsets = [4, 0], sizes = [1, 32], strides = [1, 1]} : vector<8x64xf32> to vector<1x32xf32>
    %212 = vector.extract_strided_slice %203 {offsets = [5, 0], sizes = [1, 32], strides = [1, 1]} : vector<8x64xf32> to vector<1x32xf32>
    %213 = vector.extract_strided_slice %203 {offsets = [6, 0], sizes = [1, 32], strides = [1, 1]} : vector<8x64xf32> to vector<1x32xf32>
    %cst_71 = arith.constant dense<0.000000e+00> : vector<24x64xf32>
    %214 = tpu.matmul %197, %204, %cst_71 {dimension_numbers = #tpu.dot_dimension_numbers<[1], [0], [0], [1], [0, 0, 1, 1], [], []>} : vector<24x32xf32>, vector<32x64xf32>, vector<24x64xf32> -> vector<24x64xf32>
    %215 = vector.extract_strided_slice %214 {offsets = [0, 0], sizes = [24, 8], strides = [1, 1]} : vector<24x64xf32> to vector<24x8xf32>
    %216 = vector.extract_strided_slice %214 {offsets = [0, 32], sizes = [24, 8], strides = [1, 1]} : vector<24x64xf32> to vector<24x8xf32>
    %217 = arith.mulf %215, %215 : vector<24x8xf32>
    %cst_72 = arith.constant dense<0.000000e+00> : vector<24xf32>
    %218 = vector.multi_reduction <add>, %217, %cst_72 [1] : vector<24x8xf32> to vector<24xf32>
    %219 = vector.shape_cast %218 : vector<24xf32> to vector<24x1xf32>
    %cst_73 = arith.constant 1.000000e-24 : f32
    %220 = vector.broadcast %cst_73 : f32 to vector<24x1xf32>
    %221 = arith.maximumf %219, %220 : vector<24x1xf32>
    %222 = math.rsqrt %221 : vector<24x1xf32>
    %223 = vector.broadcast %222 : vector<24x1xf32> to vector<24x8xf32>
    %224 = arith.mulf %215, %223 : vector<24x8xf32>
    %cst_74 = arith.constant dense<0.000000e+00> : vector<24x24xf32>
    %225 = tpu.matmul %215, %224, %cst_74 {dimension_numbers = #tpu.dot_dimension_numbers<[1], [1], [0], [0], [0, 0, 1, 0], [], []>} : vector<24x8xf32>, vector<24x8xf32>, vector<24x24xf32> -> vector<24x24xf32>
    %cst_75 = arith.constant 0.353553385 : f32
    %226 = vector.broadcast %cst_75 : f32 to vector<24x24xf32>
    %227 = arith.mulf %225, %226 : vector<24x24xf32>
    %cst_76 = arith.constant -5.000000e+04 : f32
    %228 = vector.broadcast %cst_76 : f32 to vector<24x24xf32>
    %229 = arith.select %9, %228, %227 : vector<24x24xi1>, vector<24x24xf32>
    %cst_77 = arith.constant dense<0xFF800000> : vector<24xf32>
    %230 = vector.multi_reduction <maximumf>, %229, %cst_77 [1] : vector<24x24xf32> to vector<24xf32>
    %231 = vector.shape_cast %230 : vector<24xf32> to vector<24x1xf32>
    %232 = vector.broadcast %231 : vector<24x1xf32> to vector<24x24xf32>
    %233 = arith.subf %229, %232 : vector<24x24xf32>
    %234 = math.exp %233 : vector<24x24xf32>
    %cst_78 = arith.constant dense<0.000000e+00> : vector<24xf32>
    %235 = vector.multi_reduction <add>, %234, %cst_78 [1] : vector<24x24xf32> to vector<24xf32>
    %236 = vector.shape_cast %235 : vector<24xf32> to vector<24x1xf32>
    %237 = tpu.reciprocal %236 {approx = true} : vector<24x1xf32> -> vector<24x1xf32>
    %238 = vector.broadcast %237 : vector<24x1xf32> to vector<24x24xf32>
    %239 = arith.mulf %234, %238 : vector<24x24xf32>
    %cst_79 = arith.constant dense<0.000000e+00> : vector<24x8xf32>
    %240 = tpu.matmul %239, %216, %cst_79 {dimension_numbers = #tpu.dot_dimension_numbers<[1], [0], [0], [1], [0, 0, 1, 1], [], []>} : vector<24x24xf32>, vector<24x8xf32>, vector<24x8xf32> -> vector<24x8xf32>
    %241 = vector.extract_strided_slice %201 {offsets = [0, 0], sizes = [8, 32], strides = [1, 1]} : vector<96x32xf32> to vector<8x32xf32>
    %cst_80 = arith.constant dense<0.000000e+00> : vector<24x32xf32>
    %242 = tpu.matmul %240, %241, %cst_80 {dimension_numbers = #tpu.dot_dimension_numbers<[1], [0], [0], [1], [0, 0, 1, 1], [], []>} : vector<24x8xf32>, vector<8x32xf32>, vector<24x32xf32> -> vector<24x32xf32>
    %243 = vector.extract_strided_slice %214 {offsets = [0, 8], sizes = [24, 8], strides = [1, 1]} : vector<24x64xf32> to vector<24x8xf32>
    %244 = vector.extract_strided_slice %214 {offsets = [0, 40], sizes = [24, 8], strides = [1, 1]} : vector<24x64xf32> to vector<24x8xf32>
    %245 = arith.mulf %243, %243 : vector<24x8xf32>
    %cst_81 = arith.constant dense<0.000000e+00> : vector<24xf32>
    %246 = vector.multi_reduction <add>, %245, %cst_81 [1] : vector<24x8xf32> to vector<24xf32>
    %247 = vector.shape_cast %246 : vector<24xf32> to vector<24x1xf32>
    %cst_82 = arith.constant 1.000000e-24 : f32
    %248 = vector.broadcast %cst_82 : f32 to vector<24x1xf32>
    %249 = arith.maximumf %247, %248 : vector<24x1xf32>
    %250 = math.rsqrt %249 : vector<24x1xf32>
    %251 = vector.broadcast %250 : vector<24x1xf32> to vector<24x8xf32>
    %252 = arith.mulf %243, %251 : vector<24x8xf32>
    %cst_83 = arith.constant dense<0.000000e+00> : vector<24x24xf32>
    %253 = tpu.matmul %243, %252, %cst_83 {dimension_numbers = #tpu.dot_dimension_numbers<[1], [1], [0], [0], [0, 0, 1, 0], [], []>} : vector<24x8xf32>, vector<24x8xf32>, vector<24x24xf32> -> vector<24x24xf32>
    %cst_84 = arith.constant 0.353553385 : f32
    %254 = vector.broadcast %cst_84 : f32 to vector<24x24xf32>
    %255 = arith.mulf %253, %254 : vector<24x24xf32>
    %cst_85 = arith.constant -5.000000e+04 : f32
    %256 = vector.broadcast %cst_85 : f32 to vector<24x24xf32>
    %257 = arith.select %9, %256, %255 : vector<24x24xi1>, vector<24x24xf32>
    %cst_86 = arith.constant dense<0xFF800000> : vector<24xf32>
    %258 = vector.multi_reduction <maximumf>, %257, %cst_86 [1] : vector<24x24xf32> to vector<24xf32>
    %259 = vector.shape_cast %258 : vector<24xf32> to vector<24x1xf32>
    %260 = vector.broadcast %259 : vector<24x1xf32> to vector<24x24xf32>
    %261 = arith.subf %257, %260 : vector<24x24xf32>
    %262 = math.exp %261 : vector<24x24xf32>
    %cst_87 = arith.constant dense<0.000000e+00> : vector<24xf32>
    %263 = vector.multi_reduction <add>, %262, %cst_87 [1] : vector<24x24xf32> to vector<24xf32>
    %264 = vector.shape_cast %263 : vector<24xf32> to vector<24x1xf32>
    %265 = tpu.reciprocal %264 {approx = true} : vector<24x1xf32> -> vector<24x1xf32>
    %266 = vector.broadcast %265 : vector<24x1xf32> to vector<24x24xf32>
    %267 = arith.mulf %262, %266 : vector<24x24xf32>
    %cst_88 = arith.constant dense<0.000000e+00> : vector<24x8xf32>
    %268 = tpu.matmul %267, %244, %cst_88 {dimension_numbers = #tpu.dot_dimension_numbers<[1], [0], [0], [1], [0, 0, 1, 1], [], []>} : vector<24x24xf32>, vector<24x8xf32>, vector<24x8xf32> -> vector<24x8xf32>
    %269 = vector.extract_strided_slice %201 {offsets = [8, 0], sizes = [8, 32], strides = [1, 1]} : vector<96x32xf32> to vector<8x32xf32>
    %cst_89 = arith.constant dense<0.000000e+00> : vector<24x32xf32>
    %270 = tpu.matmul %268, %269, %cst_89 {dimension_numbers = #tpu.dot_dimension_numbers<[1], [0], [0], [1], [0, 0, 1, 1], [], []>} : vector<24x8xf32>, vector<8x32xf32>, vector<24x32xf32> -> vector<24x32xf32>
    %271 = arith.addf %242, %270 : vector<24x32xf32>
    %272 = vector.extract_strided_slice %214 {offsets = [0, 16], sizes = [24, 8], strides = [1, 1]} : vector<24x64xf32> to vector<24x8xf32>
    %273 = vector.extract_strided_slice %214 {offsets = [0, 48], sizes = [24, 8], strides = [1, 1]} : vector<24x64xf32> to vector<24x8xf32>
    %274 = arith.mulf %272, %272 : vector<24x8xf32>
    %cst_90 = arith.constant dense<0.000000e+00> : vector<24xf32>
    %275 = vector.multi_reduction <add>, %274, %cst_90 [1] : vector<24x8xf32> to vector<24xf32>
    %276 = vector.shape_cast %275 : vector<24xf32> to vector<24x1xf32>
    %cst_91 = arith.constant 1.000000e-24 : f32
    %277 = vector.broadcast %cst_91 : f32 to vector<24x1xf32>
    %278 = arith.maximumf %276, %277 : vector<24x1xf32>
    %279 = math.rsqrt %278 : vector<24x1xf32>
    %280 = vector.broadcast %279 : vector<24x1xf32> to vector<24x8xf32>
    %281 = arith.mulf %272, %280 : vector<24x8xf32>
    %cst_92 = arith.constant dense<0.000000e+00> : vector<24x24xf32>
    %282 = tpu.matmul %272, %281, %cst_92 {dimension_numbers = #tpu.dot_dimension_numbers<[1], [1], [0], [0], [0, 0, 1, 0], [], []>} : vector<24x8xf32>, vector<24x8xf32>, vector<24x24xf32> -> vector<24x24xf32>
    %cst_93 = arith.constant 0.353553385 : f32
    %283 = vector.broadcast %cst_93 : f32 to vector<24x24xf32>
    %284 = arith.mulf %282, %283 : vector<24x24xf32>
    %cst_94 = arith.constant -5.000000e+04 : f32
    %285 = vector.broadcast %cst_94 : f32 to vector<24x24xf32>
    %286 = arith.select %9, %285, %284 : vector<24x24xi1>, vector<24x24xf32>
    %cst_95 = arith.constant dense<0xFF800000> : vector<24xf32>
    %287 = vector.multi_reduction <maximumf>, %286, %cst_95 [1] : vector<24x24xf32> to vector<24xf32>
    %288 = vector.shape_cast %287 : vector<24xf32> to vector<24x1xf32>
    %289 = vector.broadcast %288 : vector<24x1xf32> to vector<24x24xf32>
    %290 = arith.subf %286, %289 : vector<24x24xf32>
    %291 = math.exp %290 : vector<24x24xf32>
    %cst_96 = arith.constant dense<0.000000e+00> : vector<24xf32>
    %292 = vector.multi_reduction <add>, %291, %cst_96 [1] : vector<24x24xf32> to vector<24xf32>
    %293 = vector.shape_cast %292 : vector<24xf32> to vector<24x1xf32>
    %294 = tpu.reciprocal %293 {approx = true} : vector<24x1xf32> -> vector<24x1xf32>
    %295 = vector.broadcast %294 : vector<24x1xf32> to vector<24x24xf32>
    %296 = arith.mulf %291, %295 : vector<24x24xf32>
    %cst_97 = arith.constant dense<0.000000e+00> : vector<24x8xf32>
    %297 = tpu.matmul %296, %273, %cst_97 {dimension_numbers = #tpu.dot_dimension_numbers<[1], [0], [0], [1], [0, 0, 1, 1], [], []>} : vector<24x24xf32>, vector<24x8xf32>, vector<24x8xf32> -> vector<24x8xf32>
    %298 = vector.extract_strided_slice %201 {offsets = [16, 0], sizes = [8, 32], strides = [1, 1]} : vector<96x32xf32> to vector<8x32xf32>
    %cst_98 = arith.constant dense<0.000000e+00> : vector<24x32xf32>
    %299 = tpu.matmul %297, %298, %cst_98 {dimension_numbers = #tpu.dot_dimension_numbers<[1], [0], [0], [1], [0, 0, 1, 1], [], []>} : vector<24x8xf32>, vector<8x32xf32>, vector<24x32xf32> -> vector<24x32xf32>
    %300 = arith.addf %271, %299 : vector<24x32xf32>
    %301 = vector.extract_strided_slice %214 {offsets = [0, 24], sizes = [24, 8], strides = [1, 1]} : vector<24x64xf32> to vector<24x8xf32>
    %302 = vector.extract_strided_slice %214 {offsets = [0, 56], sizes = [24, 8], strides = [1, 1]} : vector<24x64xf32> to vector<24x8xf32>
    %303 = arith.mulf %301, %301 : vector<24x8xf32>
    %cst_99 = arith.constant dense<0.000000e+00> : vector<24xf32>
    %304 = vector.multi_reduction <add>, %303, %cst_99 [1] : vector<24x8xf32> to vector<24xf32>
    %305 = vector.shape_cast %304 : vector<24xf32> to vector<24x1xf32>
    %cst_100 = arith.constant 1.000000e-24 : f32
    %306 = vector.broadcast %cst_100 : f32 to vector<24x1xf32>
    %307 = arith.maximumf %305, %306 : vector<24x1xf32>
    %308 = math.rsqrt %307 : vector<24x1xf32>
    %309 = vector.broadcast %308 : vector<24x1xf32> to vector<24x8xf32>
    %310 = arith.mulf %301, %309 : vector<24x8xf32>
    %cst_101 = arith.constant dense<0.000000e+00> : vector<24x24xf32>
    %311 = tpu.matmul %301, %310, %cst_101 {dimension_numbers = #tpu.dot_dimension_numbers<[1], [1], [0], [0], [0, 0, 1, 0], [], []>} : vector<24x8xf32>, vector<24x8xf32>, vector<24x24xf32> -> vector<24x24xf32>
    %cst_102 = arith.constant 0.353553385 : f32
    %312 = vector.broadcast %cst_102 : f32 to vector<24x24xf32>
    %313 = arith.mulf %311, %312 : vector<24x24xf32>
    %cst_103 = arith.constant -5.000000e+04 : f32
    %314 = vector.broadcast %cst_103 : f32 to vector<24x24xf32>
    %315 = arith.select %9, %314, %313 : vector<24x24xi1>, vector<24x24xf32>
    %cst_104 = arith.constant dense<0xFF800000> : vector<24xf32>
    %316 = vector.multi_reduction <maximumf>, %315, %cst_104 [1] : vector<24x24xf32> to vector<24xf32>
    %317 = vector.shape_cast %316 : vector<24xf32> to vector<24x1xf32>
    %318 = vector.broadcast %317 : vector<24x1xf32> to vector<24x24xf32>
    %319 = arith.subf %315, %318 : vector<24x24xf32>
    %320 = math.exp %319 : vector<24x24xf32>
    %cst_105 = arith.constant dense<0.000000e+00> : vector<24xf32>
    %321 = vector.multi_reduction <add>, %320, %cst_105 [1] : vector<24x24xf32> to vector<24xf32>
    %322 = vector.shape_cast %321 : vector<24xf32> to vector<24x1xf32>
    %323 = tpu.reciprocal %322 {approx = true} : vector<24x1xf32> -> vector<24x1xf32>
    %324 = vector.broadcast %323 : vector<24x1xf32> to vector<24x24xf32>
    %325 = arith.mulf %320, %324 : vector<24x24xf32>
    %cst_106 = arith.constant dense<0.000000e+00> : vector<24x8xf32>
    %326 = tpu.matmul %325, %302, %cst_106 {dimension_numbers = #tpu.dot_dimension_numbers<[1], [0], [0], [1], [0, 0, 1, 1], [], []>} : vector<24x24xf32>, vector<24x8xf32>, vector<24x8xf32> -> vector<24x8xf32>
    %327 = vector.extract_strided_slice %201 {offsets = [24, 0], sizes = [8, 32], strides = [1, 1]} : vector<96x32xf32> to vector<8x32xf32>
    %cst_107 = arith.constant dense<0.000000e+00> : vector<24x32xf32>
    %328 = tpu.matmul %326, %327, %cst_107 {dimension_numbers = #tpu.dot_dimension_numbers<[1], [0], [0], [1], [0, 0, 1, 1], [], []>} : vector<24x8xf32>, vector<8x32xf32>, vector<24x32xf32> -> vector<24x32xf32>
    %329 = arith.addf %300, %328 : vector<24x32xf32>
    %330 = vector.broadcast %207 : vector<1x32xf32> to vector<24x32xf32>
    %331 = arith.addf %329, %330 : vector<24x32xf32>
    %332 = arith.addf %197, %331 : vector<24x32xf32>
    %cst_108 = arith.constant dense<0.000000e+00> : vector<24xf32>
    %333 = vector.multi_reduction <add>, %332, %cst_108 [1] : vector<24x32xf32> to vector<24xf32>
    %334 = vector.shape_cast %333 : vector<24xf32> to vector<24x1xf32>
    %cst_109 = arith.constant 3.200000e+01 : f32
    %335 = vector.broadcast %cst_109 : f32 to vector<24x1xf32>
    %336 = arith.divf %334, %335 : vector<24x1xf32>
    %337 = vector.broadcast %336 : vector<24x1xf32> to vector<24x32xf32>
    %338 = arith.subf %332, %337 : vector<24x32xf32>
    %339 = arith.mulf %338, %338 : vector<24x32xf32>
    %cst_110 = arith.constant dense<0.000000e+00> : vector<24xf32>
    %340 = vector.multi_reduction <add>, %339, %cst_110 [1] : vector<24x32xf32> to vector<24xf32>
    %341 = vector.shape_cast %340 : vector<24xf32> to vector<24x1xf32>
    %cst_111 = arith.constant 3.200000e+01 : f32
    %342 = vector.broadcast %cst_111 : f32 to vector<24x1xf32>
    %343 = arith.divf %341, %342 : vector<24x1xf32>
    %344 = vector.broadcast %336 : vector<24x1xf32> to vector<24x32xf32>
    %345 = arith.subf %332, %344 : vector<24x32xf32>
    %cst_112 = arith.constant 9.99999974E-6 : f32
    %346 = vector.broadcast %cst_112 : f32 to vector<24x1xf32>
    %347 = arith.addf %343, %346 : vector<24x1xf32>
    %348 = math.rsqrt %347 : vector<24x1xf32>
    %349 = vector.broadcast %348 : vector<24x1xf32> to vector<24x32xf32>
    %350 = arith.mulf %345, %349 : vector<24x32xf32>
    %351 = vector.broadcast %208 : vector<1x32xf32> to vector<24x32xf32>
    %352 = arith.mulf %350, %351 : vector<24x32xf32>
    %353 = vector.broadcast %209 : vector<1x32xf32> to vector<24x32xf32>
    %354 = arith.addf %352, %353 : vector<24x32xf32>
    %cst_113 = arith.constant dense<0.000000e+00> : vector<24x64xf32>
    %355 = tpu.matmul %354, %205, %cst_113 {dimension_numbers = #tpu.dot_dimension_numbers<[1], [0], [0], [1], [0, 0, 1, 1], [], []>} : vector<24x32xf32>, vector<32x64xf32>, vector<24x64xf32> -> vector<24x64xf32>
    %356 = vector.broadcast %210 : vector<1x64xf32> to vector<24x64xf32>
    %357 = arith.addf %355, %356 : vector<24x64xf32>
    %cst_114 = arith.constant 0.000000e+00 : f32
    %358 = vector.broadcast %cst_114 : f32 to vector<24x64xf32>
    %359 = arith.maximumf %357, %358 : vector<24x64xf32>
    %cst_115 = arith.constant dense<0.000000e+00> : vector<24x32xf32>
    %360 = tpu.matmul %359, %206, %cst_115 {dimension_numbers = #tpu.dot_dimension_numbers<[1], [0], [0], [1], [0, 0, 1, 1], [], []>} : vector<24x64xf32>, vector<64x32xf32>, vector<24x32xf32> -> vector<24x32xf32>
    %361 = vector.broadcast %211 : vector<1x32xf32> to vector<24x32xf32>
    %362 = arith.addf %360, %361 : vector<24x32xf32>
    %363 = arith.addf %354, %362 : vector<24x32xf32>
    %cst_116 = arith.constant dense<0.000000e+00> : vector<24xf32>
    %364 = vector.multi_reduction <add>, %363, %cst_116 [1] : vector<24x32xf32> to vector<24xf32>
    %365 = vector.shape_cast %364 : vector<24xf32> to vector<24x1xf32>
    %cst_117 = arith.constant 3.200000e+01 : f32
    %366 = vector.broadcast %cst_117 : f32 to vector<24x1xf32>
    %367 = arith.divf %365, %366 : vector<24x1xf32>
    %368 = vector.broadcast %367 : vector<24x1xf32> to vector<24x32xf32>
    %369 = arith.subf %363, %368 : vector<24x32xf32>
    %370 = arith.mulf %369, %369 : vector<24x32xf32>
    %cst_118 = arith.constant dense<0.000000e+00> : vector<24xf32>
    %371 = vector.multi_reduction <add>, %370, %cst_118 [1] : vector<24x32xf32> to vector<24xf32>
    %372 = vector.shape_cast %371 : vector<24xf32> to vector<24x1xf32>
    %cst_119 = arith.constant 3.200000e+01 : f32
    %373 = vector.broadcast %cst_119 : f32 to vector<24x1xf32>
    %374 = arith.divf %372, %373 : vector<24x1xf32>
    %375 = vector.broadcast %367 : vector<24x1xf32> to vector<24x32xf32>
    %376 = arith.subf %363, %375 : vector<24x32xf32>
    %cst_120 = arith.constant 9.99999974E-6 : f32
    %377 = vector.broadcast %cst_120 : f32 to vector<24x1xf32>
    %378 = arith.addf %374, %377 : vector<24x1xf32>
    %379 = math.rsqrt %378 : vector<24x1xf32>
    %380 = vector.broadcast %379 : vector<24x1xf32> to vector<24x32xf32>
    %381 = arith.mulf %376, %380 : vector<24x32xf32>
    %382 = vector.broadcast %212 : vector<1x32xf32> to vector<24x32xf32>
    %383 = arith.mulf %381, %382 : vector<24x32xf32>
    %384 = vector.broadcast %213 : vector<1x32xf32> to vector<24x32xf32>
    %385 = arith.addf %383, %384 : vector<24x32xf32>
    %c0_121 = arith.constant 0 : index
    %c0_122 = arith.constant 0 : index
    %386 = vector.load %arg6[%c0_121, %c0_122] : memref<40x32xf32, #tpu.memory_space<vmem>>, vector<40x32xf32>
    %387 = vector.extract_strided_slice %385 {offsets = [16, 0], sizes = [8, 32], strides = [1, 1]} : vector<24x32xf32> to vector<8x32xf32>
    %388 = vector.extract_strided_slice %386 {offsets = [32, 0], sizes = [1, 32], strides = [1, 1]} : vector<40x32xf32> to vector<1x32xf32>
    %389 = vector.extract_strided_slice %386 {offsets = [33, 0], sizes = [1, 32], strides = [1, 1]} : vector<40x32xf32> to vector<1x32xf32>
    %cst_123 = arith.constant dense<0.000000e+00> : vector<8xf32>
    %390 = vector.multi_reduction <add>, %387, %cst_123 [1] : vector<8x32xf32> to vector<8xf32>
    %391 = vector.shape_cast %390 : vector<8xf32> to vector<8x1xf32>
    %cst_124 = arith.constant 3.200000e+01 : f32
    %392 = vector.broadcast %cst_124 : f32 to vector<8x1xf32>
    %393 = arith.divf %391, %392 : vector<8x1xf32>
    %394 = vector.broadcast %393 : vector<8x1xf32> to vector<8x32xf32>
    %395 = arith.subf %387, %394 : vector<8x32xf32>
    %396 = arith.mulf %395, %395 : vector<8x32xf32>
    %cst_125 = arith.constant dense<0.000000e+00> : vector<8xf32>
    %397 = vector.multi_reduction <add>, %396, %cst_125 [1] : vector<8x32xf32> to vector<8xf32>
    %398 = vector.shape_cast %397 : vector<8xf32> to vector<8x1xf32>
    %cst_126 = arith.constant 3.200000e+01 : f32
    %399 = vector.broadcast %cst_126 : f32 to vector<8x1xf32>
    %400 = arith.divf %398, %399 : vector<8x1xf32>
    %401 = vector.broadcast %393 : vector<8x1xf32> to vector<8x32xf32>
    %402 = arith.subf %387, %401 : vector<8x32xf32>
    %cst_127 = arith.constant 9.99999974E-6 : f32
    %403 = vector.broadcast %cst_127 : f32 to vector<8x1xf32>
    %404 = arith.addf %400, %403 : vector<8x1xf32>
    %405 = math.rsqrt %404 : vector<8x1xf32>
    %406 = vector.broadcast %405 : vector<8x1xf32> to vector<8x32xf32>
    %407 = arith.mulf %402, %406 : vector<8x32xf32>
    %408 = vector.broadcast %388 : vector<1x32xf32> to vector<8x32xf32>
    %409 = arith.mulf %407, %408 : vector<8x32xf32>
    %410 = vector.broadcast %389 : vector<1x32xf32> to vector<8x32xf32>
    %411 = arith.addf %409, %410 : vector<8x32xf32>
    %412 = vector.extract_strided_slice %386 {offsets = [0, 0], sizes = [32, 32], strides = [1, 1]} : vector<40x32xf32> to vector<32x32xf32>
    %cst_128 = arith.constant dense<0.000000e+00> : vector<8x32xf32>
    %413 = tpu.matmul %411, %412, %cst_128 {dimension_numbers = #tpu.dot_dimension_numbers<[1], [0], [0], [1], [0, 0, 1, 1], [], []>} : vector<8x32xf32>, vector<32x32xf32>, vector<8x32xf32> -> vector<8x32xf32>
    %414 = vector.extract_strided_slice %386 {offsets = [34, 0], sizes = [1, 32], strides = [1, 1]} : vector<40x32xf32> to vector<1x32xf32>
    %415 = vector.broadcast %414 : vector<1x32xf32> to vector<8x32xf32>
    %416 = arith.addf %413, %415 : vector<8x32xf32>
    %417 = vector.extract_strided_slice %416 {offsets = [0, 0], sizes = [8, 4], strides = [1, 1]} : vector<8x32xf32> to vector<8x4xf32>
    %c0_129 = arith.constant 0 : index
    %c0_130 = arith.constant 0 : index
    %c0_131 = arith.constant 0 : index
    %418 = vector.load %arg7[%c0_129, %c0_130, %c0_131] : memref<1x8x4xf32, #tpu.memory_space<vmem>>, vector<1x8x4xf32>
    %419 = vector.shape_cast %418 : vector<1x8x4xf32> to vector<8x4xf32>
    %420 = vector.shape_cast %417 : vector<8x4xf32> to vector<1x8x4xf32>
    tpu.vector_store %arg7[%c0_129, %c0_130, %c0_131], %420 {strides = array<i32>} : memref<1x8x4xf32, #tpu.memory_space<vmem>>, vector<1x8x4xf32>,
    return
  }
  func.func @transform_0(%arg0: i32) -> (i32, i32, i32) {
    %c0_i32 = arith.constant 0 : i32
    %c0_i32_0 = arith.constant 0 : i32
    %c0_i32_1 = arith.constant 0 : i32
    return %arg0, %c0_i32, %c0_i32_0 : i32, i32, i32
  }
  func.func @transform_1(%arg0: i32) -> (i32, i32) {
    %c0_i32 = arith.constant 0 : i32
    %c0_i32_0 = arith.constant 0 : i32
    %c0_i32_1 = arith.constant 0 : i32
    return %c0_i32, %c0_i32_0 : i32, i32
  }
  func.func @transform_2(%arg0: i32) -> (i32, i32, i32) {
    %c0_i32 = arith.constant 0 : i32
    %c0_i32_0 = arith.constant 0 : i32
    %c0_i32_1 = arith.constant 0 : i32
    %c0_i32_2 = arith.constant 0 : i32
    return %c0_i32, %c0_i32_0, %c0_i32_1 : i32, i32, i32
  }
  func.func @transform_3(%arg0: i32) -> (i32, i32, i32) {
    %c0_i32 = arith.constant 0 : i32
    %c0_i32_0 = arith.constant 0 : i32
    %c0_i32_1 = arith.constant 0 : i32
    %c0_i32_2 = arith.constant 0 : i32
    return %c0_i32, %c0_i32_0, %c0_i32_1 : i32, i32, i32
  }
  func.func @transform_4(%arg0: i32) -> (i32, i32, i32) {
    %c0_i32 = arith.constant 0 : i32
    %c0_i32_0 = arith.constant 0 : i32
    %c0_i32_1 = arith.constant 0 : i32
    %c0_i32_2 = arith.constant 0 : i32
    return %c0_i32, %c0_i32_0, %c0_i32_1 : i32, i32, i32
  }
  func.func @transform_5(%arg0: i32) -> (i32, i32) {
    %c0_i32 = arith.constant 0 : i32
    %c0_i32_0 = arith.constant 0 : i32
    %c0_i32_1 = arith.constant 0 : i32
    return %c0_i32, %c0_i32_0 : i32, i32
  }
  func.func @transform_6(%arg0: i32) -> (i32, i32, i32) {
    %c0_i32 = arith.constant 0 : i32
    %c0_i32_0 = arith.constant 0 : i32
    %c0_i32_1 = arith.constant 0 : i32
    return %arg0, %c0_i32, %c0_i32_0 : i32, i32, i32
  }
}

</mosaic_0001>

<bundles_post_ra>
// kernel: tpu_custom_call.1
= control target key start
LH: loop header
LB: loop body
LE: loop exit
PB: predicated region body
PF: predicated region fallthrough
CT: control target
= control target key end

     0   :  { %s5422_s21 = smov 0   ;;  %s6448_s0 = inlined_call_operand.vmem [shape: f32[2,24,16], index: 0, kind: input, shape index: {}]   ;;  %s6449_s1 = inlined_call_operand.vmem [shape: f32[40,32], index: 1, kind: input, shape index: {}]   ;;  %s6450_s2 = inlined_call_operand.vmem [shape: f32[2,64,64], index: 2, kind: input, shape index: {}]   ;;  %s6451_s3 = inlined_call_operand.vmem [shape: f32[2,96,32], index: 3, kind: input, shape index: {}]   ;;  %s6452_s4 = inlined_call_operand.vmem [shape: f32[2,8,64], index: 4, kind: input, shape index: {}]   ;;  %s6453_s5 = inlined_call_operand.vmem [shape: f32[40,32], index: 5, kind: input, shape index: {}]   ;;  %s6454_s6 = inlined_call_operand.vmem [shape: f32[2,8,4], index: 6, kind: output, shape index: {}]  }
   0x1 LB: > { %s4195_s22 = sadd.s32 4294967295, %s5375_s21   ;;  %p4199_p0 = scmp.ge.s32.totalorder %s5375_s21, 1  ;;  %s5375_s21 = sphi %s5422_s21, %s16_s21  }
   0x2   : > { %p212_p1 = scmp.lt.s32.totalorder %s5375_s21, 3 }
   0x4   : > { %p213_p2 = pnand %p4199_p0, %p212_p1 }
   0x5   : > { %v250_v0 = vld [vmem:[%s6449_s1] sm:$0xff] (!%p213_p2)  ;;  %v251_v1 = vld [vmem:[%s6449_s1 + $0x8] sm:$0xff] (!%p213_p2)  ;;  %p241_p3 = scmp.lt.s32.totalorder (!%p213_p2), %s4195_s22, 1  ;;  %v5377_v2 = vmov (!%p213_p2), 0.0|0.0   ;;  %vm5378_vm0 = vmmov (!%p213_p2), 0   ;;  %v5379_v4 = vmov (!%p213_p2), 0.0  }
   0x6   : > { %216 = sbr.rel (%p213_p2) target bundleno = 8880 (0x22b0), region = 44  ;;  %5001 = vmatprep.subr.bf16.mxu0 (!%p213_p2), %v5377_v2  ;;  %v5002_v3 = vpack.c.bf16 (!%p213_p2), %v251_v1, %v250_v0  ;;  %4535 = vmatprep.mubr.msk.f32.mxu0 (!%p213_p2), %vm5378_vm0, %v5379_v4  ;;  %v357_v5 = vld [vmem:[%s6450_s2] sm:$0xff] (!%p213_p2)  ;;  %v358_v6 = vld [vmem:[%s6450_s2 + $0x8] sm:$0xff] (!%p213_p2)  ;;  %vm258_vm1 = vcmask (!%p213_p2), 130048   ;;  %v359_v11 = vld [vmem:[%s6450_s2 + $0x10] sm:$0xff] (!%p213_p2)  ;;  %vm378_vm2 = vcmask (!%p213_p2), 261120  }
   0x7   : > { %5004 = vmatprep.subr.bf16.mxu1 (!%p213_p2), %v5377_v2  ;;  %v5005_v7 = vpack.c.bf16 (!%p213_p2), %v358_v6, %v357_v5  ;;  %4552 = vmatprep.mubr.msk.f32.mxu1 (!%p213_p2), %vm5378_vm0, %v5379_v4  ;;  %v360_v12 = vld [vmem:[%s6450_s2 + $0x18] sm:$0xff] (!%p213_p2)  ;;  %v252_v14 = vld [vmem:[%s6449_s1 + $0x10] sm:$0xff] (!%p213_p2)  ;;  %v254_v22 = vld [vmem:[%s6449_s1 + $0x20] sm:$0xff] (!%p213_p2)  ;;  %s5380_s23 = smov (!%p213_p2), 120   ;;  %vm471_vm3 = vcmask (!%p213_p2), 64512   ;;  %vm594_vm6 = vcmask (!%p213_p2), 195584  }
   0x8   : > { %5003 = vmatpush3.bf16.msra.mxu0 (!%p213_p2), %v5002_v3  ;;  %v5008_v13 = vpack.c.bf16 (!%p213_p2), %v360_v12, %v359_v11  ;;  %v253_v18 = vld [vmem:[%s6449_s1 + $0x18] sm:$0xff] (!%p213_p2)  ;;  %vm5544_vm4 = vmpackc.low (!%p213_p2), %vm471_vm3, %vm471_vm3  ;;  %s5381_s24 = smov (!%p213_p2), 96   ;;  %s5382_s25 = smov (!%p213_p2), 88   ;;  %vm2068_vm9 = vcmask (!%p213_p2), 523264   ;;  %vm4140_vm10 = vcmask (!%p213_p2), 31744  }
   0x9   : > { %5006 = vmatpush3.bf16.msra.mxu1 (!%p213_p2), %v5005_v7  ;;  %5010 = vmatprep.subr.bf16.mxu0 (!%p213_p2), %v5377_v2  ;;  %s5383_s26 = smov (!%p213_p2), 112   ;;  %s5385_s8 = smov (!%p213_p2), 80  }
   0xa   : > { %5007 = vmatprep.subr.bf16.mxu1 (!%p213_p2), %v5377_v2  ;;  %s5386_s11 = smov (!%p213_p2), 72  }
   0xd   : > { %s6464_s22 = smov (!%p241_p3, %s4195_s22), 1  ;;  %5009 = vmatpush3.bf16.msra.mxu1 %v5008_v13 }
   0xe   : > { %s5114_s7 = smul.u32 24, %s6464_s22  ;;  %5014 = vmatprep.subr.bf16.mxu1 %v5377_v2 }
  0x10   : > { %s245_s10 = scalar_lea.vmem %s6448_s0, %s5114_s7  ;;  %s5384_s7 = smov 104  }
  0x11   : > { %v255_v8 = vld [vmem:[%s245_s10] sm:$0xff]  ;;  %v256_v9 = vld [vmem:[%s245_s10 + $0x8] sm:$0xff]  ;;  %v257_v10 = vld [vmem:[%s245_s10 + $0x10] sm:$0xff] }
  0x12   : > { %4536 = vmatmul.mubr.msk.f32.vlgmr.msra.gmra.mrb[0].mxu0 %vm258_vm1, %v255_v8 }
  0x13   : > { %4538 = vmatprep.mubr.msk.f32.mxu0 %vm5378_vm0, %v5379_v4 }
  0x16   : > { %4539 = vmatmul.mubr.msk.f32.gmra.mrb[2].mxu0 %vm258_vm1, %v256_v9 }
  0x17   : > { %4541 = vmatprep.mubr.msk.f32.mxu0 %vm5378_vm0, %v5379_v4 }
  0x1a   : > { %4542 = vmatmul.mubr.msk.f32.gmra.mrb[4].mxu0 %vm258_vm1, %v257_v10 }
  0x1b   : > { %4567 = vmatprep.mubr.msk.f32.mxu0 %vm5378_vm0, %v5379_v4 }
  0xe5   : > { %v334_v15 = vpop.f32.mrb[0].mxu0 }
  0xe6   : > { %v5472_v16 = vadd.f32 %v334_v15, %v252_v14  ;;  %v4537_v17 = vpop.f32.mrb[1].mxu0 }
  0xe8   : > { %4553 = vmatmul.mubr.msk.f32.vlgmr.msra.gmra.mrb[0].mxu1 %vm378_vm2, %v5472_v16 }
  0xe9   : > { %v339_v19 = vpop.f32.mrb[2].mxu0  ;;  %4555 = vmatprep.mubr.msk.f32.mxu1 %vm5378_vm0, %v5379_v4 }
  0xea   : > { %v5481_v20 = vadd.f32 %v339_v19, %v253_v18  ;;  %v4540_v21 = vpop.f32.mrb[3].mxu0  ;;  %v348_v19 = vlaneseq }
  0xec   : > { %4556 = vmatmul.mubr.msk.f32.gmra.mrb[2].mxu1 %vm378_vm2, %v5481_v20  ;;  %v5584_v21 = vshrl.u32 %v348_v19, 7 }
  0xed   : > { %v344_v23 = vpop.f32.mrb[4].mxu0  ;;  %4558 = vmatprep.mubr.msk.f32.mxu1 %vm5378_vm0, %v5379_v4 }
  0xee   : > { %v5490_v24 = vadd.f32 %v344_v23, %v254_v22  ;;  %v4543_v25 = vpop.f32.mrb[5].mxu0  ;;  %v353_v22 = vand.u32 127, %v348_v19 }
  0xf0   : > { %4559 = vmatmul.mubr.msk.f32.gmra.mrb[4].mxu1 %vm378_vm2, %v5490_v24  ;;  %vm5587_vm5 = vcmp.eq.s32.totalorder %v5584_v21, %v353_v22 }
  0xf1   : > { %4582 = vmatprep.mubr.msk.f32.mxu1 %vm5378_vm0, %v5379_v4 }
 0x1bb   : > { %v5496_v26 = vpop.f32.mrb[0].mxu1 }
 0x1bc   : > { %v4554_v27 = vpop.f32.mrb[1].mxu1  ;;  %v5500_v28 = vmul.f32 %v5496_v26, %v5496_v26 }
 0x1bd   : > { %v350_v27 = vadd.s32 8, %v5584_v21 }
 0x1be   : > { %729 = vrot.lane.b32.xlu0 %v5500_v28, %s5380_s23  ;;  %v472_v40 = vsel %vm471_vm3, %v5500_v28, 0.0 }
 0x1bf   : > { %v5504_v29 = vpop.f32.mrb[2].mxu1  ;;  %vm5595_vm7 = vcmp.eq.s32.totalorder %v350_v27, %v353_v22 }
 0x1c0   : > { %v4557_v30 = vpop.f32.mrb[3].mxu1  ;;  %v5508_v31 = vmul.f32 %v5504_v29, %v5504_v29  ;;  %v5512_v32 = vpack.i.bf16 %v5504_v29, %v5496_v26 }
 0x1c2   : > { %731 = vrot.lane.b32.xlu0 %v5508_v31, %s5380_s23  ;;  %v475_v44 = vsel %vm471_vm3, %v5508_v31, 0.0 }
 0x1c3   : > { %v5516_v33 = vpop.f32.mrb[4].mxu1 }
 0x1c4   : > { %v5520_v34 = vmul.f32 %v5516_v33, %v5516_v33  ;;  %v4560_v35 = vpop.f32.mrb[5].mxu1 }
 0x1c6   : > { %733 = vrot.lane.b32.xlu1 %v5520_v34, %s5380_s23  ;;  %v478_v43 = vsel %vm471_vm3, %v5520_v34, 0.0 }
 0x230   : > { %v730_v36 = vpop.permute.xlu0 %729 }
 0x231   : > { %v738_v37 = vsel %vm471_vm3, %v730_v36, 0.0 }
 0x232   : > { %739 = vadd.xlane.f32.xlu1 %v738_v37 }
 0x234   : > { %v732_v38 = vpop.permute.xlu0 %731 }
 0x235   : > { %v741_v39 = vsel %vm471_vm3, %v732_v38, 0.0 }
 0x236   : > { %742 = vadd.xlane.f32.xlu0 %v741_v39  ;;  %473 = vadd.xlane.f32.xlu1 %v472_v40  ;;  %v351_v40 = vadd.s32 16, %v5584_v21 }
 0x238   : > { %v734_v41 = vpop.permute.xlu1 %733  ;;  %vm5603_vm8 = vcmp.eq.s32.totalorder %v351_v40, %v353_v22 }
 0x239   : > { %v744_v42 = vsel %vm471_vm3, %v734_v41, 0.0 }
 0x23a   : > { %745 = vadd.xlane.f32.xlu0 %v744_v42  ;;  %479 = vadd.xlane.f32.xlu1 %v478_v43 }
 0x23e   : > { %476 = vadd.xlane.f32.xlu0 %v475_v44 }
 0x2bf   : > { %v740_v45 = vpop.xlane.xlu1 %739 }
 0x2c0   : > { %v747_v46 = vmax.f32 %v740_v45, 1e-24 }
 0x2c2   : > { %5203 = vrsqrt.f32 %v747_v46 }
 0x2c3   : > { %v743_v47 = vpop.xlane.xlu0 %742  ;;  %v474_v49 = vpop.xlane.xlu1 %473 }
 0x2c4   : > { %v748_v48 = vmax.f32 %v743_v47, 1e-24  ;;  %v481_v51 = vmax.f32 %v474_v49, 1e-24 }
 0x2c6   : > { %5205 = vrsqrt.f32 %v748_v48 }
 0x2c7   : > { %v746_v50 = vpop.xlane.xlu0 %745  ;;  %v480_v56 = vpop.xlane.xlu1 %479 }
 0x2c8   : > { %v749_v52 = vmax.f32 %v746_v50, 1e-24  ;;  %v483_v60 = vmax.f32 %v480_v56, 1e-24 }
 0x2ca   : > { %5207 = vrsqrt.f32 %v749_v52 }
 0x2cb   : > { %v477_v53 = vpop.xlane.xlu0 %476  ;;  %5209 = vrsqrt.f32 %v481_v51 }
 0x2cc   : > { %v482_v54 = vmax.f32 %v477_v53, 1e-24  ;;  %v5204_v55 = vpop.eup %5203 }
 0x2cd   : > { %v753_v58 = vmul.f32 %v5204_v55, %v5496_v26 }
 0x2ce   : > { %5211 = vrsqrt.f32 %v482_v54 }
 0x2cf   : > { %5213 = vrsqrt.f32 %v483_v60 }
 0x2d0   : > { %v5206_v57 = vpop.eup %5205 }
 0x2d1   : > { %v754_v59 = vmul.f32 %v5206_v57, %v5504_v29 }
 0x2d3   : > { %v5133_v61 = vpack.i.bf16 %v754_v59, %v753_v58 }
 0x2d4   : > { %v5208_v62 = vpop.eup %5207 }
 0x2d5   : > { %5134 = vrot.lane.b32.xlu0 %v5133_v61, %s5380_s23  ;;  %v755_v63 = vmul.f32 %v5208_v62, %v5516_v33  ;;  %v5210_v0 = vpop.eup %5209 }
 0x2d6   : > { %v487_v3 = vmul.f32 %v5210_v0, %v5496_v26 }
 0x2d7   : > { %769 = vrot.lane.b32.xlu1 %v755_v63, %s5380_s23 }
 0x2d8   : > { %v5212_v1 = vpop.eup %5211 }
 0x2d9   : > { %v488_v5 = vmul.f32 %v5212_v1, %v5504_v29  ;;  %758 = vrot.lane.b32.xlu0 %v5504_v29, %s5380_s23  ;;  %v5214_v8 = vpop.eup %5213 }
 0x2da   : > { %v489_v9 = vmul.f32 %v5214_v8, %v5516_v33 }
 0x2db   : > { %756 = vrot.lane.b32.xlu1 %v5496_v26, %s5380_s23  ;;  %v5011_v7 = vpack.c.bf16 %v488_v5, %v487_v3 }
 0x2dd   : > { %5013 = vmatpush3.bf16.xpose.msk.msra.mxu0 %vm5544_vm4, %v5011_v7 }
 0x2de   : > { %4565 = vmatprep.subr.mxu0 %v5379_v4 }
 0x2df   : > { %760 = vrot.lane.b32.xlu1 %v5516_v33, %s5380_s23 }
 0x2e5   : > { %4566 = vmatpush3.xpose.msk.msra.mxu0 %vm471_vm3, %v489_v9 }
 0x2e6   : > { %5017 = vmatprep.subr.bf16.mxu0 %v5377_v2 }
 0x2e8   : > { %4568 = vmatmul.mubr.msk.f32.vlgmr.msra.gmra.mrb[6].mxu0 %vm471_vm3, %v5496_v26 }
 0x2e9   : > { %4570 = vmatprep.mubr.msk.f32.mxu0 %vm5378_vm0, %v5379_v4 }
 0x2ec   : > { %4571 = vmatmul.mubr.msk.f32.gmra.mrb[8].mxu0 %vm471_vm3, %v5504_v29 }
 0x2ed   : > { %4573 = vmatprep.mubr.msk.f32.mxu0 %vm5378_vm0, %v5379_v4 }
 0x2f0   : > { %4574 = vmatmul.mubr.msk.f32.gmra.mrb[10].mxu0 %vm471_vm3, %v5516_v33 }
 0x2f1   : > { %4597 = vmatprep.mubr.msk.f32.mxu0 %vm5378_vm0, %v5379_v4 }
 0x347   : > { %v5135_v10 = vpop.permute.xlu0 %5134 }
 0x348   : > { %v5137_v11 = vunpack.i.h.bf16 %v5135_v10  ;;  %v5136_v12 = vunpack.i.l.bf16 %v5135_v10 }
 0x349   : > { %v770_v14 = vpop.permute.xlu1 %769 }
 0x34a   : > { %v5018_v13 = vpack.c.bf16 %v5137_v11, %v5136_v12 }
 0x34b   : > { %v759_v17 = vpop.permute.xlu0 %758 }
 0x34c   : > { %5020 = vmatpush3.bf16.xpose.msk.msra.mxu0 %vm5544_vm4, %v5018_v13 }
 0x34d   : > { %4595 = vmatprep.subr.mxu0 %v5379_v4  ;;  %v757_v15 = vpop.permute.xlu1 %756 }
 0x351   : > { %v761_v18 = vpop.permute.xlu1 %760 }
 0x354   : > { %4596 = vmatpush3.xpose.msk.msra.mxu0 %vm471_vm3, %v770_v14 }
 0x355   : > { %4621 = vmatprep.subr.mxu0 %v5379_v4 }
 0x357   : > { %4598 = vmatmul.mubr.msk.f32.vlgmr.msra.gmra.mrb[12].mxu0 %vm471_vm3, %v757_v15 }
 0x358   : > { %4600 = vmatprep.mubr.msk.f32.mxu0 %vm5378_vm0, %v5379_v4 }
 0x35b   : > { %4601 = vmatmul.mubr.msk.f32.gmra.mrb[14].mxu0 %vm471_vm3, %v759_v17 }
 0x35c   : > { %4603 = vmatprep.mubr.msk.f32.mxu0 %vm5378_vm0, %v5379_v4 }
 0x35f   : > { %4604 = vmatmul.mubr.msk.f32.gmra.mrb[16].mxu0 %vm471_vm3, %v761_v18 }
 0x360   : > { %4623 = vmatprep.mubr.msk.f32.mxu0 %vm5378_vm0, %v5379_v4 }
 0x3bb   : > { %v574_v23 = vpop.f32.mrb[6].mxu0 }
 0x3bc   : > { %v588_v30 = vmul.f32 0.35355338, %v574_v23  ;;  %v4569_v35 = vpop.f32.mrb[7].mxu0 }
 0x3be   : > { %v591_v36 = vsel %vm5587_vm5, -50000.0, %v588_v30 }
 0x3bf   : > { %v579_v37 = vpop.f32.mrb[8].mxu0  ;;  %v595_v38 = vsel %vm594_vm6, %v591_v36, -inf }
 0x3c0   : > { %v589_v41 = vmul.f32 0.35355338, %v579_v37  ;;  %596 = vmax.xlane.f32.xlu0 %v595_v38  ;;  %v4572_v42 = vpop.f32.mrb[9].mxu0 }
 0x3c2   : > { %v592_v43 = vsel %vm5595_vm7, -50000.0, %v589_v41 }
 0x3c3   : > { %v584_v44 = vpop.f32.mrb[10].mxu0  ;;  %v598_v45 = vsel %vm594_vm6, %v592_v43, -inf }
 0x3c4   : > { %v590_v47 = vmul.f32 0.35355338, %v584_v44  ;;  %599 = vmax.xlane.f32.xlu1 %v598_v45  ;;  %v4575_v48 = vpop.f32.mrb[11].mxu0 }
 0x3c6   : > { %v593_v49 = vsel %vm5603_vm8, -50000.0, %v590_v47 }
 0x3c7   : > { %v601_v50 = vsel %vm594_vm6, %v593_v49, -inf }
 0x3c8   : > { %602 = vmax.xlane.f32.xlu0 %v601_v50 }
 0x42a   : > { %v849_v51 = vpop.f32.mrb[12].mxu0 }
 0x42b   : > { %v863_v52 = vmul.f32 0.35355338, %v849_v51  ;;  %v4599_v53 = vpop.f32.mrb[13].mxu0 }
 0x42d   : > { %v866_v54 = vsel %vm5587_vm5, -50000.0, %v863_v52 }
 0x42e   : > { %v854_v55 = vpop.f32.mrb[14].mxu0  ;;  %v869_v56 = vsel %vm594_vm6, %v866_v54, -inf }
 0x42f   : > { %v864_v57 = vmul.f32 0.35355338, %v854_v55  ;;  %870 = vmax.xlane.f32.xlu0 %v869_v56  ;;  %v4602_v58 = vpop.f32.mrb[15].mxu0 }
 0x431   : > { %v867_v59 = vsel %vm5595_vm7, -50000.0, %v864_v57 }
 0x432   : > { %v859_v60 = vpop.f32.mrb[16].mxu0  ;;  %v872_v61 = vsel %vm594_vm6, %v867_v59, -inf }
 0x433   : > { %v865_v62 = vmul.f32 0.35355338, %v859_v60  ;;  %873 = vmax.xlane.f32.xlu1 %v872_v61  ;;  %v4605_v63 = vpop.f32.mrb[17].mxu0 }
 0x435   : > { %v868_v0 = vsel %vm5603_vm8, -50000.0, %v865_v62 }
 0x436   : > { %v875_v1 = vsel %vm594_vm6, %v868_v0, -inf }
 0x437   : > { %876 = vmax.xlane.f32.xlu0 %v875_v1 }
 0x44d   : > { %v597_v3 = vpop.xlane.xlu0 %596 }
 0x44e   : > { %v604_v5 = vsub.f32 %v591_v36, %v597_v3 }
 0x450   : > { %v607_v7 = vmul.f32 1.442695, %v604_v5 }
 0x451   : > { %v600_v8 = vpop.xlane.xlu1 %599 }
 0x452   : > { %5215 = vpow2.f32 %v607_v7  ;;  %v605_v9 = vsub.f32 %v592_v43, %v600_v8 }
 0x454   : > { %v609_v10 = vmul.f32 1.442695, %v605_v9 }
 0x455   : > { %v603_v11 = vpop.xlane.xlu0 %602 }
 0x456   : > { %5217 = vpow2.f32 %v609_v10  ;;  %v606_v12 = vsub.f32 %v593_v49, %v603_v11 }
 0x458   : > { %v611_v13 = vmul.f32 1.442695, %v606_v12 }
 0x45a   : > { %5219 = vpow2.f32 %v611_v13 }
 0x45c   : > { %v5216_v14 = vpop.eup %5215 }
 0x45d   : > { %v613_v15 = vsel %vm594_vm6, %v5216_v14, 0.0 }
 0x45e   : > { %614 = vadd.xlane.f32.xlu1 %v613_v15 }
 0x460   : > { %v5218_v17 = vpop.eup %5217 }
 0x461   : > { %v616_v18 = vsel %vm594_vm6, %v5218_v17, 0.0 }
 0x462   : > { %617 = vadd.xlane.f32.xlu0 %v616_v18 }
 0x464   : > { %v5220_v19 = vpop.eup %5219 }
 0x465   : > { %v619_v22 = vsel %vm594_vm6, %v5220_v19, 0.0 }
 0x466   : > { %620 = vadd.xlane.f32.xlu1 %v619_v22 }
 0x477   : > { %632 = vrot.lane.b32.xlu1 %v5516_v33, %s5381_s24 }
 0x478   : > { %5139 = vrot.lane.b32.xlu0 %v5512_v32, %s5381_s24 }
 0x4bc   : > { %v871_v23 = vpop.xlane.xlu0 %870 }
 0x4bd   : > { %v878_v27 = vsub.f32 %v866_v54, %v871_v23 }
 0x4bf   : > { %v881_v30 = vmul.f32 1.442695, %v878_v27 }
 0x4c0   : > { %v874_v35 = vpop.xlane.xlu1 %873 }
 0x4c1   : > { %5221 = vpow2.f32 %v881_v30  ;;  %v879_v36 = vsub.f32 %v867_v59, %v874_v35  ;;  %v366_v35 = vld [vmem:[%s6451_s3 + $0x8] sm:$0xff] }
 0x4c2   : > { %4622 = vmatpush3.msra.mxu0 %v366_v35 }
 0x4c3   : > { %v883_v37 = vmul.f32 1.442695, %v879_v36  ;;  %5024 = vmatprep.subr.bf16.mxu0 %v5377_v2 }
 0x4c4   : > { %v877_v38 = vpop.xlane.xlu0 %876 }
 0x4c5   : > { %5223 = vpow2.f32 %v883_v37  ;;  %v880_v40 = vsub.f32 %v868_v0, %v877_v38 }
 0x4c7   : > { %v885_v41 = vmul.f32 1.442695, %v880_v40 }
 0x4c9   : > { %5225 = vpow2.f32 %v885_v41 }
 0x4cb   : > { %v5222_v42 = vpop.eup %5221 }
 0x4cc   : > { %v887_v43 = vsel %vm594_vm6, %v5222_v42, 0.0 }
 0x4cd   : > { %888 = vadd.xlane.f32.xlu0 %v887_v43 }
 0x4cf   : > { %v5627_v44 = vpop.eup %5223 }
 0x4d0   : > { %v890_v45 = vsel %vm594_vm6, %v5627_v44, 0.0 }
 0x4d1   : > { %891 = vadd.xlane.f32.xlu1 %v890_v45 }
 0x4d3   : > { %v5631_v47 = vpop.eup %5225 }
 0x4d4   : > { %v893_v48 = vsel %vm594_vm6, %v5631_v47, 0.0 }
 0x4d5   : > { %894 = vadd.xlane.f32.xlu1 %v893_v48 }
 0x4e3   : > { %5144 = vrot.lane.b32.xlu0 %v5512_v32, %s5382_s25 }
 0x4e6   : > { %906 = vrot.lane.b32.xlu1 %v5516_v33, %s5382_s25 }
 0x4e7   : > { %1178 = vrot.lane.b32.xlu0 %v5500_v28, %s5383_s26 }
 0x4ea   : > { %1180 = vrot.lane.b32.xlu1 %v5508_v31, %s5383_s26 }
 0x4eb   : > { %v615_v49 = vpop.xlane.xlu1 %614  ;;  %1182 = vrot.lane.b32.xlu0 %v5520_v34, %s5383_s26 }
 0x4ec   : > { %5227 = vrcp.f32 %v615_v49 }
 0x4ef   : > { %v618_v50 = vpop.xlane.xlu0 %617 }
 0x4f0   : > { %5229 = vrcp.f32 %v618_v50 }
 0x4f3   : > { %v621_v51 = vpop.xlane.xlu1 %620  ;;  %v5140_v52 = vpop.permute.xlu0 %5139 }
 0x4f4   : > { %v5142_v53 = vunpack.i.h.bf16 %v5140_v52  ;;  %v5141_v54 = vunpack.i.l.bf16 %v5140_v52  ;;  %5231 = vrcp.f32 %v621_v51 }
 0x4f6   : > { %v5015_v55 = vpack.c.bf16 %v5142_v53, %v5141_v54  ;;  %v5228_v56 = vpop.eup %5227 }
 0x4f7   : > { %v625_v57 = vmul.f32 %v5228_v56, %v5216_v14  ;;  %v633_v58 = vpop.permute.xlu1 %632  ;;  %v365_v14 = vld [vmem:[%s6451_s3] sm:$0xff] }
 0x4f8   : > { %5016 = vmatpush3.bf16.msra.mxu1 %v5015_v55 }
 0x4f9   : > { %4580 = vmatprep.subr.mxu1 %v5379_v4 }
 0x4fa   : > { %v5230_v59 = vpop.eup %5229 }
 0x4fb   : > { %v626_v60 = vmul.f32 %v5230_v59, %v5218_v17 }
 0x4fc   : > { %4581 = vmatpush3.msra.mxu1 %v633_v58 }
 0x4fd   : > { %4583 = vmatmul.mubr.msk.f32.vlgmr.msra.gmra.mrb[6].mxu1 %vm594_vm6, %v625_v57  ;;  %5021 = vmatprep.subr.bf16.mxu1 %v5377_v2 }
 0x4fe   : > { %4585 = vmatprep.mubr.msk.f32.mxu1 %vm5378_vm0, %v5379_v4  ;;  %v5232_v61 = vpop.eup %5231 }
 0x4ff   : > { %v627_v62 = vmul.f32 %v5232_v61, %v5220_v19 }
 0x501   : > { %4586 = vmatmul.mubr.msk.f32.gmra.mrb[8].mxu1 %vm594_vm6, %v626_v60 }
 0x502   : > { %4588 = vmatprep.mubr.msk.f32.mxu1 %vm5378_vm0, %v5379_v4 }
 0x505   : > { %4589 = vmatmul.mubr.msk.f32.gmra.mrb[10].mxu1 %vm594_vm6, %v627_v62 }
 0x506   : > { %4612 = vmatprep.mubr.msk.f32.mxu1 %vm5378_vm0, %v5379_v4 }
 0x55a   : > { %v889_v63 = vpop.xlane.xlu0 %888 }
 0x55b   : > { %5233 = vrcp.f32 %v889_v63 }
 0x55e   : > { %v892_v0 = vpop.xlane.xlu1 %891  ;;  %v5145_v1 = vpop.permute.xlu0 %5144 }
 0x55f   : > { %5235 = vrcp.f32 %v892_v0  ;;  %v5147_v3 = vunpack.i.h.bf16 %v5145_v1  ;;  %v5146_v5 = vunpack.i.l.bf16 %v5145_v1 }
 0x561   : > { %v5022_v7 = vpack.c.bf16 %v5147_v3, %v5146_v5 }
 0x562   : > { %v895_v8 = vpop.xlane.xlu1 %894  ;;  %v1179_v9 = vpop.permute.xlu0 %1178 }
 0x563   : > { %5237 = vrcp.f32 %v895_v8  ;;  %5023 = vmatpush3.bf16.msra.mxu1 %v5022_v7  ;;  %v1187_v10 = vsel %vm471_vm3, %v1179_v9, 0.0 }
 0x564   : > { %1188 = vadd.xlane.f32.xlu1 %v1187_v10  ;;  %4610 = vmatprep.subr.mxu1 %v5379_v4 }
 0x565   : > { %v5234_v11 = vpop.eup %5233 }
 0x566   : > { %v899_v12 = vmul.f32 %v5234_v11, %v5222_v42  ;;  %v907_v13 = vpop.permute.xlu1 %906  ;;  %v1183_v22 = vpop.permute.xlu0 %1182 }
 0x567   : > { %4611 = vmatpush3.msra.mxu1 %v907_v13  ;;  %v1193_v30 = vsel %vm471_vm3, %v1183_v22, 0.0 }
 0x568   : > { %4613 = vmatmul.mubr.msk.f32.vlgmr.msra.gmra.mrb[12].mxu1 %vm594_vm6, %v899_v12  ;;  %4632 = vmatprep.subr.mxu1 %v5379_v4 }
 0x569   : > { %v5236_v15 = vpop.eup %5235  ;;  %4615 = vmatprep.mubr.msk.f32.mxu1 %vm5378_vm0, %v5379_v4  ;;  %4633 = vmatpush3.msra.mxu1 %v365_v14 }
 0x56a   : > { %v1181_v17 = vpop.permute.xlu1 %1180  ;;  %v900_v18 = vmul.f32 %v5236_v15, %v5627_v44  ;;  %5028 = vmatprep.subr.bf16.mxu1 %v5377_v2 }
 0x56b   : > { %v1190_v19 = vsel %vm471_vm3, %v1181_v17, 0.0 }
 0x56c   : > { %1191 = vadd.xlane.f32.xlu0 %v1190_v19  ;;  %4616 = vmatmul.mubr.msk.f32.gmra.mrb[14].mxu1 %vm594_vm6, %v900_v18 }
 0x56d   : > { %v5238_v23 = vpop.eup %5237  ;;  %4618 = vmatprep.mubr.msk.f32.mxu1 %vm5378_vm0, %v5379_v4 }
 0x56e   : > { %v901_v27 = vmul.f32 %v5238_v23, %v5631_v47 }
 0x570   : > { %1194 = vadd.xlane.f32.xlu0 %v1193_v30  ;;  %4619 = vmatmul.mubr.msk.f32.gmra.mrb[16].mxu1 %vm594_vm6, %v901_v27 }
 0x571   : > { %4634 = vmatprep.mubr.msk.f32.mxu1 %vm5378_vm0, %v5379_v4 }
 0x5d0   : > { %v712_v36 = vpop.f32.mrb[6].mxu1 }
 0x5d1   : > { %v4584_v37 = vpop.f32.mrb[7].mxu1  ;;  %4635 = vmatmul.mubr.msk.f32.vlgmr.msra.gmra.mrb[18].mxu1 %vm471_vm3, %v712_v36 }
 0x5d2   : > { %4637 = vmatprep.mubr.msk.f32.mxu1 %vm5378_vm0, %v5379_v4 }
 0x5d4   : > { %v717_v38 = vpop.f32.mrb[8].mxu1 }
 0x5d5   : > { %v4587_v40 = vpop.f32.mrb[9].mxu1  ;;  %4638 = vmatmul.mubr.msk.f32.gmra.mrb[20].mxu1 %vm471_vm3, %v717_v38 }
 0x5d6   : > { %4640 = vmatprep.mubr.msk.f32.mxu1 %vm5378_vm0, %v5379_v4 }
 0x5d8   : > { %v722_v41 = vpop.f32.mrb[10].mxu1 }
 0x5d9   : > { %v4590_v42 = vpop.f32.mrb[11].mxu1  ;;  %4641 = vmatmul.mubr.msk.f32.gmra.mrb[22].mxu1 %vm471_vm3, %v722_v41 }
 0x5da   : > { %4664 = vmatprep.mubr.msk.f32.mxu1 %vm5378_vm0, %v5379_v4 }
 0x5f1   : > { %v1189_v43 = vpop.xlane.xlu1 %1188 }
 0x5f2   : > { %v1196_v44 = vmax.f32 %v1189_v43, 1e-24 }
 0x5f4   : > { %5239 = vrsqrt.f32 %v1196_v44 }
 0x5f9   : > { %v1192_v45 = vpop.xlane.xlu0 %1191 }
 0x5fa   : > { %v1197_v47 = vmax.f32 %v1192_v45, 1e-24 }
 0x5fc   : > { %5241 = vrsqrt.f32 %v1197_v47 }
 0x5fd   : > { %v1195_v48 = vpop.xlane.xlu0 %1194 }
 0x5fe   : > { %v1198_v49 = vmax.f32 %v1195_v48, 1e-24  ;;  %v5240_v50 = vpop.eup %5239 }
 0x5ff   : > { %v1202_v52 = vmul.f32 %v5240_v50, %v5496_v26 }
 0x600   : > { %5243 = vrsqrt.f32 %v1198_v49 }
 0x606   : > { %v5242_v51 = vpop.eup %5241 }
 0x607   : > { %v1203_v53 = vmul.f32 %v5242_v51, %v5504_v29 }
 0x609   : > { %v5148_v54 = vpack.i.bf16 %v1203_v53, %v1202_v52 }
 0x60a   : > { %v5244_v55 = vpop.eup %5243 }
 0x60b   : > { %5149 = vrot.lane.b32.xlu1 %v5148_v54, %s5383_s26  ;;  %v1204_v56 = vmul.f32 %v5244_v55, %v5516_v33 }
 0x60d   : > { %1218 = vrot.lane.b32.xlu0 %v1204_v56, %s5383_s26 }
 0x60f   : > { %1205 = vrot.lane.b32.xlu1 %v5496_v26, %s5383_s26 }
 0x611   : > { %1209 = vrot.lane.b32.xlu0 %v5516_v33, %s5383_s26 }
 0x613   : > { %1207 = vrot.lane.b32.xlu1 %v5504_v29, %s5383_s26 }
 0x615   : > { %1543 = vrot.lane.b32.xlu0 %v5508_v31, %s5384_s7 }
 0x617   : > { %1541 = vrot.lane.b32.xlu1 %v5500_v28, %s5384_s7 }
 0x61b   : > { %1545 = vrot.lane.b32.xlu1 %v5520_v34, %s5384_s7 }
 0x63b   : > { %v986_v57 = vpop.f32.mrb[12].mxu1 }
 0x63c   : > { %v4614_v58 = vpop.f32.mrb[13].mxu1  ;;  %4624 = vmatmul.mubr.msk.f32.vlgmr.msra.gmra.mrb[18].mxu0 %vm471_vm3, %v986_v57 }
 0x63d   : > { %4626 = vmatprep.mubr.msk.f32.mxu0 %vm5378_vm0, %v5379_v4 }
 0x63f   : > { %v991_v59 = vpop.f32.mrb[14].mxu1 }
 0x640   : > { %v4617_v60 = vpop.f32.mrb[15].mxu1  ;;  %4627 = vmatmul.mubr.msk.f32.gmra.mrb[20].mxu0 %vm471_vm3, %v991_v59 }
 0x641   : > { %4629 = vmatprep.mubr.msk.f32.mxu0 %vm5378_vm0, %v5379_v4 }
 0x643   : > { %v996_v31 = vpop.f32.mrb[16].mxu1 }
 0x644   : > { %v4620_v61 = vpop.f32.mrb[17].mxu1  ;;  %4630 = vmatmul.mubr.msk.f32.gmra.mrb[22].mxu0 %vm471_vm3, %v996_v31 }
 0x645   : > { %4649 = vmatprep.mubr.msk.f32.mxu0 %vm5378_vm0, %v5379_v4 }
 0x67d   : > { %v5150_v28 = vpop.permute.xlu1 %5149 }
 0x67e   : > { %v5152_v34 = vunpack.i.h.bf16 %v5150_v28  ;;  %v5151_v62 = vunpack.i.l.bf16 %v5150_v28 }
 0x67f   : > { %v1219_v0 = vpop.permute.xlu0 %1218 }
 0x680   : > { %v5025_v63 = vpack.c.bf16 %v5152_v34, %v5151_v62 }
 0x681   : > { %v1206_v1 = vpop.permute.xlu1 %1205 }
 0x682   : > { %5027 = vmatpush3.bf16.xpose.msk.msra.mxu0 %vm5544_vm4, %v5025_v63 }
 0x683   : > { %4647 = vmatprep.subr.mxu0 %v5379_v4  ;;  %v1210_v5 = vpop.permute.xlu0 %1209 }
 0x685   : > { %v1208_v3 = vpop.permute.xlu1 %1207 }
 0x687   : > { %v1544_v47 = vpop.permute.xlu0 %1543 }
 0x688   : > { %v1553_v52 = vsel %vm471_vm3, %v1544_v47, 0.0 }
 0x689   : > { %v1542_v50 = vpop.permute.xlu1 %1541 }
 0x68a   : > { %4648 = vmatpush3.xpose.msk.msra.mxu0 %vm471_vm3, %v1219_v0  ;;  %v1550_v54 = vsel %vm471_vm3, %v1542_v50, 0.0 }
 0x68b   : > { %4673 = vmatprep.subr.mxu0 %v5379_v4 }
 0x68d   : > { %4650 = vmatmul.mubr.msk.f32.vlgmr.msra.gmra.mrb[24].mxu0 %vm471_vm3, %v1206_v1  ;;  %v1546_v55 = vpop.permute.xlu1 %1545 }
 0x68e   : > { %4652 = vmatprep.mubr.msk.f32.mxu0 %vm5378_vm0, %v5379_v4  ;;  %v1556_v56 = vsel %vm471_vm3, %v1546_v55, 0.0 }
 0x691   : > { %4653 = vmatmul.mubr.msk.f32.gmra.mrb[26].mxu0 %vm471_vm3, %v1208_v3 }
 0x692   : > { %4655 = vmatprep.mubr.msk.f32.mxu0 %vm5378_vm0, %v5379_v4 }
 0x695   : > { %4656 = vmatmul.mubr.msk.f32.gmra.mrb[28].mxu0 %vm471_vm3, %v1210_v5 }
 0x696   : > { %4675 = vmatprep.mubr.msk.f32.mxu0 %vm5378_vm0, %v5379_v4 }
 0x6a4   : > { %v1164_v7 = vpop.f32.mrb[18].mxu1 }
 0x6a5   : > { %v4636_v8 = vpop.f32.mrb[19].mxu1 }
 0x6a8   : > { %v1169_v9 = vpop.f32.mrb[20].mxu1 }
 0x6a9   : > { %v4639_v10 = vpop.f32.mrb[21].mxu1 }
 0x6ac   : > { %v1174_v11 = vpop.f32.mrb[22].mxu1 }
 0x6ad   : > { %v4642_v12 = vpop.f32.mrb[23].mxu1 }
 0x70f   : > { %v1075_v13 = vpop.f32.mrb[18].mxu0 }
 0x710   : > { %v5729_v14 = vadd.f32 %v1164_v7, %v1075_v13  ;;  %v4625_v15 = vpop.f32.mrb[19].mxu0 }
 0x713   : > { %v1080_v17 = vpop.f32.mrb[20].mxu0 }
 0x714   : > { %v5731_v18 = vadd.f32 %v1169_v9, %v1080_v17  ;;  %v4628_v19 = vpop.f32.mrb[21].mxu0 }
 0x717   : > { %v1085_v22 = vpop.f32.mrb[22].mxu0 }
 0x718   : > { %v5733_v23 = vadd.f32 %v1174_v11, %v1085_v22  ;;  %v4631_v27 = vpop.f32.mrb[23].mxu0 }
 0x760   : > { %v1298_v30 = vpop.f32.mrb[24].mxu0 }
 0x761   : > { %v1312_v35 = vmul.f32 0.35355338, %v1298_v30  ;;  %v4651_v36 = vpop.f32.mrb[25].mxu0 }
 0x763   : > { %v1315_v37 = vsel %vm5587_vm5, -50000.0, %v1312_v35 }
 0x764   : > { %v1303_v38 = vpop.f32.mrb[26].mxu0  ;;  %v1318_v40 = vsel %vm594_vm6, %v1315_v37, -inf }
 0x765   : > { %v1313_v41 = vmul.f32 0.35355338, %v1303_v38  ;;  %1319 = vmax.xlane.f32.xlu0 %v1318_v40  ;;  %v4654_v42 = vpop.f32.mrb[27].mxu0 }
 0x767   : > { %v1316_v43 = vsel %vm5595_vm7, -50000.0, %v1313_v41 }
 0x768   : > { %v1308_v44 = vpop.f32.mrb[28].mxu0  ;;  %v1321_v45 = vsel %vm594_vm6, %v1316_v43, -inf }
 0x769   : > { %v1314_v48 = vmul.f32 0.35355338, %v1308_v44  ;;  %1322 = vmax.xlane.f32.xlu1 %v1321_v45  ;;  %v4657_v49 = vpop.f32.mrb[29].mxu0 }
 0x76b   : > { %v1317_v51 = vsel %vm5603_vm8, -50000.0, %v1314_v48 }
 0x76c   : > { %v1324_v53 = vsel %vm594_vm6, %v1317_v51, -inf }
 0x76d   : > { %1554 = vadd.xlane.f32.xlu1 %v1553_v52  ;;  %1325 = vmax.xlane.f32.xlu0 %v1324_v53 }
 0x771   : > { %1551 = vadd.xlane.f32.xlu0 %v1550_v54 }
 0x775   : > { %1557 = vadd.xlane.f32.xlu0 %v1556_v56 }
 0x7f2   : > { %v1320_v57 = vpop.xlane.xlu0 %1319 }
 0x7f3   : > { %v1327_v58 = vsub.f32 %v1315_v37, %v1320_v57 }
 0x7f5   : > { %v1330_v59 = vmul.f32 1.442695, %v1327_v58  ;;  %v367_v58 = vld [vmem:[%s6451_s3 + $0x10] sm:$0xff] }
 0x7f6   : > { %v1323_v60 = vpop.xlane.xlu1 %1322  ;;  %4674 = vmatpush3.msra.mxu0 %v367_v58 }
 0x7f7   : > { %5245 = vpow2.f32 %v1330_v59  ;;  %v1328_v31 = vsub.f32 %v1316_v43, %v1323_v60  ;;  %5035 = vmatprep.subr.bf16.mxu0 %v5377_v2 }
 0x7f9   : > { %v1332_v61 = vmul.f32 1.442695, %v1328_v31 }
 0x7fa   : > { %v1555_v28 = vpop.xlane.xlu1 %1554  ;;  %v1326_v34 = vpop.xlane.xlu0 %1325 }
 0x7fb   : > { %5247 = vpow2.f32 %v1332_v61  ;;  %v1560_v62 = vmax.f32 %v1555_v28, 1e-24  ;;  %v1329_v22 = vsub.f32 %v1317_v51, %v1326_v34 }
 0x7fd   : > { %5249 = vrsqrt.f32 %v1560_v62  ;;  %v1334_v27 = vmul.f32 1.442695, %v1329_v22 }
 0x7fe   : > { %v1552_v63 = vpop.xlane.xlu0 %1551 }
 0x7ff   : > { %v1559_v0 = vmax.f32 %v1552_v63, 1e-24 }
 0x801   : > { %v5246_v1 = vpop.eup %5245  ;;  %5251 = vrsqrt.f32 %v1559_v0 }
 0x802   : > { %v1336_v3 = vsel %vm594_vm6, %v5246_v1, 0.0  ;;  %v1558_v10 = vpop.xlane.xlu0 %1557 }
 0x803   : > { %1337 = vadd.xlane.f32.xlu1 %v1336_v3  ;;  %v1561_v13 = vmax.f32 %v1558_v10, 1e-24 }
 0x805   : > { %v5248_v5 = vpop.eup %5247  ;;  %5253 = vrsqrt.f32 %v1561_v13 }
 0x806   : > { %v1339_v7 = vsel %vm594_vm6, %v5248_v5, 0.0  ;;  %5255 = vpow2.f32 %v1334_v27 }
 0x807   : > { %1340 = vadd.xlane.f32.xlu0 %v1339_v7  ;;  %v5250_v8 = vpop.eup %5249 }
 0x808   : > { %v1566_v12 = vmul.f32 %v5250_v8, %v5504_v29 }
 0x80b   : > { %v5252_v9 = vpop.eup %5251 }
 0x80c   : > { %v1565_v11 = vmul.f32 %v5252_v9, %v5496_v26 }
 0x80e   : > { %v5158_v15 = vpack.i.bf16 %v1566_v12, %v1565_v11 }
 0x80f   : > { %v5254_v17 = vpop.eup %5253 }
 0x810   : > { %v1567_v19 = vmul.f32 %v5254_v17, %v5516_v33  ;;  %v5256_v30 = vpop.eup %5255 }
 0x811   : > { %v1342_v35 = vsel %vm594_vm6, %v5256_v30, 0.0 }
 0x814   : > { %1355 = vrot.lane.b32.xlu1 %v5516_v33, %s5385_s8 }
 0x818   : > { %5159 = vrot.lane.b32.xlu1 %v5158_v15, %s5384_s7 }
 0x81d   : > { %5154 = vrot.lane.b32.xlu0 %v5512_v32, %s5385_s8 }
 0x821   : > { %1581 = vrot.lane.b32.xlu0 %v1567_v19, %s5384_s7 }
 0x825   : > { %1570 = vrot.lane.b32.xlu0 %v5504_v29, %s5384_s7 }
 0x83c   : > { %1343 = vadd.xlane.f32.xlu1 %v1342_v35 }
 0x84d   : > { %1568 = vrot.lane.b32.xlu1 %v5496_v26, %s5384_s7 }
 0x851   : > { %1572 = vrot.lane.b32.xlu1 %v5516_v33, %s5384_s7 }
 0x890   : > { %v1338_v36 = vpop.xlane.xlu1 %1337 }
 0x891   : > { %5257 = vrcp.f32 %v1338_v36 }
 0x894   : > { %v1341_v37 = vpop.xlane.xlu0 %1340  ;;  %v1356_v40 = vpop.permute.xlu1 %1355 }
 0x895   : > { %5259 = vrcp.f32 %v1341_v37 }
 0x898   : > { %v5155_v38 = vpop.permute.xlu0 %5154  ;;  %v5160_v44 = vpop.permute.xlu1 %5159 }
 0x899   : > { %v5157_v29 = vunpack.i.h.bf16 %v5155_v38  ;;  %v5156_v41 = vunpack.i.l.bf16 %v5155_v38  ;;  %v5162_v26 = vunpack.i.h.bf16 %v5160_v44  ;;  %v5161_v48 = vunpack.i.l.bf16 %v5160_v44 }
 0x89b   : > { %v5029_v42 = vpack.c.bf16 %v5157_v29, %v5156_v41  ;;  %v5258_v43 = vpop.eup %5257  ;;  %v5032_v50 = vpack.c.bf16 %v5162_v26, %v5161_v48 }
 0x89c   : > { %v1348_v45 = vmul.f32 %v5258_v43, %v5246_v1  ;;  %v1582_v51 = vpop.permute.xlu0 %1581 }
 0x89d   : > { %5030 = vmatpush3.bf16.msra.mxu1 %v5029_v42 }
 0x89e   : > { %4662 = vmatprep.subr.mxu1 %v5379_v4 }
 0x89f   : > { %v5260_v47 = vpop.eup %5259 }
 0x8a0   : > { %v1349_v49 = vmul.f32 %v5260_v47, %v5248_v5  ;;  %v1571_v56 = vpop.permute.xlu0 %1570 }
 0x8a1   : > { %4663 = vmatpush3.msra.mxu1 %v1356_v40 }
 0x8a2   : > { %4665 = vmatmul.mubr.msk.f32.vlgmr.msra.gmra.mrb[24].mxu1 %vm594_vm6, %v1348_v45  ;;  %5031 = vmatprep.subr.bf16.mxu1 %v5377_v2 }
 0x8a3   : > { %4667 = vmatprep.mubr.msk.f32.mxu1 %vm5378_vm0, %v5379_v4 }
 0x8a6   : > { %4668 = vmatmul.mubr.msk.f32.gmra.mrb[26].mxu1 %vm594_vm6, %v1349_v49 }
 0x8a7   : > { %4670 = vmatprep.mubr.msk.f32.mxu1 %vm5378_vm0, %v5379_v4 }
 0x8a8   : > { %5034 = vmatpush3.bf16.xpose.msk.msra.mxu1 %vm5544_vm4, %v5032_v50 }
 0x8a9   : > { %4688 = vmatprep.subr.mxu1 %v5379_v4 }
 0x8b0   : > { %4689 = vmatpush3.xpose.msk.msra.mxu1 %vm471_vm3, %v1582_v51 }
 0x8b1   : > { %4714 = vmatprep.subr.mxu1 %v5379_v4 }
 0x8c9   : > { %v1344_v52 = vpop.xlane.xlu1 %1343 }
 0x8ca   : > { %5261 = vrcp.f32 %v1344_v52 }
 0x8cd   : > { %v1569_v55 = vpop.permute.xlu1 %1568 }
 0x8d1   : > { %v1573_v57 = vpop.permute.xlu1 %1572 }
 0x8d4   : > { %v5262_v53 = vpop.eup %5261 }
 0x8d5   : > { %v1350_v54 = vmul.f32 %v5262_v53, %v5256_v30 }
 0x8d7   : > { %4671 = vmatmul.mubr.msk.f32.gmra.mrb[28].mxu1 %vm594_vm6, %v1350_v54 }
 0x8d8   : > { %4690 = vmatprep.mubr.msk.f32.mxu1 %vm5378_vm0, %v5379_v4 }
 0x8db   : > { %4691 = vmatmul.mubr.msk.f32.vlgmr.msra.gmra.mrb[30].mxu1 %vm471_vm3, %v1569_v55 }
 0x8dc   : > { %4693 = vmatprep.mubr.msk.f32.mxu1 %vm5378_vm0, %v5379_v4 }
 0x8df   : > { %4694 = vmatmul.mubr.msk.f32.gmra.mrb[32].mxu1 %vm471_vm3, %v1571_v56 }
 0x8e0   : > { %4696 = vmatprep.mubr.msk.f32.mxu1 %vm5378_vm0, %v5379_v4 }
 0x8e3   : > { %4697 = vmatmul.mubr.msk.f32.gmra.mrb[34].mxu1 %vm471_vm3, %v1573_v57 }
 0x8e4   : > { %4716 = vmatprep.mubr.msk.f32.mxu1 %vm5378_vm0, %v5379_v4 }
 0x975   : > { %v1435_v59 = vpop.f32.mrb[24].mxu1 }
 0x976   : > { %v4666_v60 = vpop.f32.mrb[25].mxu1  ;;  %4676 = vmatmul.mubr.msk.f32.vlgmr.msra.gmra.mrb[30].mxu0 %vm471_vm3, %v1435_v59 }
 0x977   : > { %4678 = vmatprep.mubr.msk.f32.mxu0 %vm5378_vm0, %v5379_v4 }
 0x979   : > { %v1440_v31 = vpop.f32.mrb[26].mxu1 }
 0x97a   : > { %v4669_v61 = vpop.f32.mrb[27].mxu1  ;;  %4679 = vmatmul.mubr.msk.f32.gmra.mrb[32].mxu0 %vm471_vm3, %v1440_v31 }
 0x97b   : > { %4681 = vmatprep.mubr.msk.f32.mxu0 %vm5378_vm0, %v5379_v4 }
 0x9aa   : > { %v1445_v28 = vpop.f32.mrb[28].mxu1 }
 0x9ab   : > { %v4672_v34 = vpop.f32.mrb[29].mxu1  ;;  %4682 = vmatmul.mubr.msk.f32.gmra.mrb[34].mxu0 %vm471_vm3, %v1445_v28 }
 0x9ac   : > { %4705 = vmatprep.mubr.msk.f32.mxu0 %vm5378_vm0, %v5379_v4 }
 0x9ae   : > { %v1661_v62 = vpop.f32.mrb[30].mxu1 }
 0x9af   : > { %v1675_v63 = vmul.f32 0.35355338, %v1661_v62  ;;  %v4692_v0 = vpop.f32.mrb[31].mxu1 }
 0x9b1   : > { %v1678_v1 = vsel %vm5587_vm5, -50000.0, %v1675_v63 }
 0x9b2   : > { %v1666_v3 = vpop.f32.mrb[32].mxu1  ;;  %v1681_v5 = vsel %vm594_vm6, %v1678_v1, -inf }
 0x9b3   : > { %v1676_v7 = vmul.f32 0.35355338, %v1666_v3  ;;  %1682 = vmax.xlane.f32.xlu0 %v1681_v5  ;;  %v4695_v8 = vpop.f32.mrb[33].mxu1 }
 0x9b4   : > { %v5856_v8 = vld [vmem:[%s6452_s4] sm:$0xff] }
 0x9b5   : > { %v1679_v9 = vsel %vm5595_vm7, -50000.0, %v1676_v7  ;;  %v5851_v7 = vsub.s32 0, %v5584_v21 }
 0x9b6   : > { %v1671_v10 = vpop.f32.mrb[34].mxu1  ;;  %v1684_v11 = vsel %vm594_vm6, %v1679_v9, -inf }
 0x9b7   : > { %v1677_v12 = vmul.f32 0.35355338, %v1671_v10  ;;  %1685 = vmax.xlane.f32.xlu1 %v1684_v11  ;;  %v4698_v13 = vpop.f32.mrb[35].mxu1 }
 0x9b9   : > { %v1680_v15 = vsel %vm5603_vm8, -50000.0, %v1677_v12 }
 0x9ba   : > { %v1687_v17 = vsel %vm594_vm6, %v1680_v15, -inf }
 0x9bb   : > { %1688 = vmax.xlane.f32.xlu0 %v1687_v17 }
 0xa40   : > { %v1683_v19 = vpop.xlane.xlu0 %1682 }
 0xa41   : > { %v1690_v22 = vsub.f32 %v1678_v1, %v1683_v19 }
 0xa43   : > { %v1693_v27 = vmul.f32 1.442695, %v1690_v22 }
 0xa44   : > { %v1686_v30 = vpop.xlane.xlu1 %1685 }
 0xa45   : > { %5263 = vpow2.f32 %v1693_v27  ;;  %v1691_v35 = vsub.f32 %v1679_v9, %v1686_v30  ;;  %v1907_v9 = vrot.slane %v5856_v8, %v5851_v7 }
 0xa47   : > { %v1695_v36 = vmul.f32 1.442695, %v1691_v35 }
 0xa48   : > { %v1689_v37 = vpop.xlane.xlu0 %1688 }
 0xa49   : > { %5265 = vpow2.f32 %v1695_v36  ;;  %v1692_v38 = vsub.f32 %v1680_v15, %v1689_v37  ;;  %v1524_v40 = vpop.f32.mrb[30].mxu0 }
 0xa4a   : > { %v5813_v29 = vadd.f32 %v1524_v40, %v5729_v14  ;;  %v4677_v41 = vpop.f32.mrb[31].mxu0 }
 0xa4b   : > { %v1697_v42 = vmul.f32 1.442695, %v1692_v38 }
 0xa4d   : > { %5267 = vpow2.f32 %v1697_v42  ;;  %v1529_v43 = vpop.f32.mrb[32].mxu0 }
 0xa4e   : > { %v5816_v44 = vadd.f32 %v1529_v43, %v5731_v18  ;;  %v4680_v45 = vpop.f32.mrb[33].mxu0  ;;  %v368_v18 = vld [vmem:[%s6451_s3 + $0x18] sm:$0xff] }
 0xa4f   : > { %v5264_v47 = vpop.eup %5263  ;;  %4715 = vmatpush3.msra.mxu1 %v368_v18 }
 0xa50   : > { %v1699_v26 = vsel %vm594_vm6, %v5264_v47, 0.0  ;;  %5044 = vmatprep.subr.bf16.mxu1 %v5377_v2 }
 0xa51   : > { %1700 = vadd.xlane.f32.xlu0 %v1699_v26 }
 0xa53   : > { %v5266_v48 = vpop.eup %5265 }
 0xa54   : > { %v1702_v49 = vsel %vm594_vm6, %v5266_v48, 0.0 }
 0xa55   : > { %1703 = vadd.xlane.f32.xlu1 %v1702_v49 }
 0xa57   : > { %v5268_v50 = vpop.eup %5267 }
 0xa58   : > { %v1705_v14 = vsel %vm594_vm6, %v5268_v50, 0.0 }
 0xa59   : > { %1706 = vadd.xlane.f32.xlu0 %v1705_v14 }
 0xa66   : > { %5164 = vrot.lane.b32.xlu1 %v5512_v32, %s5386_s11 }
 0xa6f   : > { %1718 = vrot.lane.b32.xlu0 %v5516_v33, %s5386_s11 }
 0xa7e   : > { %v1534_v51 = vpop.f32.mrb[34].mxu0 }
 0xa7f   : > { %v1540_v52 = vadd.f32 %v1534_v51, %v5733_v23  ;;  %v4683_v53 = vpop.f32.mrb[35].mxu0 }
 0xa80   : > { %v361_v53 = vld [vmem:[%s6450_s2 + $0x20] sm:$0xff] }
 0xade   : > { %v1701_v54 = vpop.xlane.xlu0 %1700 }
 0xadf   : > { %5269 = vrcp.f32 %v1701_v54  ;;  %v362_v54 = vld [vmem:[%s6450_s2 + $0x28] sm:$0xff] }
 0xae2   : > { %v1704_v55 = vpop.xlane.xlu1 %1703 }
 0xae3   : > { %5271 = vrcp.f32 %v1704_v55  ;;  %v5039_v55 = vpack.c.bf16 %v362_v54, %v361_v53 }
 0xae6   : > { %v5165_v56 = vpop.permute.xlu1 %5164  ;;  %v1707_v32 = vpop.xlane.xlu0 %1706 }
 0xae7   : > { %v5167_v57 = vunpack.i.h.bf16 %v5165_v56  ;;  %v5166_v58 = vunpack.i.l.bf16 %v5165_v56  ;;  %5273 = vrcp.f32 %v1707_v32  ;;  %v363_v56 = vld [vmem:[%s6450_s2 + $0x30] sm:$0xff]  ;;  %v364_v32 = vld [vmem:[%s6450_s2 + $0x38] sm:$0xff] }
 0xae9   : > { %v5036_v33 = vpack.c.bf16 %v5167_v57, %v5166_v58  ;;  %v5270_v59 = vpop.eup %5269  ;;  %v5042_v57 = vpack.c.bf16 %v364_v32, %v363_v56  ;;  %v369_v58 = vld [vmem:[%s6451_s3 + $0x20] sm:$0xff] }
 0xaea   : > { %v1711_v60 = vmul.f32 %v5270_v59, %v5264_v47  ;;  %v1719_v31 = vpop.permute.xlu0 %1718  ;;  %v371_v59 = vld [vmem:[%s6451_s3 + $0x30] sm:$0xff] }
 0xaeb   : > { %5037 = vmatpush3.bf16.msra.mxu0 %v5036_v33  ;;  %v370_v33 = vld [vmem:[%s6451_s3 + $0x28] sm:$0xff] }
 0xaec   : > { %4703 = vmatprep.subr.mxu0 %v5379_v4 }
 0xaed   : > { %v5272_v61 = vpop.eup %5271 }
 0xaee   : > { %v1712_v23 = vmul.f32 %v5272_v61, %v5266_v48 }
 0xaef   : > { %4704 = vmatpush3.msra.mxu0 %v1719_v31  ;;  %v372_v31 = vld [vmem:[%s6451_s3 + $0x38] sm:$0xff] }
 0xaf0   : > { %4706 = vmatmul.mubr.msk.f32.vlgmr.msra.gmra.mrb[36].mxu0 %vm594_vm6, %v1711_v60  ;;  %5038 = vmatprep.subr.bf16.mxu0 %v5377_v2  ;;  %v5045_v60 = vpack.c.bf16 %v370_v33, %v369_v58  ;;  %v5048_v61 = vpack.c.bf16 %v372_v31, %v371_v59 }
 0xaf1   : > { %4708 = vmatprep.mubr.msk.f32.mxu0 %vm5378_vm0, %v5379_v4  ;;  %v5274_v28 = vpop.eup %5273  ;;  %5040 = vmatpush3.bf16.msra.mxu0 %v5039_v55  ;;  %v2066_v55 = vsub.s32 4, %v5584_v21 }
 0xaf2   : > { %v1713_v34 = vmul.f32 %v5274_v28, %v5268_v50  ;;  %5041 = vmatprep.subr.bf16.mxu0 %v5377_v2  ;;  %v374_v28 = vld [vmem:[%s6451_s3 + $0x48] sm:$0xff] }
 0xaf3   : > { %v2067_v56 = vrot.slane %v5856_v8, %v2066_v55 }
 0xaf4   : > { %4709 = vmatmul.mubr.msk.f32.gmra.mrb[38].mxu0 %vm594_vm6, %v1712_v23  ;;  %v373_v23 = vld [vmem:[%s6451_s3 + $0x40] sm:$0xff] }
 0xaf5   : > { %4711 = vmatprep.mubr.msk.f32.mxu0 %vm5378_vm0, %v5379_v4  ;;  %5043 = vmatpush3.bf16.msra.mxu0 %v5042_v57 }
 0xaf6   : > { %5056 = vmatprep.subr.bf16.mxu0 %v5377_v2 }
 0xaf8   : > { %4712 = vmatmul.mubr.msk.f32.gmra.mrb[40].mxu0 %vm594_vm6, %v1713_v34  ;;  %v5051_v34 = vpack.c.bf16 %v374_v28, %v373_v23 }
 0xaf9   : > { %4733 = vmatprep.mubr.msk.f32.mxu0 %vm5378_vm0, %v5379_v4 }
 0xbc3   : > { %v1798_v62 = vpop.f32.mrb[36].mxu0 }
 0xbc4   : > { %v4707_v63 = vpop.f32.mrb[37].mxu0  ;;  %4717 = vmatmul.mubr.msk.f32.vlgmr.msra.gmra.mrb[36].mxu1 %vm471_vm3, %v1798_v62 }
 0xbc5   : > { %4719 = vmatprep.mubr.msk.f32.mxu1 %vm5378_vm0, %v5379_v4  ;;  %5046 = vmatpush3.bf16.msra.mxu1 %v5045_v60 }
 0xbc6   : > { %5047 = vmatprep.subr.bf16.mxu1 %v5377_v2 }
 0xbc7   : > { %v1803_v0 = vpop.f32.mrb[38].mxu0 }
 0xbc8   : > { %v4710_v1 = vpop.f32.mrb[39].mxu0  ;;  %4720 = vmatmul.mubr.msk.f32.gmra.mrb[38].mxu1 %vm471_vm3, %v1803_v0 }
 0xbc9   : > { %4722 = vmatprep.mubr.msk.f32.mxu1 %vm5378_vm0, %v5379_v4  ;;  %5049 = vmatpush3.bf16.msra.mxu1 %v5048_v61 }
 0xbca   : > { %5050 = vmatprep.subr.bf16.mxu1 %v5377_v2 }
 0xbcb   : > { %v1808_v3 = vpop.f32.mrb[40].mxu0 }
 0xbcc   : > { %v4713_v5 = vpop.f32.mrb[41].mxu0  ;;  %4723 = vmatmul.mubr.msk.f32.gmra.mrb[40].mxu1 %vm471_vm3, %v1808_v3 }
 0xbcd   : > { %4758 = vmatprep.mubr.msk.f32.mxu1 %vm5378_vm0, %v5379_v4  ;;  %5052 = vmatpush3.bf16.msra.mxu1 %v5051_v34 }
 0xbce   : > { %5053 = vmatprep.subr.bf16.mxu1 %v5377_v2 }
 0xc97   : > { %v1887_v10 = vpop.f32.mrb[36].mxu1 }
 0xc98   : > { %v1901_v11 = vadd.f32 %v1887_v10, %v5813_v29  ;;  %v4718_v12 = vpop.f32.mrb[37].mxu1 }
 0xc9a   : > { %v1908_v13 = vadd.f32 %v1907_v9, %v1901_v11  ;;  %v5907_v11 = vsub.s32 1, %v5584_v21 }
 0xc9b   : > { %v1892_v15 = vpop.f32.mrb[38].mxu1 }
 0xc9c   : > { %v1902_v17 = vadd.f32 %v1892_v15, %v5816_v44  ;;  %v4721_v19 = vpop.f32.mrb[39].mxu1  ;;  %v1911_v22 = vadd.f32 %v1908_v13, %v5472_v16  ;;  %v5910_v13 = vsub.s32 2, %v5584_v21  ;;  %v1957_v15 = vrot.slane %v5856_v8, %v5907_v11 }
 0xc9e   : > { %v1909_v27 = vadd.f32 %v1907_v9, %v1902_v17  ;;  %v1914_v30 = vsel %vm378_vm2, %v1911_v22, 0.0  ;;  %v1964_v19 = vrot.slane %v5856_v8, %v5910_v13 }
 0xc9f   : > { %1915 = vadd.xlane.f32.xlu1 %v1914_v30  ;;  %v1897_v35 = vpop.f32.mrb[40].mxu1 }
 0xca0   : > { %v1903_v36 = vadd.f32 %v1897_v35, %v1540_v52  ;;  %v4724_v37 = vpop.f32.mrb[41].mxu1  ;;  %v1912_v38 = vadd.f32 %v1909_v27, %v5481_v20 }
 0xca2   : > { %v1910_v40 = vadd.f32 %v1907_v9, %v1903_v36  ;;  %v1917_v29 = vsel %vm378_vm2, %v1912_v38, 0.0 }
 0xca3   : > { %1918 = vadd.xlane.f32.xlu0 %v1917_v29 }
 0xca4   : > { %v1913_v41 = vadd.f32 %v1910_v40, %v5490_v24 }
 0xca6   : > { %v1920_v42 = vsel %vm378_vm2, %v1913_v41, 0.0 }
 0xca7   : > { %1921 = vadd.xlane.f32.xlu1 %v1920_v42 }
 0xd2c   : > { %v1916_v43 = vpop.xlane.xlu1 %1915 }
 0xd2d   : > { %v1924_v16 = vmul.f32 0.03125, %v1916_v43  ;;  %v375_v43 = vld [vmem:[%s6451_s3 + $0x50] sm:$0xff] }
 0xd2f   : > { %v1927_v44 = vsub.f32 %v1911_v22, %v1924_v16  ;;  %v376_v16 = vld [vmem:[%s6451_s3 + $0x58] sm:$0xff] }
 0xd30   : > { %v1919_v45 = vpop.xlane.xlu0 %1918 }
 0xd31   : > { %v1925_v47 = vmul.f32 0.03125, %v1919_v45  ;;  %v1930_v26 = vmul.f32 %v1927_v44, %v1927_v44  ;;  %v1970_v45 = vsub.s32 3, %v5584_v21 }
 0xd33   : > { %v1928_v48 = vsub.f32 %v1912_v38, %v1925_v47  ;;  %v1933_v49 = vsel %vm378_vm2, %v1930_v26, 0.0  ;;  %v1971_v47 = vrot.slane %v5856_v8, %v1970_v45 }
 0xd34   : > { %1934 = vadd.xlane.f32.xlu0 %v1933_v49  ;;  %v1922_v20 = vpop.xlane.xlu1 %1921 }
 0xd35   : > { %v1926_v50 = vmul.f32 0.03125, %v1922_v20  ;;  %v1931_v14 = vmul.f32 %v1928_v48, %v1928_v48 }
 0xd37   : > { %v1929_v18 = vsub.f32 %v1913_v41, %v1926_v50  ;;  %v1936_v51 = vsel %vm378_vm2, %v1931_v14, 0.0 }
 0xd38   : > { %1937 = vadd.xlane.f32.xlu1 %v1936_v51 }
 0xd39   : > { %v1932_v24 = vmul.f32 %v1929_v18, %v1929_v18 }
 0xd3b   : > { %v1939_v52 = vsel %vm378_vm2, %v1932_v24, 0.0 }
 0xd3c   : > { %1940 = vadd.xlane.f32.xlu0 %v1939_v52 }
 0xdc1   : > { %v1935_v62 = vpop.xlane.xlu0 %1934 }
 0xdc2   : > { %v1942_v63 = vmul.f32 0.03125, %v1935_v62 }
 0xdc4   : > { %v1945_v0 = vadd.f32 1e-05, %v1942_v63 }
 0xdc5   : > { %v1938_v1 = vpop.xlane.xlu1 %1937 }
 0xdc6   : > { %5275 = vrsqrt.f32 %v1945_v0  ;;  %v1943_v3 = vmul.f32 0.03125, %v1938_v1 }
 0xdc8   : > { %v1946_v5 = vadd.f32 1e-05, %v1943_v3 }
 0xdc9   : > { %v1941_v9 = vpop.xlane.xlu0 %1940 }
 0xdca   : > { %5277 = vrsqrt.f32 %v1946_v5  ;;  %v1944_v10 = vmul.f32 0.03125, %v1941_v9 }
 0xdcc   : > { %v1947_v12 = vadd.f32 1e-05, %v1944_v10 }
 0xdce   : > { %5279 = vrsqrt.f32 %v1947_v12 }
 0xdd0   : > { %v5276_v17 = vpop.eup %5275 }
 0xdd1   : > { %v1951_v22 = vmul.f32 %v5276_v17, %v1927_v44  ;;  %v5054_v44 = vpack.c.bf16 %v376_v16, %v375_v43  ;;  %v4265_v43 = vld [vmem:[%s6450_s2 + $0x58] sm:$0xff] }
 0xdd3   : > { %v1958_v27 = vmul.f32 %v1957_v15, %v1951_v22  ;;  %5055 = vmatpush3.bf16.msra.mxu1 %v5054_v44 }
 0xdd4   : > { %v5278_v30 = vpop.eup %5277  ;;  %5062 = vmatprep.subr.bf16.mxu1 %v5377_v2 }
 0xdd5   : > { %v1965_v35 = vadd.f32 %v1964_v19, %v1958_v27  ;;  %v1952_v36 = vmul.f32 %v5278_v30, %v1928_v48 }
 0xdd7   : > { %4734 = vmatmul.mubr.msk.f32.vlgmr.msra.gmra.mrb[42].mxu0 %vm378_vm2, %v1965_v35  ;;  %v1959_v37 = vmul.f32 %v1957_v15, %v1952_v36 }
 0xdd8   : > { %v5280_v38 = vpop.eup %5279  ;;  %4736 = vmatprep.mubr.msk.f32.mxu0 %vm5378_vm0, %v5379_v4 }
 0xdd9   : > { %v1966_v40 = vadd.f32 %v1964_v19, %v1959_v37  ;;  %v1953_v29 = vmul.f32 %v5280_v38, %v1929_v18 }
 0xddb   : > { %4737 = vmatmul.mubr.msk.f32.gmra.mrb[44].mxu0 %vm378_vm2, %v1966_v40  ;;  %v1960_v41 = vmul.f32 %v1957_v15, %v1953_v29  ;;  %v4263_v29 = vld [vmem:[%s6450_s2 + $0x48] sm:$0xff] }
 0xddc   : > { %4739 = vmatprep.mubr.msk.f32.mxu0 %vm5378_vm0, %v5379_v4 }
 0xddd   : > { %v1967_v42 = vadd.f32 %v1964_v19, %v1960_v41 }
 0xddf   : > { %4740 = vmatmul.mubr.msk.f32.gmra.mrb[46].mxu0 %vm378_vm2, %v1967_v42 }
 0xde0   : > { %4775 = vmatprep.mubr.msk.f32.mxu0 %vm5378_vm0, %v5379_v4 }
 0xeaa   : > { %v2047_v26 = vpop.f32.mrb[42].mxu0 }
 0xeab   : > { %v2048_v48 = vadd.f32 %v2047_v26, %v1971_v47  ;;  %v4735_v49 = vpop.f32.mrb[43].mxu0 }
 0xead   : > { %v2061_v20 = vmax.f32 %v2048_v48, 0.0 }
 0xeae   : > { %v2052_v50 = vpop.f32.mrb[44].mxu0 }
 0xeaf   : > { %v2053_v14 = vadd.f32 %v2052_v50, %v1971_v47  ;;  %v4738_v18 = vpop.f32.mrb[45].mxu0  ;;  %4759 = vmatmul.mubr.msk.f32.vlgmr.msra.gmra.mrb[42].mxu1 %vm2068_vm9, %v2061_v20 }
 0xeb0   : > { %4761 = vmatprep.mubr.msk.f32.mxu1 %vm5378_vm0, %v5379_v4  ;;  %v2202_v18 = vsub.s32 5, %v5584_v21 }
 0xeb1   : > { %v2062_v51 = vmax.f32 %v2053_v14, 0.0 }
 0xeb2   : > { %v2057_v24 = vpop.f32.mrb[46].mxu0 }
 0xeb3   : > { %v2058_v52 = vadd.f32 %v2057_v24, %v1971_v47  ;;  %v4741_v53 = vpop.f32.mrb[47].mxu0  ;;  %4762 = vmatmul.mubr.msk.f32.gmra.mrb[44].mxu1 %vm2068_vm9, %v2062_v51  ;;  %v2209_v24 = vsub.s32 6, %v5584_v21  ;;  %v4036_v21 = vld [vmem:[%s6453_s5 + $0x8] sm:$0xff] }
 0xeb4   : > { %4764 = vmatprep.mubr.msk.f32.mxu1 %vm5378_vm0, %v5379_v4 }
 0xeb5   : > { %v2063_v54 = vmax.f32 %v2058_v52, 0.0  ;;  %v2203_v52 = vrot.slane %v5856_v8, %v2202_v18 }
 0xeb7   : > { %4765 = vmatmul.mubr.msk.f32.gmra.mrb[46].mxu1 %vm2068_vm9, %v2063_v54  ;;  %v2210_v54 = vrot.slane %v5856_v8, %v2209_v24 }
 0xeb8   : > { %4790 = vmatprep.mubr.msk.f32.mxu1 %vm5378_vm0, %v5379_v4 }
 0xf82   : > { %v2144_v32 = vpop.f32.mrb[42].mxu1 }
 0xf83   : > { %v2145_v57 = vadd.f32 %v2144_v32, %v2067_v56  ;;  %v4760_v58 = vpop.f32.mrb[43].mxu1 }
 0xf85   : > { %v2158_v33 = vadd.f32 %v2145_v57, %v1965_v35 }
 0xf86   : > { %v2149_v59 = vpop.f32.mrb[44].mxu1 }
 0xf87   : > { %v2150_v60 = vadd.f32 %v2149_v59, %v2067_v56  ;;  %v4763_v31 = vpop.f32.mrb[45].mxu1  ;;  %v2161_v61 = vsel %vm378_vm2, %v2158_v33, 0.0 }
 0xf88   : > { %2162 = vadd.xlane.f32.xlu1 %v2161_v61 }
 0xf89   : > { %v2159_v23 = vadd.f32 %v2150_v60, %v1966_v40  ;;  %v4262_v40 = vld [vmem:[%s6450_s2 + $0x40] sm:$0xff] }
 0xf8a   : > { %v2154_v28 = vpop.f32.mrb[46].mxu1  ;;  %v5057_v41 = vpack.c.bf16 %v4263_v29, %v4262_v40 }
 0xf8b   : > { %v2155_v34 = vadd.f32 %v2154_v28, %v2067_v56  ;;  %v4766_v62 = vpop.f32.mrb[47].mxu1  ;;  %v2164_v63 = vsel %vm378_vm2, %v2159_v23, 0.0 }
 0xf8c   : > { %2165 = vadd.xlane.f32.xlu0 %v2164_v63  ;;  %5058 = vmatpush3.bf16.msra.mxu0 %v5057_v41 }
 0xf8d   : > { %v2160_v0 = vadd.f32 %v2155_v34, %v1967_v42  ;;  %5059 = vmatprep.subr.bf16.mxu0 %v5377_v2  ;;  %v4264_v42 = vld [vmem:[%s6450_s2 + $0x50] sm:$0xff] }
 0xf8e   : > { %v5060_v16 = vpack.c.bf16 %v4265_v43, %v4264_v42 }
 0xf8f   : > { %v2167_v1 = vsel %vm378_vm2, %v2160_v0, 0.0 }
 0xf90   : > { %2168 = vadd.xlane.f32.xlu1 %v2167_v1  ;;  %5061 = vmatpush3.bf16.msra.mxu0 %v5060_v16 }
 0xf91   : > { %5066 = vmatprep.subr.bf16.mxu0 %v5377_v2 }
0x1015   : > { %v2163_v3 = vpop.xlane.xlu1 %2162 }
0x1016   : > { %v2170_v5 = vmul.f32 0.03125, %v2163_v3 }
0x1018   : > { %v2173_v9 = vsub.f32 %v2158_v33, %v2170_v5 }
0x1019   : > { %v2166_v10 = vpop.xlane.xlu0 %2165 }
0x101a   : > { %v2171_v12 = vmul.f32 0.03125, %v2166_v10  ;;  %v2176_v15 = vmul.f32 %v2173_v9, %v2173_v9 }
0x101c   : > { %v2174_v17 = vsub.f32 %v2159_v23, %v2171_v12  ;;  %v2179_v19 = vsel %vm378_vm2, %v2176_v15, 0.0 }
0x101d   : > { %2180 = vadd.xlane.f32.xlu0 %v2179_v19  ;;  %v2169_v22 = vpop.xlane.xlu1 %2168 }
0x101e   : > { %v2172_v27 = vmul.f32 0.03125, %v2169_v22  ;;  %v2177_v30 = vmul.f32 %v2174_v17, %v2174_v17 }
0x1020   : > { %v2175_v35 = vsub.f32 %v2160_v0, %v2172_v27  ;;  %v2182_v36 = vsel %vm378_vm2, %v2177_v30, 0.0 }
0x1021   : > { %2183 = vadd.xlane.f32.xlu1 %v2182_v36 }
0x1022   : > { %v2178_v37 = vmul.f32 %v2175_v35, %v2175_v35 }
0x1024   : > { %v2185_v38 = vsel %vm378_vm2, %v2178_v37, 0.0 }
0x1025   : > { %2186 = vadd.xlane.f32.xlu0 %v2185_v38 }
0x10aa   : > { %v2181_v44 = vpop.xlane.xlu0 %2180 }
0x10ab   : > { %v2188_v47 = vmul.f32 0.03125, %v2181_v44 }
0x10ad   : > { %v2191_v26 = vadd.f32 1e-05, %v2188_v47 }
0x10ae   : > { %v2184_v48 = vpop.xlane.xlu1 %2183 }
0x10af   : > { %5281 = vrsqrt.f32 %v2191_v26  ;;  %v2189_v49 = vmul.f32 0.03125, %v2184_v48 }
0x10b1   : > { %v2192_v20 = vadd.f32 1e-05, %v2189_v49 }
0x10b2   : > { %v2187_v50 = vpop.xlane.xlu0 %2186 }
0x10b3   : > { %5283 = vrsqrt.f32 %v2192_v20  ;;  %v2190_v14 = vmul.f32 0.03125, %v2187_v50 }
0x10b5   : > { %v2193_v51 = vadd.f32 1e-05, %v2190_v14 }
0x10b7   : > { %5285 = vrsqrt.f32 %v2193_v51 }
0x10b9   : > { %v5282_v53 = vpop.eup %5281 }
0x10ba   : > { %v2197_v56 = vmul.f32 %v5282_v53, %v2173_v9 }
0x10bc   : > { %v2204_v32 = vmul.f32 %v2203_v52, %v2197_v56 }
0x10bd   : > { %v5284_v57 = vpop.eup %5283 }
0x10be   : > { %v5977_v58 = vadd.f32 %v2210_v54, %v2204_v32  ;;  %v2198_v33 = vmul.f32 %v5284_v57, %v2174_v17 }
0x10c0   : > { %4776 = vmatmul.mubr.msk.f32.vlgmr.msra.gmra.mrb[48].mxu0 %vm378_vm2, %v5977_v58  ;;  %v2205_v59 = vmul.f32 %v2203_v52, %v2198_v33 }
0x10c1   : > { %v5286_v60 = vpop.eup %5285  ;;  %4778 = vmatprep.mubr.msk.f32.mxu0 %vm5378_vm0, %v5379_v4 }
0x10c2   : > { %v5983_v31 = vadd.f32 %v2210_v54, %v2205_v59  ;;  %v2199_v61 = vmul.f32 %v5286_v60, %v2175_v35 }
0x10c4   : > { %4779 = vmatmul.mubr.msk.f32.gmra.mrb[50].mxu0 %vm378_vm2, %v5983_v31  ;;  %v2206_v8 = vmul.f32 %v2203_v52, %v2199_v61 }
0x10c5   : > { %4781 = vmatprep.mubr.msk.f32.mxu0 %vm5378_vm0, %v5379_v4 }
0x10c6   : > { %v5989_v23 = vadd.f32 %v2210_v54, %v2206_v8 }
0x10c8   : > { %4782 = vmatmul.mubr.msk.f32.gmra.mrb[52].mxu0 %vm378_vm2, %v5989_v23 }
0x10c9   : > { %4805 = vmatprep.mubr.msk.f32.mxu0 %vm5378_vm0, %v5379_v4 }
0x1193   : > { %v5995_v28 = vpop.f32.mrb[48].mxu0 }
0x1194   : > { %v4777_v34 = vpop.f32.mrb[49].mxu0  ;;  %v5999_v62 = vmul.f32 %v5995_v28, %v5995_v28 }
0x1196   : > { %2586 = vrot.lane.b32.xlu1 %v5999_v62, %s5380_s23  ;;  %v2330_v22 = vsel %vm471_vm3, %v5999_v62, 0.0 }
0x1197   : > { %v6003_v63 = vpop.f32.mrb[50].mxu0 }
0x1198   : > { %v4780_v0 = vpop.f32.mrb[51].mxu0  ;;  %v6007_v1 = vmul.f32 %v6003_v63, %v6003_v63  ;;  %v6011_v3 = vpack.i.bf16 %v6003_v63, %v5995_v28 }
0x119a   : > { %2588 = vrot.lane.b32.xlu0 %v6007_v1, %s5380_s23  ;;  %v2333_v36 = vsel %vm471_vm3, %v6007_v1, 0.0 }
0x119b   : > { %v6015_v5 = vpop.f32.mrb[52].mxu0 }
0x119c   : > { %v4783_v9 = vpop.f32.mrb[53].mxu0  ;;  %v6019_v10 = vmul.f32 %v6015_v5, %v6015_v5 }
0x119e   : > { %2590 = vrot.lane.b32.xlu1 %v6019_v10, %s5380_s23  ;;  %v2336_v35 = vsel %vm471_vm3, %v6019_v10, 0.0 }
0x1208   : > { %v2587_v12 = vpop.permute.xlu1 %2586 }
0x1209   : > { %v2595_v15 = vsel %vm471_vm3, %v2587_v12, 0.0 }
0x120a   : > { %2596 = vadd.xlane.f32.xlu1 %v2595_v15 }
0x120c   : > { %v2589_v17 = vpop.permute.xlu0 %2588 }
0x120d   : > { %v2598_v19 = vsel %vm471_vm3, %v2589_v17, 0.0 }
0x120e   : > { %2599 = vadd.xlane.f32.xlu0 %v2598_v19  ;;  %2331 = vadd.xlane.f32.xlu1 %v2330_v22 }
0x1210   : > { %v2591_v27 = vpop.permute.xlu1 %2590 }
0x1211   : > { %v2601_v30 = vsel %vm471_vm3, %v2591_v27, 0.0 }
0x1212   : > { %2602 = vadd.xlane.f32.xlu0 %v2601_v30  ;;  %2337 = vadd.xlane.f32.xlu1 %v2336_v35 }
0x1216   : > { %2334 = vadd.xlane.f32.xlu0 %v2333_v36 }
0x1297   : > { %v2597_v37 = vpop.xlane.xlu1 %2596 }
0x1298   : > { %v2604_v38 = vmax.f32 %v2597_v37, 1e-24 }
0x129a   : > { %5287 = vrsqrt.f32 %v2604_v38 }
0x129b   : > { %v2600_v40 = vpop.xlane.xlu0 %2599  ;;  %v2332_v41 = vpop.xlane.xlu1 %2331 }
0x129c   : > { %v2605_v29 = vmax.f32 %v2600_v40, 1e-24  ;;  %v2339_v43 = vmax.f32 %v2332_v41, 1e-24 }
0x129e   : > { %5289 = vrsqrt.f32 %v2605_v29 }
0x129f   : > { %v2603_v42 = vpop.xlane.xlu0 %2602  ;;  %v2338_v48 = vpop.xlane.xlu1 %2337 }
0x12a0   : > { %v2606_v16 = vmax.f32 %v2603_v42, 1e-24  ;;  %v2341_v14 = vmax.f32 %v2338_v48, 1e-24 }
0x12a2   : > { %5291 = vrsqrt.f32 %v2606_v16 }
0x12a3   : > { %v2335_v44 = vpop.xlane.xlu0 %2334  ;;  %5293 = vrsqrt.f32 %v2339_v43 }
0x12a4   : > { %v2340_v47 = vmax.f32 %v2335_v44, 1e-24  ;;  %v5288_v26 = vpop.eup %5287 }
0x12a5   : > { %v2610_v20 = vmul.f32 %v5288_v26, %v5995_v28 }
0x12a6   : > { %5295 = vrsqrt.f32 %v2340_v47 }
0x12a7   : > { %5297 = vrsqrt.f32 %v2341_v14 }
0x12a8   : > { %v5290_v49 = vpop.eup %5289 }
0x12a9   : > { %v2611_v50 = vmul.f32 %v5290_v49, %v6003_v63 }
0x12ab   : > { %v5168_v51 = vpack.i.bf16 %v2611_v50, %v2610_v20 }
0x12ac   : > { %v5292_v52 = vpop.eup %5291 }
0x12ad   : > { %5169 = vrot.lane.b32.xlu0 %v5168_v51, %s5380_s23  ;;  %v2612_v53 = vmul.f32 %v5292_v52, %v6015_v5  ;;  %v5294_v54 = vpop.eup %5293 }
0x12ae   : > { %v2345_v32 = vmul.f32 %v5294_v54, %v5995_v28 }
0x12af   : > { %2626 = vrot.lane.b32.xlu1 %v2612_v53, %s5380_s23 }
0x12b0   : > { %v5296_v56 = vpop.eup %5295 }
0x12b1   : > { %v2346_v57 = vmul.f32 %v5296_v56, %v6003_v63  ;;  %2615 = vrot.lane.b32.xlu0 %v6003_v63, %s5380_s23  ;;  %v5298_v59 = vpop.eup %5297 }
0x12b2   : > { %v2347_v60 = vmul.f32 %v5298_v59, %v6015_v5 }
0x12b3   : > { %2613 = vrot.lane.b32.xlu1 %v5995_v28, %s5380_s23  ;;  %v5063_v33 = vpack.c.bf16 %v2346_v57, %v2345_v32 }
0x12b5   : > { %5065 = vmatpush3.bf16.xpose.msk.msra.mxu1 %vm5544_vm4, %v5063_v33 }
0x12b6   : > { %4788 = vmatprep.subr.mxu1 %v5379_v4 }
0x12b7   : > { %2617 = vrot.lane.b32.xlu1 %v6015_v5, %s5380_s23  ;;  %s4201_s23 = sshll.u32 %s6464_s22, 3 }
0x12b8   : > { %s249_s18 = scalar_lea.vmem %s6454_s6, %s4201_s23 }
0x12bd   : > { %4789 = vmatpush3.xpose.msk.msra.mxu1 %vm471_vm3, %v2347_v60 }
0x12be   : > { %5069 = vmatprep.subr.bf16.mxu1 %v5377_v2 }
0x12c0   : > { %4791 = vmatmul.mubr.msk.f32.vlgmr.msra.gmra.mrb[48].mxu1 %vm471_vm3, %v5995_v28 }
0x12c1   : > { %4793 = vmatprep.mubr.msk.f32.mxu1 %vm5378_vm0, %v5379_v4 }
0x12c4   : > { %4794 = vmatmul.mubr.msk.f32.gmra.mrb[50].mxu1 %vm471_vm3, %v6003_v63 }
0x12c5   : > { %4796 = vmatprep.mubr.msk.f32.mxu1 %vm5378_vm0, %v5379_v4 }
0x12c8   : > { %4797 = vmatmul.mubr.msk.f32.gmra.mrb[52].mxu1 %vm471_vm3, %v6015_v5 }
0x12c9   : > { %4820 = vmatprep.mubr.msk.f32.mxu1 %vm5378_vm0, %v5379_v4 }
0x131f   : > { %v5170_v61 = vpop.permute.xlu0 %5169 }
0x1320   : > { %v5172_v8 = vunpack.i.h.bf16 %v5170_v61  ;;  %v5171_v34 = vunpack.i.l.bf16 %v5170_v61 }
0x1321   : > { %v2627_v9 = vpop.permute.xlu1 %2626 }
0x1322   : > { %v5070_v0 = vpack.c.bf16 %v5172_v8, %v5171_v34 }
0x1323   : > { %v2616_v15 = vpop.permute.xlu0 %2615 }
0x1324   : > { %5072 = vmatpush3.bf16.xpose.msk.msra.mxu1 %vm5544_vm4, %v5070_v0 }
0x1325   : > { %4818 = vmatprep.subr.mxu1 %v5379_v4  ;;  %v2614_v12 = vpop.permute.xlu1 %2613 }
0x1329   : > { %v2618_v17 = vpop.permute.xlu1 %2617 }
0x132c   : > { %4819 = vmatpush3.xpose.msk.msra.mxu1 %vm471_vm3, %v2627_v9 }
0x132d   : > { %4844 = vmatprep.subr.mxu1 %v5379_v4 }
0x132f   : > { %4821 = vmatmul.mubr.msk.f32.vlgmr.msra.gmra.mrb[54].mxu1 %vm471_vm3, %v2614_v12 }
0x1330   : > { %4823 = vmatprep.mubr.msk.f32.mxu1 %vm5378_vm0, %v5379_v4 }
0x1333   : > { %4824 = vmatmul.mubr.msk.f32.gmra.mrb[56].mxu1 %vm471_vm3, %v2616_v15 }
0x1334   : > { %4826 = vmatprep.mubr.msk.f32.mxu1 %vm5378_vm0, %v5379_v4 }
0x1337   : > { %4827 = vmatmul.mubr.msk.f32.gmra.mrb[58].mxu1 %vm471_vm3, %v2618_v17 }
0x1338   : > { %4846 = vmatprep.mubr.msk.f32.mxu1 %vm5378_vm0, %v5379_v4 }
0x1393   : > { %v2432_v19 = vpop.f32.mrb[48].mxu1 }
0x1394   : > { %v2446_v22 = vmul.f32 0.35355338, %v2432_v19  ;;  %v4792_v27 = vpop.f32.mrb[49].mxu1 }
0x1396   : > { %v2449_v30 = vsel %vm5587_vm5, -50000.0, %v2446_v22 }
0x1397   : > { %v2437_v35 = vpop.f32.mrb[50].mxu1  ;;  %v2452_v36 = vsel %vm594_vm6, %v2449_v30, -inf }
0x1398   : > { %v2447_v37 = vmul.f32 0.35355338, %v2437_v35  ;;  %2453 = vmax.xlane.f32.xlu0 %v2452_v36  ;;  %v4795_v38 = vpop.f32.mrb[51].mxu1 }
0x139a   : > { %v2450_v40 = vsel %vm5595_vm7, -50000.0, %v2447_v37 }
0x139b   : > { %v2442_v29 = vpop.f32.mrb[52].mxu1  ;;  %v2455_v41 = vsel %vm594_vm6, %v2450_v40, -inf }
0x139c   : > { %v2448_v42 = vmul.f32 0.35355338, %v2442_v29  ;;  %2456 = vmax.xlane.f32.xlu1 %v2455_v41  ;;  %v4798_v43 = vpop.f32.mrb[53].mxu1 }
0x139e   : > { %v2451_v16 = vsel %vm5603_vm8, -50000.0, %v2448_v42 }
0x139f   : > { %v2458_v44 = vsel %vm594_vm6, %v2451_v16, -inf }
0x13a0   : > { %2459 = vmax.xlane.f32.xlu0 %v2458_v44 }
0x1402   : > { %v2706_v47 = vpop.f32.mrb[54].mxu1 }
0x1403   : > { %v2720_v26 = vmul.f32 0.35355338, %v2706_v47  ;;  %v4822_v48 = vpop.f32.mrb[55].mxu1 }
0x1405   : > { %v2723_v49 = vsel %vm5587_vm5, -50000.0, %v2720_v26 }
0x1406   : > { %v2711_v20 = vpop.f32.mrb[56].mxu1  ;;  %v2726_v50 = vsel %vm594_vm6, %v2723_v49, -inf }
0x1407   : > { %v2721_v14 = vmul.f32 0.35355338, %v2711_v20  ;;  %2727 = vmax.xlane.f32.xlu0 %v2726_v50  ;;  %v4825_v51 = vpop.f32.mrb[57].mxu1 }
0x1409   : > { %v2724_v52 = vsel %vm5595_vm7, -50000.0, %v2721_v14 }
0x140a   : > { %v2716_v53 = vpop.f32.mrb[58].mxu1  ;;  %v2729_v54 = vsel %vm594_vm6, %v2724_v52, -inf }
0x140b   : > { %v2722_v56 = vmul.f32 0.35355338, %v2716_v53  ;;  %2730 = vmax.xlane.f32.xlu1 %v2729_v54  ;;  %v4828_v32 = vpop.f32.mrb[59].mxu1 }
0x140d   : > { %v2725_v57 = vsel %vm5603_vm8, -50000.0, %v2722_v56 }
0x140e   : > { %v2732_v33 = vsel %vm594_vm6, %v2725_v57, -inf }
0x140f   : > { %2733 = vmax.xlane.f32.xlu0 %v2732_v33 }
0x1425   : > { %v2454_v59 = vpop.xlane.xlu0 %2453 }
0x1426   : > { %v2461_v60 = vsub.f32 %v2449_v30, %v2454_v59 }
0x1428   : > { %v2464_v61 = vmul.f32 1.442695, %v2461_v60 }
0x1429   : > { %v2457_v8 = vpop.xlane.xlu1 %2456 }
0x142a   : > { %5299 = vpow2.f32 %v2464_v61  ;;  %v2462_v34 = vsub.f32 %v2450_v40, %v2457_v8 }
0x142c   : > { %v2466_v0 = vmul.f32 1.442695, %v2462_v34 }
0x142d   : > { %v2460_v9 = vpop.xlane.xlu0 %2459 }
0x142e   : > { %5301 = vpow2.f32 %v2466_v0  ;;  %v2463_v12 = vsub.f32 %v2451_v16, %v2460_v9 }
0x1430   : > { %v2468_v15 = vmul.f32 1.442695, %v2463_v12 }
0x1432   : > { %5303 = vpow2.f32 %v2468_v15 }
0x1434   : > { %v5300_v17 = vpop.eup %5299 }
0x1435   : > { %v2470_v19 = vsel %vm594_vm6, %v5300_v17, 0.0 }
0x1436   : > { %2471 = vadd.xlane.f32.xlu1 %v2470_v19 }
0x1438   : > { %v5302_v22 = vpop.eup %5301 }
0x1439   : > { %v2473_v27 = vsel %vm594_vm6, %v5302_v22, 0.0 }
0x143a   : > { %2474 = vadd.xlane.f32.xlu0 %v2473_v27 }
0x143c   : > { %v5304_v35 = vpop.eup %5303 }
0x143d   : > { %v2476_v30 = vsel %vm594_vm6, %v5304_v35, 0.0 }
0x143e   : > { %2477 = vadd.xlane.f32.xlu1 %v2476_v30 }
0x144f   : > { %2489 = vrot.lane.b32.xlu1 %v6015_v5, %s5381_s24 }
0x1450   : > { %5174 = vrot.lane.b32.xlu0 %v6011_v3, %s5381_s24 }
0x1494   : > { %v2728_v36 = vpop.xlane.xlu0 %2727 }
0x1495   : > { %v2735_v37 = vsub.f32 %v2723_v49, %v2728_v36 }
0x1497   : > { %v2738_v38 = vmul.f32 1.442695, %v2735_v37  ;;  %v4270_v37 = vld [vmem:[%s6451_s3 + $0x60] sm:$0xff] }
0x1498   : > { %v2731_v40 = vpop.xlane.xlu1 %2730 }
0x1499   : > { %5305 = vpow2.f32 %v2738_v38  ;;  %v2736_v29 = vsub.f32 %v2724_v52, %v2731_v40 }
0x149b   : > { %v2740_v41 = vmul.f32 1.442695, %v2736_v29 }
0x149c   : > { %v2734_v42 = vpop.xlane.xlu0 %2733 }
0x149d   : > { %5307 = vpow2.f32 %v2740_v41  ;;  %v2737_v43 = vsub.f32 %v2725_v57, %v2734_v42 }
0x149f   : > { %v2742_v16 = vmul.f32 1.442695, %v2737_v43 }
0x14a1   : > { %5309 = vpow2.f32 %v2742_v16 }
0x14a3   : > { %v5306_v44 = vpop.eup %5305 }
0x14a4   : > { %v2744_v47 = vsel %vm594_vm6, %v5306_v44, 0.0 }
0x14a5   : > { %2745 = vadd.xlane.f32.xlu0 %v2744_v47  ;;  %v4271_v47 = vld [vmem:[%s6451_s3 + $0x68] sm:$0xff] }
0x14a6   : > { %4845 = vmatpush3.msra.mxu1 %v4271_v47 }
0x14a7   : > { %v6103_v26 = vpop.eup %5307  ;;  %5076 = vmatprep.subr.bf16.mxu1 %v5377_v2 }
0x14a8   : > { %v2747_v48 = vsel %vm594_vm6, %v6103_v26, 0.0 }
0x14a9   : > { %2748 = vadd.xlane.f32.xlu1 %v2747_v48 }
0x14ab   : > { %v6107_v49 = vpop.eup %5309 }
0x14ac   : > { %v2750_v20 = vsel %vm594_vm6, %v6107_v49, 0.0 }
0x14ad   : > { %2751 = vadd.xlane.f32.xlu1 %v2750_v20 }
0x14bb   : > { %5179 = vrot.lane.b32.xlu0 %v6011_v3, %s5382_s25 }
0x14be   : > { %2763 = vrot.lane.b32.xlu1 %v6015_v5, %s5382_s25 }
0x14bf   : > { %3035 = vrot.lane.b32.xlu0 %v5999_v62, %s5383_s26 }
0x14c2   : > { %3037 = vrot.lane.b32.xlu1 %v6007_v1, %s5383_s26 }
0x14c3   : > { %3039 = vrot.lane.b32.xlu0 %v6019_v10, %s5383_s26  ;;  %v2472_v50 = vpop.xlane.xlu1 %2471 }
0x14c4   : > { %5311 = vrcp.f32 %v2472_v50 }
0x14c7   : > { %v2475_v14 = vpop.xlane.xlu0 %2474 }
0x14c8   : > { %5313 = vrcp.f32 %v2475_v14 }
0x14cb   : > { %v5175_v51 = vpop.permute.xlu0 %5174  ;;  %v2478_v52 = vpop.xlane.xlu1 %2477 }
0x14cc   : > { %v5177_v53 = vunpack.i.h.bf16 %v5175_v51  ;;  %v5176_v54 = vunpack.i.l.bf16 %v5175_v51  ;;  %5315 = vrcp.f32 %v2478_v52 }
0x14ce   : > { %v5067_v56 = vpack.c.bf16 %v5177_v53, %v5176_v54  ;;  %v5312_v32 = vpop.eup %5311 }
0x14cf   : > { %v2482_v57 = vmul.f32 %v5312_v32, %v5300_v17  ;;  %v2490_v33 = vpop.permute.xlu1 %2489 }
0x14d0   : > { %5068 = vmatpush3.bf16.msra.mxu0 %v5067_v56 }
0x14d1   : > { %4803 = vmatprep.subr.mxu0 %v5379_v4 }
0x14d2   : > { %v5314_v59 = vpop.eup %5313 }
0x14d3   : > { %v2483_v60 = vmul.f32 %v5314_v59, %v5302_v22 }
0x14d4   : > { %4804 = vmatpush3.msra.mxu0 %v2490_v33 }
0x14d5   : > { %4806 = vmatmul.mubr.msk.f32.vlgmr.msra.gmra.mrb[54].mxu0 %vm594_vm6, %v2482_v57  ;;  %5073 = vmatprep.subr.bf16.mxu0 %v5377_v2 }
0x14d6   : > { %4808 = vmatprep.mubr.msk.f32.mxu0 %vm5378_vm0, %v5379_v4  ;;  %v5316_v61 = vpop.eup %5315 }
0x14d7   : > { %v2484_v8 = vmul.f32 %v5316_v61, %v5304_v35 }
0x14d9   : > { %4809 = vmatmul.mubr.msk.f32.gmra.mrb[56].mxu0 %vm594_vm6, %v2483_v60 }
0x14da   : > { %4811 = vmatprep.mubr.msk.f32.mxu0 %vm5378_vm0, %v5379_v4 }
0x14dd   : > { %4812 = vmatmul.mubr.msk.f32.gmra.mrb[58].mxu0 %vm594_vm6, %v2484_v8 }
0x14de   : > { %4835 = vmatprep.mubr.msk.f32.mxu0 %vm5378_vm0, %v5379_v4 }
0x1532   : > { %v2746_v34 = vpop.xlane.xlu0 %2745 }
0x1533   : > { %5317 = vrcp.f32 %v2746_v34 }
0x1536   : > { %v5180_v0 = vpop.permute.xlu0 %5179  ;;  %v2749_v9 = vpop.xlane.xlu1 %2748 }
0x1537   : > { %v5182_v12 = vunpack.i.h.bf16 %v5180_v0  ;;  %v5181_v15 = vunpack.i.l.bf16 %v5180_v0  ;;  %5319 = vrcp.f32 %v2749_v9 }
0x1539   : > { %v5074_v17 = vpack.c.bf16 %v5182_v12, %v5181_v15 }
0x153a   : > { %v3036_v19 = vpop.permute.xlu0 %3035  ;;  %v2752_v22 = vpop.xlane.xlu1 %2751 }
0x153b   : > { %v3044_v27 = vsel %vm471_vm3, %v3036_v19, 0.0  ;;  %5321 = vrcp.f32 %v2752_v22  ;;  %5075 = vmatpush3.bf16.msra.mxu0 %v5074_v17 }
0x153c   : > { %3045 = vadd.xlane.f32.xlu1 %v3044_v27  ;;  %4833 = vmatprep.subr.mxu0 %v5379_v4 }
0x153d   : > { %v5318_v35 = vpop.eup %5317 }
0x153e   : > { %v2756_v30 = vmul.f32 %v5318_v35, %v5306_v44  ;;  %v2764_v36 = vpop.permute.xlu1 %2763  ;;  %v3040_v42 = vpop.permute.xlu0 %3039 }
0x153f   : > { %4834 = vmatpush3.msra.mxu0 %v2764_v36  ;;  %v3050_v44 = vsel %vm471_vm3, %v3040_v42, 0.0 }
0x1540   : > { %4836 = vmatmul.mubr.msk.f32.vlgmr.msra.gmra.mrb[60].mxu0 %vm594_vm6, %v2756_v30  ;;  %4855 = vmatprep.subr.mxu0 %v5379_v4 }
0x1541   : > { %v5320_v38 = vpop.eup %5319  ;;  %4838 = vmatprep.mubr.msk.f32.mxu0 %vm5378_vm0, %v5379_v4  ;;  %4856 = vmatpush3.msra.mxu0 %v4270_v37 }
0x1542   : > { %v3038_v40 = vpop.permute.xlu1 %3037  ;;  %v2757_v29 = vmul.f32 %v5320_v38, %v6103_v26  ;;  %5080 = vmatprep.subr.bf16.mxu0 %v5377_v2 }
0x1543   : > { %v3047_v41 = vsel %vm471_vm3, %v3038_v40, 0.0 }
0x1544   : > { %4839 = vmatmul.mubr.msk.f32.gmra.mrb[62].mxu0 %vm594_vm6, %v2757_v29  ;;  %3048 = vadd.xlane.f32.xlu0 %v3047_v41 }
0x1545   : > { %v5322_v43 = vpop.eup %5321  ;;  %4841 = vmatprep.mubr.msk.f32.mxu0 %vm5378_vm0, %v5379_v4 }
0x1546   : > { %v2758_v16 = vmul.f32 %v5322_v43, %v6107_v49 }
0x1548   : > { %4842 = vmatmul.mubr.msk.f32.gmra.mrb[64].mxu0 %vm594_vm6, %v2758_v16  ;;  %3051 = vadd.xlane.f32.xlu0 %v3050_v44 }
0x1549   : > { %4857 = vmatprep.mubr.msk.f32.mxu0 %vm5378_vm0, %v5379_v4 }
0x15a8   : > { %v2569_v26 = vpop.f32.mrb[54].mxu0 }
0x15a9   : > { %v4807_v48 = vpop.f32.mrb[55].mxu0  ;;  %4858 = vmatmul.mubr.msk.f32.vlgmr.msra.gmra.mrb[66].mxu0 %vm471_vm3, %v2569_v26 }
0x15aa   : > { %4860 = vmatprep.mubr.msk.f32.mxu0 %vm5378_vm0, %v5379_v4 }
0x15ac   : > { %v2574_v49 = vpop.f32.mrb[56].mxu0 }
0x15ad   : > { %v4810_v20 = vpop.f32.mrb[57].mxu0  ;;  %4861 = vmatmul.mubr.msk.f32.gmra.mrb[68].mxu0 %vm471_vm3, %v2574_v49 }
0x15ae   : > { %4863 = vmatprep.mubr.msk.f32.mxu0 %vm5378_vm0, %v5379_v4 }
0x15b0   : > { %v2579_v50 = vpop.f32.mrb[58].mxu0 }
0x15b1   : > { %v4813_v14 = vpop.f32.mrb[59].mxu0  ;;  %4864 = vmatmul.mubr.msk.f32.gmra.mrb[70].mxu0 %vm471_vm3, %v2579_v50 }
0x15b2   : > { %4887 = vmatprep.mubr.msk.f32.mxu0 %vm5378_vm0, %v5379_v4 }
0x15c9   : > { %v3046_v51 = vpop.xlane.xlu1 %3045 }
0x15ca   : > { %v3053_v52 = vmax.f32 %v3046_v51, 1e-24 }
0x15cc   : > { %5323 = vrsqrt.f32 %v3053_v52 }
0x15d1   : > { %v3049_v53 = vpop.xlane.xlu0 %3048 }
0x15d2   : > { %v3054_v54 = vmax.f32 %v3049_v53, 1e-24 }
0x15d4   : > { %5325 = vrsqrt.f32 %v3054_v54 }
0x15d5   : > { %v3052_v56 = vpop.xlane.xlu0 %3051 }
0x15d6   : > { %v3055_v32 = vmax.f32 %v3052_v56, 1e-24  ;;  %v5324_v57 = vpop.eup %5323 }
0x15d7   : > { %v3059_v59 = vmul.f32 %v5324_v57, %v5995_v28 }
0x15d8   : > { %5327 = vrsqrt.f32 %v3055_v32 }
0x15de   : > { %v5326_v33 = vpop.eup %5325 }
0x15df   : > { %v3060_v60 = vmul.f32 %v5326_v33, %v6003_v63 }
0x15e1   : > { %v5183_v61 = vpack.i.bf16 %v3060_v60, %v3059_v59 }
0x15e2   : > { %v5328_v8 = vpop.eup %5327 }
0x15e3   : > { %5184 = vrot.lane.b32.xlu1 %v5183_v61, %s5383_s26  ;;  %v3061_v34 = vmul.f32 %v5328_v8, %v6015_v5 }
0x15e5   : > { %3075 = vrot.lane.b32.xlu0 %v3061_v34, %s5383_s26 }
0x15e7   : > { %3062 = vrot.lane.b32.xlu1 %v5995_v28, %s5383_s26 }
0x15e9   : > { %3066 = vrot.lane.b32.xlu0 %v6015_v5, %s5383_s26 }
0x15eb   : > { %3064 = vrot.lane.b32.xlu1 %v6003_v63, %s5383_s26 }
0x15ed   : > { %3400 = vrot.lane.b32.xlu0 %v6007_v1, %s5384_s7 }
0x15ef   : > { %3398 = vrot.lane.b32.xlu1 %v5999_v62, %s5384_s7 }
0x15f3   : > { %3402 = vrot.lane.b32.xlu1 %v6019_v10, %s5384_s7 }
0x1613   : > { %v2843_v0 = vpop.f32.mrb[60].mxu0 }
0x1614   : > { %v4837_v9 = vpop.f32.mrb[61].mxu0  ;;  %4847 = vmatmul.mubr.msk.f32.vlgmr.msra.gmra.mrb[60].mxu1 %vm471_vm3, %v2843_v0 }
0x1615   : > { %4849 = vmatprep.mubr.msk.f32.mxu1 %vm5378_vm0, %v5379_v4 }
0x1617   : > { %v2848_v12 = vpop.f32.mrb[62].mxu0 }
0x1618   : > { %v4840_v15 = vpop.f32.mrb[63].mxu0  ;;  %4850 = vmatmul.mubr.msk.f32.gmra.mrb[62].mxu1 %vm471_vm3, %v2848_v12 }
0x1619   : > { %4852 = vmatprep.mubr.msk.f32.mxu1 %vm5378_vm0, %v5379_v4 }
0x161b   : > { %v2853_v1 = vpop.f32.mrb[64].mxu0 }
0x161c   : > { %v4843_v17 = vpop.f32.mrb[65].mxu0  ;;  %4853 = vmatmul.mubr.msk.f32.gmra.mrb[64].mxu1 %vm471_vm3, %v2853_v1 }
0x161d   : > { %4872 = vmatprep.mubr.msk.f32.mxu1 %vm5378_vm0, %v5379_v4 }
0x1655   : > { %v5185_v62 = vpop.permute.xlu1 %5184 }
0x1656   : > { %v5187_v10 = vunpack.i.h.bf16 %v5185_v62  ;;  %v5186_v19 = vunpack.i.l.bf16 %v5185_v62 }
0x1657   : > { %v3076_v27 = vpop.permute.xlu0 %3075 }
0x1658   : > { %v5077_v22 = vpack.c.bf16 %v5187_v10, %v5186_v19 }
0x1659   : > { %v3063_v35 = vpop.permute.xlu1 %3062 }
0x165a   : > { %5079 = vmatpush3.bf16.xpose.msk.msra.mxu1 %vm5544_vm4, %v5077_v22 }
0x165b   : > { %4870 = vmatprep.subr.mxu1 %v5379_v4  ;;  %v3067_v36 = vpop.permute.xlu0 %3066 }
0x165d   : > { %v3065_v30 = vpop.permute.xlu1 %3064 }
0x165f   : > { %v3401_v61 = vpop.permute.xlu0 %3400 }
0x1660   : > { %v3410_v12 = vsel %vm471_vm3, %v3401_v61, 0.0 }
0x1661   : > { %v3399_v0 = vpop.permute.xlu1 %3398 }
0x1662   : > { %4871 = vmatpush3.xpose.msk.msra.mxu1 %vm471_vm3, %v3076_v27  ;;  %v3407_v1 = vsel %vm471_vm3, %v3399_v0, 0.0 }
0x1663   : > { %4896 = vmatprep.subr.mxu1 %v5379_v4 }
0x1665   : > { %4873 = vmatmul.mubr.msk.f32.vlgmr.msra.gmra.mrb[66].mxu1 %vm471_vm3, %v3063_v35  ;;  %v3403_v17 = vpop.permute.xlu1 %3402 }
0x1666   : > { %4875 = vmatprep.mubr.msk.f32.mxu1 %vm5378_vm0, %v5379_v4  ;;  %v3413_v62 = vsel %vm471_vm3, %v3403_v17, 0.0 }
0x1669   : > { %4876 = vmatmul.mubr.msk.f32.gmra.mrb[68].mxu1 %vm471_vm3, %v3065_v30 }
0x166a   : > { %4878 = vmatprep.mubr.msk.f32.mxu1 %vm5378_vm0, %v5379_v4 }
0x166d   : > { %4879 = vmatmul.mubr.msk.f32.gmra.mrb[70].mxu1 %vm471_vm3, %v3067_v36 }
0x166e   : > { %4898 = vmatprep.mubr.msk.f32.mxu1 %vm5378_vm0, %v5379_v4 }
0x167c   : > { %v3021_v37 = vpop.f32.mrb[66].mxu0 }
0x167d   : > { %v4859_v38 = vpop.f32.mrb[67].mxu0 }
0x1680   : > { %v3026_v40 = vpop.f32.mrb[68].mxu0 }
0x1681   : > { %v4862_v29 = vpop.f32.mrb[69].mxu0 }
0x1684   : > { %v3031_v41 = vpop.f32.mrb[70].mxu0 }
0x1685   : > { %v4865_v42 = vpop.f32.mrb[71].mxu0 }
0x16e7   : > { %v2932_v43 = vpop.f32.mrb[60].mxu1 }
0x16e8   : > { %v6205_v16 = vadd.f32 %v3021_v37, %v2932_v43  ;;  %v4848_v44 = vpop.f32.mrb[61].mxu1 }
0x16eb   : > { %v2937_v47 = vpop.f32.mrb[62].mxu1 }
0x16ec   : > { %v6207_v26 = vadd.f32 %v3026_v40, %v2937_v47  ;;  %v4851_v48 = vpop.f32.mrb[63].mxu1 }
0x16ef   : > { %v2942_v49 = vpop.f32.mrb[64].mxu1 }
0x16f0   : > { %v6209_v20 = vadd.f32 %v3031_v41, %v2942_v49  ;;  %v4854_v50 = vpop.f32.mrb[65].mxu1 }
0x1738   : > { %v3155_v14 = vpop.f32.mrb[66].mxu1 }
0x1739   : > { %v3169_v51 = vmul.f32 0.35355338, %v3155_v14  ;;  %v4874_v52 = vpop.f32.mrb[67].mxu1 }
0x173b   : > { %v3172_v53 = vsel %vm5587_vm5, -50000.0, %v3169_v51 }
0x173c   : > { %v3160_v54 = vpop.f32.mrb[68].mxu1  ;;  %v3175_v56 = vsel %vm594_vm6, %v3172_v53, -inf }
0x173d   : > { %v3170_v32 = vmul.f32 0.35355338, %v3160_v54  ;;  %3176 = vmax.xlane.f32.xlu0 %v3175_v56  ;;  %v4877_v57 = vpop.f32.mrb[69].mxu1 }
0x173f   : > { %v3173_v33 = vsel %vm5595_vm7, -50000.0, %v3170_v32 }
0x1740   : > { %v3165_v59 = vpop.f32.mrb[70].mxu1  ;;  %v3178_v60 = vsel %vm594_vm6, %v3173_v33, -inf }
0x1741   : > { %v3171_v8 = vmul.f32 0.35355338, %v3165_v59  ;;  %3179 = vmax.xlane.f32.xlu1 %v3178_v60  ;;  %v4880_v34 = vpop.f32.mrb[71].mxu1 }
0x1743   : > { %v3174_v9 = vsel %vm5603_vm8, -50000.0, %v3171_v8 }
0x1744   : > { %v3181_v15 = vsel %vm594_vm6, %v3174_v9, -inf }
0x1745   : > { %3411 = vadd.xlane.f32.xlu1 %v3410_v12  ;;  %3182 = vmax.xlane.f32.xlu0 %v3181_v15 }
0x1749   : > { %3408 = vadd.xlane.f32.xlu0 %v3407_v1 }
0x174d   : > { %3414 = vadd.xlane.f32.xlu0 %v3413_v62 }
0x17ca   : > { %v3177_v10 = vpop.xlane.xlu0 %3176 }
0x17cb   : > { %v3184_v19 = vsub.f32 %v3172_v53, %v3177_v10 }
0x17cd   : > { %v3187_v22 = vmul.f32 1.442695, %v3184_v19 }
0x17ce   : > { %v3180_v27 = vpop.xlane.xlu1 %3179 }
0x17cf   : > { %5329 = vpow2.f32 %v3187_v22  ;;  %v3185_v35 = vsub.f32 %v3173_v33, %v3180_v27 }
0x17d1   : > { %v3189_v30 = vmul.f32 1.442695, %v3185_v35 }
0x17d2   : > { %v3412_v36 = vpop.xlane.xlu1 %3411  ;;  %v3183_v37 = vpop.xlane.xlu0 %3182 }
0x17d3   : > { %5331 = vpow2.f32 %v3189_v30  ;;  %v3417_v38 = vmax.f32 %v3412_v36, 1e-24  ;;  %v3186_v56 = vsub.f32 %v3174_v9, %v3183_v37  ;;  %v4272_v37 = vld [vmem:[%s6451_s3 + $0x70] sm:$0xff] }
0x17d4   : > { %4897 = vmatpush3.msra.mxu1 %v4272_v37 }
0x17d5   : > { %5333 = vrsqrt.f32 %v3417_v38  ;;  %v3191_v32 = vmul.f32 1.442695, %v3186_v56  ;;  %5087 = vmatprep.subr.bf16.mxu1 %v5377_v2 }
0x17d6   : > { %v3409_v40 = vpop.xlane.xlu0 %3408 }
0x17d7   : > { %v3416_v29 = vmax.f32 %v3409_v40, 1e-24 }
0x17d9   : > { %v5330_v41 = vpop.eup %5329  ;;  %5335 = vrsqrt.f32 %v3416_v29 }
0x17da   : > { %v3193_v42 = vsel %vm594_vm6, %v5330_v41, 0.0  ;;  %v3415_v49 = vpop.xlane.xlu0 %3414 }
0x17db   : > { %3194 = vadd.xlane.f32.xlu1 %v3193_v42  ;;  %v3418_v51 = vmax.f32 %v3415_v49, 1e-24 }
0x17dd   : > { %v5332_v43 = vpop.eup %5331  ;;  %5337 = vrsqrt.f32 %v3418_v51 }
0x17de   : > { %v3196_v44 = vsel %vm594_vm6, %v5332_v43, 0.0  ;;  %5339 = vpow2.f32 %v3191_v32 }
0x17df   : > { %3197 = vadd.xlane.f32.xlu0 %v3196_v44  ;;  %v5334_v47 = vpop.eup %5333 }
0x17e0   : > { %v3423_v14 = vmul.f32 %v5334_v47, %v6003_v63 }
0x17e3   : > { %v5336_v48 = vpop.eup %5335 }
0x17e4   : > { %v3422_v50 = vmul.f32 %v5336_v48, %v5995_v28 }
0x17e6   : > { %v5193_v52 = vpack.i.bf16 %v3423_v14, %v3422_v50 }
0x17e7   : > { %v5338_v53 = vpop.eup %5337 }
0x17e8   : > { %v3424_v54 = vmul.f32 %v5338_v53, %v6015_v5  ;;  %v5340_v57 = vpop.eup %5339 }
0x17e9   : > { %v3199_v33 = vsel %vm594_vm6, %v5340_v57, 0.0 }
0x17ec   : > { %3212 = vrot.lane.b32.xlu1 %v6015_v5, %s5385_s8 }
0x17f0   : > { %5194 = vrot.lane.b32.xlu1 %v5193_v52, %s5384_s7 }
0x17f5   : > { %5189 = vrot.lane.b32.xlu0 %v6011_v3, %s5385_s8 }
0x17f9   : > { %3438 = vrot.lane.b32.xlu0 %v3424_v54, %s5384_s7 }
0x17fd   : > { %3427 = vrot.lane.b32.xlu0 %v6003_v63, %s5384_s7 }
0x1814   : > { %3200 = vadd.xlane.f32.xlu1 %v3199_v33 }
0x1825   : > { %3425 = vrot.lane.b32.xlu1 %v5995_v28, %s5384_s7 }
0x1829   : > { %3429 = vrot.lane.b32.xlu1 %v6015_v5, %s5384_s7 }
0x1868   : > { %v3195_v59 = vpop.xlane.xlu1 %3194 }
0x1869   : > { %5341 = vrcp.f32 %v3195_v59 }
0x186c   : > { %v3198_v60 = vpop.xlane.xlu0 %3197  ;;  %v3213_v8 = vpop.permute.xlu1 %3212 }
0x186d   : > { %5343 = vrcp.f32 %v3198_v60 }
0x1870   : > { %v5190_v61 = vpop.permute.xlu0 %5189  ;;  %v5195_v12 = vpop.permute.xlu1 %5194 }
0x1871   : > { %v5192_v63 = vunpack.i.h.bf16 %v5190_v61  ;;  %v5191_v34 = vunpack.i.l.bf16 %v5190_v61  ;;  %v5197_v28 = vunpack.i.h.bf16 %v5195_v12  ;;  %v5196_v17 = vunpack.i.l.bf16 %v5195_v12 }
0x1873   : > { %v5081_v0 = vpack.c.bf16 %v5192_v63, %v5191_v34  ;;  %v5342_v9 = vpop.eup %5341  ;;  %v5084_v10 = vpack.c.bf16 %v5197_v28, %v5196_v17 }
0x1874   : > { %v3205_v15 = vmul.f32 %v5342_v9, %v5330_v41  ;;  %v3439_v19 = vpop.permute.xlu0 %3438 }
0x1875   : > { %5082 = vmatpush3.bf16.msra.mxu0 %v5081_v0 }
0x1876   : > { %4885 = vmatprep.subr.mxu0 %v5379_v4 }
0x1877   : > { %v5344_v1 = vpop.eup %5343 }
0x1878   : > { %v3206_v62 = vmul.f32 %v5344_v1, %v5332_v43  ;;  %v3428_v6 = vpop.permute.xlu0 %3427 }
0x1879   : > { %4886 = vmatpush3.msra.mxu0 %v3213_v8 }
0x187a   : > { %4888 = vmatmul.mubr.msk.f32.vlgmr.msra.gmra.mrb[72].mxu0 %vm594_vm6, %v3205_v15  ;;  %5083 = vmatprep.subr.bf16.mxu0 %v5377_v2 }
0x187b   : > { %4890 = vmatprep.mubr.msk.f32.mxu0 %vm5378_vm0, %v5379_v4 }
0x187e   : > { %4891 = vmatmul.mubr.msk.f32.gmra.mrb[74].mxu0 %vm594_vm6, %v3206_v62 }
0x187f   : > { %4893 = vmatprep.mubr.msk.f32.mxu0 %vm5378_vm0, %v5379_v4 }
0x1880   : > { %5086 = vmatpush3.bf16.xpose.msk.msra.mxu0 %vm5544_vm4, %v5084_v10 }
0x1881   : > { %4911 = vmatprep.subr.mxu0 %v5379_v4 }
0x1888   : > { %4912 = vmatpush3.xpose.msk.msra.mxu0 %vm471_vm3, %v3439_v19 }
0x1889   : > { %4937 = vmatprep.subr.mxu0 %v5379_v4 }
0x18a1   : > { %v3201_v22 = vpop.xlane.xlu1 %3200 }
0x18a2   : > { %5345 = vrcp.f32 %v3201_v22 }
0x18a5   : > { %v3426_v30 = vpop.permute.xlu1 %3425 }
0x18a9   : > { %v3430_v36 = vpop.permute.xlu1 %3429 }
0x18ac   : > { %v5346_v27 = vpop.eup %5345 }
0x18ad   : > { %v3207_v35 = vmul.f32 %v5346_v27, %v5340_v57 }
0x18af   : > { %4894 = vmatmul.mubr.msk.f32.gmra.mrb[76].mxu0 %vm594_vm6, %v3207_v35 }
0x18b0   : > { %4913 = vmatprep.mubr.msk.f32.mxu0 %vm5378_vm0, %v5379_v4 }
0x18b3   : > { %4914 = vmatmul.mubr.msk.f32.vlgmr.msra.gmra.mrb[78].mxu0 %vm471_vm3, %v3426_v30 }
0x18b4   : > { %4916 = vmatprep.mubr.msk.f32.mxu0 %vm5378_vm0, %v5379_v4 }
0x18b7   : > { %4917 = vmatmul.mubr.msk.f32.gmra.mrb[80].mxu0 %vm471_vm3, %v3428_v6 }
0x18b8   : > { %4919 = vmatprep.mubr.msk.f32.mxu0 %vm5378_vm0, %v5379_v4 }
0x18bb   : > { %4920 = vmatmul.mubr.msk.f32.gmra.mrb[82].mxu0 %vm471_vm3, %v3430_v36 }
0x18bc   : > { %4939 = vmatprep.mubr.msk.f32.mxu0 %vm5378_vm0, %v5379_v4 }
0x194d   : > { %v3292_v38 = vpop.f32.mrb[72].mxu0 }
0x194e   : > { %v4889_v40 = vpop.f32.mrb[73].mxu0  ;;  %4899 = vmatmul.mubr.msk.f32.vlgmr.msra.gmra.mrb[72].mxu1 %vm471_vm3, %v3292_v38 }
0x194f   : > { %4901 = vmatprep.mubr.msk.f32.mxu1 %vm5378_vm0, %v5379_v4 }
0x1951   : > { %v3297_v29 = vpop.f32.mrb[74].mxu0 }
0x1952   : > { %v4892_v41 = vpop.f32.mrb[75].mxu0  ;;  %4902 = vmatmul.mubr.msk.f32.gmra.mrb[74].mxu1 %vm471_vm3, %v3297_v29 }
0x1953   : > { %4904 = vmatprep.mubr.msk.f32.mxu1 %vm5378_vm0, %v5379_v4 }
0x1982   : > { %v3302_v42 = vpop.f32.mrb[76].mxu0 }
0x1983   : > { %v4895_v43 = vpop.f32.mrb[77].mxu0  ;;  %4905 = vmatmul.mubr.msk.f32.gmra.mrb[76].mxu1 %vm471_vm3, %v3302_v42 }
0x1984   : > { %4928 = vmatprep.mubr.msk.f32.mxu1 %vm5378_vm0, %v5379_v4 }
0x1986   : > { %v3518_v44 = vpop.f32.mrb[78].mxu0 }
0x1987   : > { %v3532_v47 = vmul.f32 0.35355338, %v3518_v44  ;;  %v4915_v48 = vpop.f32.mrb[79].mxu0 }
0x1989   : > { %v3535_v49 = vsel %vm5587_vm5, -50000.0, %v3532_v47 }
0x198a   : > { %v3523_v50 = vpop.f32.mrb[80].mxu0  ;;  %v3538_v14 = vsel %vm594_vm6, %v3535_v49, -inf }
0x198b   : > { %v3533_v51 = vmul.f32 0.35355338, %v3523_v50  ;;  %3539 = vmax.xlane.f32.xlu0 %v3538_v14  ;;  %v4918_v52 = vpop.f32.mrb[81].mxu0 }
0x198d   : > { %v3536_v53 = vsel %vm5595_vm7, -50000.0, %v3533_v51 }
0x198e   : > { %v3528_v54 = vpop.f32.mrb[82].mxu0  ;;  %v3541_v56 = vsel %vm594_vm6, %v3536_v53, -inf }
0x198f   : > { %v3534_v32 = vmul.f32 0.35355338, %v3528_v54  ;;  %3542 = vmax.xlane.f32.xlu1 %v3541_v56  ;;  %v4921_v57 = vpop.f32.mrb[83].mxu0  ;;  %v6329_v54 = vld [vmem:[%s6452_s4 + $0x8] sm:$0xff] }
0x1990   : > { %v3764_v56 = vrot.slane %v6329_v54, %v5851_v7 }
0x1991   : > { %v3537_v33 = vsel %vm5603_vm8, -50000.0, %v3534_v32 }
0x1992   : > { %v3544_v25 = vsel %vm594_vm6, %v3537_v33, -inf }
0x1993   : > { %3545 = vmax.xlane.f32.xlu0 %v3544_v25 }
0x1a18   : > { %v3540_v59 = vpop.xlane.xlu0 %3539 }
0x1a19   : > { %v3547_v60 = vsub.f32 %v3535_v49, %v3540_v59 }
0x1a1b   : > { %v3550_v61 = vmul.f32 1.442695, %v3547_v60 }
0x1a1c   : > { %v3543_v8 = vpop.xlane.xlu1 %3542 }
0x1a1d   : > { %5347 = vpow2.f32 %v3550_v61  ;;  %v3548_v63 = vsub.f32 %v3536_v53, %v3543_v8 }
0x1a1f   : > { %v3552_v39 = vmul.f32 1.442695, %v3548_v63 }
0x1a20   : > { %v3546_v34 = vpop.xlane.xlu0 %3545 }
0x1a21   : > { %5349 = vpow2.f32 %v3552_v39  ;;  %v3549_v0 = vsub.f32 %v3537_v33, %v3546_v34  ;;  %v3381_v9 = vpop.f32.mrb[72].mxu1 }
0x1a22   : > { %v6289_v12 = vadd.f32 %v3381_v9, %v6205_v16  ;;  %v4900_v15 = vpop.f32.mrb[73].mxu1 }
0x1a23   : > { %v3554_v46 = vmul.f32 1.442695, %v3549_v0 }
0x1a25   : > { %5351 = vpow2.f32 %v3554_v46  ;;  %v3386_v1 = vpop.f32.mrb[74].mxu1 }
0x1a26   : > { %v6292_v28 = vadd.f32 %v3386_v1, %v6207_v26  ;;  %v4903_v17 = vpop.f32.mrb[75].mxu1  ;;  %v4273_v26 = vld [vmem:[%s6451_s3 + $0x78] sm:$0xff] }
0x1a27   : > { %v5348_v62 = vpop.eup %5347  ;;  %4938 = vmatpush3.msra.mxu0 %v4273_v26 }
0x1a28   : > { %v3556_v10 = vsel %vm594_vm6, %v5348_v62, 0.0  ;;  %5096 = vmatprep.subr.bf16.mxu0 %v5377_v2 }
0x1a29   : > { %3557 = vadd.xlane.f32.xlu0 %v3556_v10 }
0x1a2b   : > { %v5350_v19 = vpop.eup %5349 }
0x1a2c   : > { %v3559_v22 = vsel %vm594_vm6, %v5350_v19, 0.0 }
0x1a2d   : > { %3560 = vadd.xlane.f32.xlu1 %v3559_v22 }
0x1a2f   : > { %v5352_v27 = vpop.eup %5351 }
0x1a30   : > { %v3562_v16 = vsel %vm594_vm6, %v5352_v27, 0.0 }
0x1a31   : > { %3563 = vadd.xlane.f32.xlu0 %v3562_v16 }
0x1a3e   : > { %5199 = vrot.lane.b32.xlu1 %v6011_v3, %s5386_s11 }
0x1a47   : > { %3575 = vrot.lane.b32.xlu0 %v6015_v5, %s5386_s11 }
0x1a56   : > { %v3391_v35 = vpop.f32.mrb[76].mxu1 }
0x1a57   : > { %v3397_v30 = vadd.f32 %v3391_v35, %v6209_v20  ;;  %v4906_v6 = vpop.f32.mrb[77].mxu1 }
0x1ab6   : > { %v3558_v36 = vpop.xlane.xlu0 %3557 }
0x1ab7   : > { %5353 = vrcp.f32 %v3558_v36 }
0x1aba   : > { %v3561_v37 = vpop.xlane.xlu1 %3560 }
0x1abb   : > { %5355 = vrcp.f32 %v3561_v37  ;;  %v4266_v37 = vld [vmem:[%s6450_s2 + $0x60] sm:$0xff] }
0x1abe   : > { %v5200_v38 = vpop.permute.xlu1 %5199  ;;  %v3564_v3 = vpop.xlane.xlu0 %3563 }
0x1abf   : > { %v5202_v40 = vunpack.i.h.bf16 %v5200_v38  ;;  %v5201_v29 = vunpack.i.l.bf16 %v5200_v38  ;;  %5357 = vrcp.f32 %v3564_v3  ;;  %v4267_v38 = vld [vmem:[%s6450_s2 + $0x68] sm:$0xff] }
0x1ac0   : > { %v5091_v3 = vpack.c.bf16 %v4267_v38, %v4266_v37 }
0x1ac1   : > { %v5088_v5 = vpack.c.bf16 %v5202_v40, %v5201_v29  ;;  %v5354_v41 = vpop.eup %5353  ;;  %v4268_v40 = vld [vmem:[%s6450_s2 + $0x70] sm:$0xff]  ;;  %v4269_v29 = vld [vmem:[%s6450_s2 + $0x78] sm:$0xff] }
0x1ac2   : > { %v3568_v42 = vmul.f32 %v5354_v41, %v5348_v62  ;;  %v3576_v43 = vpop.permute.xlu0 %3575  ;;  %v4274_v41 = vld [vmem:[%s6451_s3 + $0x80] sm:$0xff] }
0x1ac3   : > { %5089 = vmatpush3.bf16.msra.mxu1 %v5088_v5  ;;  %v5094_v5 = vpack.c.bf16 %v4269_v29, %v4268_v40  ;;  %v3923_v29 = vrot.slane %v6329_v54, %v2066_v55  ;;  %v4028_v55 = vrot.slane %v6329_v54, %v2202_v18  ;;  %v4035_v18 = vld [vmem:[%s6453_s5] sm:$0xff] }
0x1ac4   : > { %4926 = vmatprep.subr.mxu1 %v5379_v4 }
0x1ac5   : > { %v5356_v44 = vpop.eup %5355 }
0x1ac6   : > { %v3569_v20 = vmul.f32 %v5356_v44, %v5350_v19 }
0x1ac7   : > { %4927 = vmatpush3.msra.mxu1 %v3576_v43  ;;  %v4276_v43 = vld [vmem:[%s6451_s3 + $0x90] sm:$0xff] }
0x1ac8   : > { %4929 = vmatmul.mubr.msk.f32.vlgmr.msra.gmra.mrb[78].mxu1 %vm594_vm6, %v3568_v42  ;;  %5090 = vmatprep.subr.bf16.mxu1 %v5377_v2  ;;  %v4275_v42 = vld [vmem:[%s6451_s3 + $0x88] sm:$0xff] }
0x1ac9   : > { %4931 = vmatprep.mubr.msk.f32.mxu1 %vm5378_vm0, %v5379_v4  ;;  %v5358_v47 = vpop.eup %5357  ;;  %5092 = vmatpush3.bf16.msra.mxu1 %v5091_v3  ;;  %v5097_v44 = vpack.c.bf16 %v4275_v42, %v4274_v41 }
0x1aca   : > { %v3570_v48 = vmul.f32 %v5358_v47, %v5352_v27  ;;  %5093 = vmatprep.subr.bf16.mxu1 %v5377_v2 }
0x1acc   : > { %4932 = vmatmul.mubr.msk.f32.gmra.mrb[80].mxu1 %vm594_vm6, %v3569_v20  ;;  %v4277_v20 = vld [vmem:[%s6451_s3 + $0x98] sm:$0xff] }
0x1acd   : > { %4934 = vmatprep.mubr.msk.f32.mxu1 %vm5378_vm0, %v5379_v4  ;;  %5095 = vmatpush3.bf16.msra.mxu1 %v5094_v5  ;;  %v5100_v47 = vpack.c.bf16 %v4277_v20, %v4276_v43 }
0x1ace   : > { %5108 = vmatprep.subr.bf16.mxu1 %v5377_v2 }
0x1ad0   : > { %4935 = vmatmul.mubr.msk.f32.gmra.mrb[82].mxu1 %vm594_vm6, %v3570_v48  ;;  %v4278_v48 = vld [vmem:[%s6451_s3 + $0xa0] sm:$0xff] }
0x1ad1   : > { %4956 = vmatprep.mubr.msk.f32.mxu1 %vm5378_vm0, %v5379_v4 }
0x1b9b   : > { %v3655_v49 = vpop.f32.mrb[78].mxu1 }
0x1b9c   : > { %v4930_v50 = vpop.f32.mrb[79].mxu1  ;;  %4940 = vmatmul.mubr.msk.f32.vlgmr.msra.gmra.mrb[84].mxu0 %vm471_vm3, %v3655_v49  ;;  %v4279_v49 = vld [vmem:[%s6451_s3 + $0xa8] sm:$0xff] }
0x1b9d   : > { %4942 = vmatprep.mubr.msk.f32.mxu0 %vm5378_vm0, %v5379_v4  ;;  %5098 = vmatpush3.bf16.msra.mxu0 %v5097_v44  ;;  %v5103_v50 = vpack.c.bf16 %v4279_v49, %v4278_v48 }
0x1b9e   : > { %5099 = vmatprep.subr.bf16.mxu0 %v5377_v2 }
0x1b9f   : > { %v3660_v14 = vpop.f32.mrb[80].mxu1 }
0x1ba0   : > { %v4933_v51 = vpop.f32.mrb[81].mxu1  ;;  %4943 = vmatmul.mubr.msk.f32.gmra.mrb[86].mxu0 %vm471_vm3, %v3660_v14 }
0x1ba1   : > { %4945 = vmatprep.mubr.msk.f32.mxu0 %vm5378_vm0, %v5379_v4  ;;  %5101 = vmatpush3.bf16.msra.mxu0 %v5100_v47 }
0x1ba2   : > { %5102 = vmatprep.subr.bf16.mxu0 %v5377_v2 }
0x1ba3   : > { %v3665_v52 = vpop.f32.mrb[82].mxu1 }
0x1ba4   : > { %v4936_v53 = vpop.f32.mrb[83].mxu1  ;;  %4946 = vmatmul.mubr.msk.f32.gmra.mrb[88].mxu0 %vm471_vm3, %v3665_v52 }
0x1ba5   : > { %4981 = vmatprep.mubr.msk.f32.mxu0 %vm5378_vm0, %v5379_v4  ;;  %5104 = vmatpush3.bf16.msra.mxu0 %v5103_v50 }
0x1ba6   : > { %5105 = vmatprep.subr.bf16.mxu0 %v5377_v2 }
0x1c6f   : > { %v3744_v32 = vpop.f32.mrb[84].mxu0 }
0x1c70   : > { %v3758_v57 = vadd.f32 %v3744_v32, %v6289_v12  ;;  %v4941_v33 = vpop.f32.mrb[85].mxu0 }
0x1c72   : > { %v3765_v25 = vadd.f32 %v3764_v56, %v3758_v57 }
0x1c73   : > { %v3749_v59 = vpop.f32.mrb[86].mxu0 }
0x1c74   : > { %v3759_v60 = vadd.f32 %v3749_v59, %v6292_v28  ;;  %v4944_v61 = vpop.f32.mrb[87].mxu0  ;;  %v3768_v8 = vadd.f32 %v3765_v25, %v5977_v58  ;;  %v3813_v59 = vrot.slane %v6329_v54, %v5907_v11 }
0x1c75   : > { %v3820_v61 = vrot.slane %v6329_v54, %v5910_v13 }
0x1c76   : > { %v3766_v63 = vadd.f32 %v3764_v56, %v3759_v60  ;;  %v3771_v39 = vsel %vm378_vm2, %v3768_v8, 0.0 }
0x1c77   : > { %3772 = vadd.xlane.f32.xlu1 %v3771_v39  ;;  %v3754_v34 = vpop.f32.mrb[88].mxu0 }
0x1c78   : > { %v3760_v0 = vadd.f32 %v3754_v34, %v3397_v30  ;;  %v4947_v9 = vpop.f32.mrb[89].mxu0  ;;  %v3769_v15 = vadd.f32 %v3766_v63, %v5983_v31 }
0x1c7a   : > { %v3767_v46 = vadd.f32 %v3764_v56, %v3760_v0  ;;  %v3774_v12 = vsel %vm378_vm2, %v3769_v15, 0.0 }
0x1c7b   : > { %3775 = vadd.xlane.f32.xlu0 %v3774_v12 }
0x1c7c   : > { %v3770_v1 = vadd.f32 %v3767_v46, %v5989_v23 }
0x1c7e   : > { %v3777_v28 = vsel %vm378_vm2, %v3770_v1, 0.0 }
0x1c7f   : > { %3778 = vadd.xlane.f32.xlu1 %v3777_v28 }
0x1d04   : > { %v3773_v17 = vpop.xlane.xlu1 %3772 }
0x1d05   : > { %v3780_v58 = vmul.f32 0.03125, %v3773_v17  ;;  %v4280_v17 = vld [vmem:[%s6451_s3 + $0xb0] sm:$0xff] }
0x1d07   : > { %v3783_v62 = vsub.f32 %v3768_v8, %v3780_v58  ;;  %v4281_v58 = vld [vmem:[%s6451_s3 + $0xb8] sm:$0xff] }
0x1d08   : > { %v3776_v10 = vpop.xlane.xlu0 %3775 }
0x1d09   : > { %v3781_v19 = vmul.f32 0.03125, %v3776_v10  ;;  %v3786_v22 = vmul.f32 %v3783_v62, %v3783_v62  ;;  %v3827_v10 = vrot.slane %v6329_v54, %v1970_v45 }
0x1d0b   : > { %v3784_v27 = vsub.f32 %v3769_v15, %v3781_v19  ;;  %v3789_v16 = vsel %vm378_vm2, %v3786_v22, 0.0 }
0x1d0c   : > { %3790 = vadd.xlane.f32.xlu0 %v3789_v16  ;;  %v3779_v31 = vpop.xlane.xlu1 %3778 }
0x1d0d   : > { %v3782_v26 = vmul.f32 0.03125, %v3779_v31  ;;  %v3787_v35 = vmul.f32 %v3784_v27, %v3784_v27 }
0x1d0f   : > { %v3785_v30 = vsub.f32 %v3770_v1, %v3782_v26  ;;  %v3792_v6 = vsel %vm378_vm2, %v3787_v35, 0.0 }
0x1d10   : > { %3793 = vadd.xlane.f32.xlu1 %v3792_v6 }
0x1d11   : > { %v3788_v23 = vmul.f32 %v3785_v30, %v3785_v30 }
0x1d13   : > { %v3795_v36 = vsel %vm378_vm2, %v3788_v23, 0.0 }
0x1d14   : > { %3796 = vadd.xlane.f32.xlu0 %v3795_v36 }
0x1d99   : > { %v3791_v14 = vpop.xlane.xlu0 %3790 }
0x1d9a   : > { %v3798_v51 = vmul.f32 0.03125, %v3791_v14 }
0x1d9c   : > { %v3801_v52 = vadd.f32 1e-05, %v3798_v51 }
0x1d9d   : > { %v3794_v53 = vpop.xlane.xlu1 %3793 }
0x1d9e   : > { %5359 = vrsqrt.f32 %v3801_v52  ;;  %v3799_v56 = vmul.f32 0.03125, %v3794_v53 }
0x1da0   : > { %v3802_v32 = vadd.f32 1e-05, %v3799_v56  ;;  %v4033_v56 = vrot.slane %v6329_v54, %v2209_v24  ;;  %v5109_v24 = vpack.c.bf16 %v4036_v21, %v4035_v18  ;;  %v4037_v54 = vld [vmem:[%s6453_s5 + $0x10] sm:$0xff] }
0x1da1   : > { %v3797_v57 = vpop.xlane.xlu0 %3796 }
0x1da2   : > { %5361 = vrsqrt.f32 %v3802_v32  ;;  %v3800_v33 = vmul.f32 0.03125, %v3797_v57 }
0x1da4   : > { %v3803_v25 = vadd.f32 1e-05, %v3800_v33 }
0x1da6   : > { %5363 = vrsqrt.f32 %v3803_v25 }
0x1da8   : > { %v5360_v60 = vpop.eup %5359 }
0x1da9   : > { %v3807_v8 = vmul.f32 %v5360_v60, %v3783_v62  ;;  %v5106_v62 = vpack.c.bf16 %v4281_v58, %v4280_v17 }
0x1dab   : > { %v3814_v63 = vmul.f32 %v3813_v59, %v3807_v8  ;;  %5107 = vmatpush3.bf16.msra.mxu0 %v5106_v62 }
0x1dac   : > { %v5362_v39 = vpop.eup %5361 }
0x1dad   : > { %v3821_v34 = vadd.f32 %v3820_v61, %v3814_v63  ;;  %v3808_v0 = vmul.f32 %v5362_v39, %v3784_v27  ;;  %v4038_v63 = vld [vmem:[%s6453_s5 + $0x18] sm:$0xff] }
0x1dae   : > { %v5112_v39 = vpack.c.bf16 %v4038_v63, %v4037_v54 }
0x1daf   : > { %4957 = vmatmul.mubr.msk.f32.vlgmr.msra.gmra.mrb[84].mxu1 %vm378_vm2, %v3821_v34  ;;  %v3815_v9 = vmul.f32 %v3813_v59, %v3808_v0 }
0x1db0   : > { %v5364_v15 = vpop.eup %5363  ;;  %4959 = vmatprep.mubr.msk.f32.mxu1 %vm5378_vm0, %v5379_v4  ;;  %5110 = vmatpush3.bf16.msra.mxu1 %v5109_v24 }
0x1db1   : > { %v3822_v46 = vadd.f32 %v3820_v61, %v3815_v9  ;;  %v3809_v12 = vmul.f32 %v5364_v15, %v3785_v30  ;;  %5111 = vmatprep.subr.bf16.mxu1 %v5377_v2  ;;  %v4039_v15 = vld [vmem:[%s6453_s5 + $0x20] sm:$0xff] }
0x1db2   : > { %v4056_v2 = vrot.slane %v4039_v15, %v5851_v7  ;;  %v4066_v58 = vrot.slane %v4039_v15, %v5910_v13 }
0x1db3   : > { %4960 = vmatmul.mubr.msk.f32.gmra.mrb[86].mxu1 %vm378_vm2, %v3822_v46  ;;  %v3816_v1 = vmul.f32 %v3813_v59, %v3809_v12  ;;  %v4061_v12 = vrot.slane %v4039_v15, %v5907_v11 }
0x1db4   : > { %4962 = vmatprep.mubr.msk.f32.mxu1 %vm5378_vm0, %v5379_v4  ;;  %5113 = vmatpush3.bf16.msra.mxu1 %v5112_v39 }
0x1db5   : > { %v3823_v28 = vadd.f32 %v3820_v61, %v3816_v1 }
0x1db7   : > { %4963 = vmatmul.mubr.msk.f32.gmra.mrb[88].mxu1 %vm378_vm2, %v3823_v28 }
0x1db8   : > { %4998 = vmatprep.mubr.msk.f32.mxu1 %vm5378_vm0, %v5379_v4 }
0x1e82   : > { %v3903_v19 = vpop.f32.mrb[84].mxu1 }
0x1e83   : > { %v3904_v22 = vadd.f32 %v3903_v19, %v3827_v10  ;;  %v4958_v27 = vpop.f32.mrb[85].mxu1 }
0x1e85   : > { %v3917_v16 = vmax.f32 %v3904_v22, 0.0 }
0x1e86   : > { %v3908_v31 = vpop.f32.mrb[86].mxu1 }
0x1e87   : > { %v3909_v26 = vadd.f32 %v3908_v31, %v3827_v10  ;;  %v4961_v35 = vpop.f32.mrb[87].mxu1  ;;  %4982 = vmatmul.mubr.msk.f32.vlgmr.msra.gmra.mrb[90].mxu0 %vm2068_vm9, %v3917_v16 }
0x1e88   : > { %4984 = vmatprep.mubr.msk.f32.mxu0 %vm5378_vm0, %v5379_v4 }
0x1e89   : > { %v3918_v30 = vmax.f32 %v3909_v26, 0.0 }
0x1e8a   : > { %v3913_v6 = vpop.f32.mrb[88].mxu1 }
0x1e8b   : > { %v3914_v23 = vadd.f32 %v3913_v6, %v3827_v10  ;;  %v4964_v36 = vpop.f32.mrb[89].mxu1  ;;  %4985 = vmatmul.mubr.msk.f32.gmra.mrb[92].mxu0 %vm2068_vm9, %v3918_v30 }
0x1e8c   : > { %4987 = vmatprep.mubr.msk.f32.mxu0 %vm5378_vm0, %v5379_v4 }
0x1e8d   : > { %v3919_v45 = vmax.f32 %v3914_v23, 0.0 }
0x1e8f   : > { %4988 = vmatmul.mubr.msk.f32.gmra.mrb[94].mxu0 %vm2068_vm9, %v3919_v45 }
0x1f5a   : > { %v3999_v37 = vpop.f32.mrb[90].mxu0 }
0x1f5b   : > { %v4983_v38 = vpop.f32.mrb[91].mxu0 }
0x1f5e   : > { %v4003_v3 = vpop.f32.mrb[92].mxu0 }
0x1f5f   : > { %v4986_v40 = vpop.f32.mrb[93].mxu0 }
0x1f62   : > { %v4007_v5 = vpop.f32.mrb[94].mxu0 }
0x1f63   : > { %v4008_v41 = vadd.f32 %v4007_v5, %v3923_v29  ;;  %v4989_v42 = vpop.f32.mrb[95].mxu0 }
0x1f65   : > { %v4011_v43 = vadd.f32 %v4008_v41, %v3823_v28 }
0x1f67   : > { %v4012_v44 = vsel %vm378_vm2, %v4011_v43, 0.0 }
0x1f68   : > { %4013 = vadd.xlane.f32.xlu1 %v4012_v44 }
0x1ff5   : > { %v4014_v20 = vpop.xlane.xlu1 %4013 }
0x1ff6   : > { %v4015_v4 = vmul.f32 0.03125, %v4014_v20 }
0x1ff8   : > { %v4016_v47 = vsub.f32 %v4011_v43, %v4015_v4 }
0x1ffa   : > { %v4017_v48 = vmul.f32 %v4016_v47, %v4016_v47 }
0x1ffc   : > { %v4018_v49 = vsel %vm378_vm2, %v4017_v48, 0.0 }
0x1ffd   : > { %4019 = vadd.xlane.f32.xlu0 %v4018_v49 }
0x208a   : > { %v4020_v50 = vpop.xlane.xlu0 %4019 }
0x208b   : > { %v4021_v14 = vmul.f32 0.03125, %v4020_v50 }
0x208d   : > { %v4022_v51 = vadd.f32 1e-05, %v4021_v14 }
0x208f   : > { %5365 = vrsqrt.f32 %v4022_v51 }
0x2099   : > { %v5366_v52 = vpop.eup %5365 }
0x209a   : > { %v4024_v53 = vmul.f32 %v5366_v52, %v4016_v47 }
0x209c   : > { %v4029_v32 = vmul.f32 %v4028_v55, %v4024_v53 }
0x209e   : > { %v4034_v57 = vadd.f32 %v4033_v56, %v4029_v32 }
0x20a0   : > { %v4040_v33 = vsel %vm378_vm2, %v4034_v57, 0.0 }
0x20a1   : > { %4041 = vadd.xlane.f32.xlu1 %v4040_v33 }
0x212e   : > { %v4042_v25 = vpop.xlane.xlu1 %4041 }
0x212f   : > { %v4043_v59 = vmul.f32 0.03125, %v4042_v25 }
0x2131   : > { %v4044_v60 = vsub.f32 %v4034_v57, %v4043_v59 }
0x2133   : > { %v4045_v61 = vmul.f32 %v4044_v60, %v4044_v60 }
0x2135   : > { %v4046_v8 = vsel %vm378_vm2, %v4045_v61, 0.0 }
0x2136   : > { %4047 = vadd.xlane.f32.xlu0 %v4046_v8 }
0x21c3   : > { %v4048_v34 = vpop.xlane.xlu0 %4047 }
0x21c4   : > { %v4049_v0 = vmul.f32 0.03125, %v4048_v34 }
0x21c6   : > { %v4050_v9 = vadd.f32 1e-05, %v4049_v0 }
0x21c8   : > { %5367 = vrsqrt.f32 %v4050_v9 }
0x21d2   : > { %v5368_v46 = vpop.eup %5367 }
0x21d3   : > { %v4052_v1 = vmul.f32 %v5368_v46, %v4044_v60 }
0x21d5   : > { %v4057_v28 = vmul.f32 %v4056_v2, %v4052_v1 }
0x21d7   : > { %v4062_v17 = vadd.f32 %v4061_v12, %v4057_v28 }
0x21d9   : > { %4999 = vmatmul.mubr.msk.f32.vlgmr.msra.gmra.mrb[90].mxu1 %vm378_vm2, %v4062_v17 }
0x22ac   : > { %v4136_v62 = vpop.f32.mrb[90].mxu1 }
0x22ad   : > { %v4137_v10 = vadd.f32 %v4136_v62, %v4066_v58  ;;  %v5000_v19 = vpop.f32.mrb[91].mxu1 }
0x22af   : > { %4141 = vst.msk [vmem:[%s249_s18] sm:$0xff] %vm4140_vm10, %v4137_v10 }
0x22b0 PF: > { %s16_s21 = sadd.s32 1, %s5375_s21  }
0x22b1   : > { %p13_p4 = scmp.ge.s32.totalorder %s16_s21, 4  }
0x22b3   :  { %15 = sbr.rel (!%p13_p4) target bundleno = 1 (0x1), region = 77 }

</bundles_post_ra>
